<compile_context>
chip_gen: v7x
topology: tpu7x:2x2x1
jax: 0.10.0
libtpu: 0.0.40
codegen_flags: <defaults>
</compile_context>

<pallas_src>
import functools

import jax
import jax.numpy as jnp
from jax.experimental import pallas as pl
from jax.experimental.pallas import tpu as pltpu


def _disc_kernel(x_ref, w1_ref, b1_ref, w2_ref, b2_ref,
                 w3_ref, b3_ref, w4t_ref, b4_ref, o_ref):
    """Fused 4-layer MLP forward for one batch tile (weights VMEM-resident).

    x / w1..w3 are bf16; dots accumulate in f32; bias + LeakyReLU in f32.
    """
    def leaky_relu(h):
        return jnp.maximum(h, 0.2 * h)   # one VALU op

    x = x_ref[...]                                                  # bf16 (bb, 784)
    h = jnp.dot(x, w1_ref[...], preferred_element_type=jnp.float32)
    h = leaky_relu(h + b1_ref[...])                                 # f32 (bb, 512)

    h = jnp.dot(h.astype(w2_ref.dtype), w2_ref[...],
                preferred_element_type=jnp.float32)
    h = leaky_relu(h + b2_ref[...])                                 # f32 (bb, 256)

    h = jnp.dot(h.astype(w3_ref.dtype), w3_ref[...],
                preferred_element_type=jnp.float32)
    h = leaky_relu(h + b3_ref[...])                                 # f32 (bb, 128)

    # Final Linear(128 -> 1): N=1 would waste the MXU, so do it on the VPU/XLU
    # as an elementwise multiply + cross-lane reduction, all in f32.
    out = jnp.sum(h * w4t_ref[...], axis=-1, keepdims=True) + b4_ref[...]
    o_ref[...] = out.astype(o_ref.dtype)


@functools.partial(jax.jit, static_argnames=("block_b",))
def discriminator_forward(x, params, block_b=256):
    """x: (B, inp_dim) float32. params: dict of (in,out) weights / (1,out) biases."""
    B, D = x.shape
    bb = min(block_b, B)

    # bf16 for MXU operands; biases and the tiny final layer stay f32.
    x_bf = x.astype(jnp.bfloat16)
    w1 = params["w1"].astype(jnp.bfloat16)
    w2 = params["w2"].astype(jnp.bfloat16)
    w3 = params["w3"].astype(jnp.bfloat16)
    b1 = params["b1"].astype(jnp.float32)
    b2 = params["b2"].astype(jnp.float32)
    b3 = params["b3"].astype(jnp.float32)
    w4t = params["w4"].astype(jnp.float32).reshape(1, -1)   # (1, 128)
    b4 = params["b4"].astype(jnp.float32)                   # (1, 1)

    grid = (pl.cdiv(B, bb),)

    def x_map(i):
        return (i, 0)

    def fixed_map(i):
        return (0, 0)

    full = lambda a: pl.BlockSpec(a.shape, fixed_map)

    out = pl.pallas_call(
        _disc_kernel,
        out_shape=jax.ShapeDtypeStruct((B, 1), jnp.float32),
        grid_spec=pltpu.PrefetchScalarGridSpec(
            num_scalar_prefetch=0,
            grid=grid,
            in_specs=[
                pl.BlockSpec((bb, D), x_map),   # activations: tile over batch
                full(w1), full(b1),
                full(w2), full(b2),
                full(w3), full(b3),
                full(w4t), full(b4),
            ],
            out_specs=pl.BlockSpec((bb, 1), x_map),
        ),
        compiler_params=pltpu.CompilerParams(
            dimension_semantics=("parallel",),
        ),
    )(x_bf, w1, b1, w2, b2, w3, b3, w4t, b4)
    return out


def init_params(key, inp_dim=784, hidden_dim=128):
    """Deterministic PyTorch-style init: U(-1/sqrt(fan_in), 1/sqrt(fan_in)).

    Weights are stored as (in, out) (transposed relative to nn.Linear)."""
    dims = [inp_dim, hidden_dim * 4, hidden_dim * 2, hidden_dim, 1]
    params = {}
    for i in range(4):
        fan_in, fan_out = dims[i], dims[i + 1]
        key, kw, kb = jax.random.split(key, 3)
        bound = 1.0 / (fan_in ** 0.5)
        params[f"w{i+1}"] = jax.random.uniform(
            kw, (fan_in, fan_out), jnp.float32, -bound, bound)
        params[f"b{i+1}"] = jax.random.uniform(
            kb, (1, fan_out), jnp.float32, -bound, bound)
    return params


def reference_forward(x, params):
    """Pure-jnp reference with the same precision flow as the kernel:
    layers 1-3 (the hidden layers) use bf16 MXU operands with f32 accumulation,
    the final Linear(128->1) runs in f32."""
    h = x
    for i in range(1, 4):   # layers 1..3; layer 4 handled below (matches kernel)
        w = params[f"w{i}"].astype(jnp.bfloat16)
        a = h.astype(jnp.bfloat16)
        h = jnp.dot(a, w, preferred_element_type=jnp.float32) + params[f"b{i}"]
        h = jnp.maximum(h, 0.2 * h)
    return h @ params["w4"] + params["b4"]


if __name__ == "__main__":
    key = jax.random.PRNGKey(0)
    inp_dim, hidden_dim, batch = 784, 128, 512   # grid = (2,) at block_b=256

    kx, kp = jax.random.split(key)
    x = jax.random.normal(kx, (batch, inp_dim), jnp.float32)
    params = init_params(kp, inp_dim=inp_dim, hidden_dim=hidden_dim)

    out = discriminator_forward(x, params, block_b=256)
    out = jax.block_until_ready(out)

    ref = reference_forward(x, params)
    assert out.shape == (batch, 1), out.shape
    assert jnp.allclose(out, ref, atol=1e-2, rtol=1e-2), "mismatch vs reference"

    print("KERNEL_OK")
</pallas_src>

<mosaic_0001>
module attributes {stable_mosaic.version = 11 : i64} {
  func.func @_disc_kernel(%arg0: i32, %arg1: memref<256x784xbf16, #tpu.memory_space<vmem>>, %arg2: memref<784x512xbf16, #tpu.memory_space<vmem>>, %arg3: memref<1x512xf32, #tpu.memory_space<vmem>>, %arg4: memref<512x256xbf16, #tpu.memory_space<vmem>>, %arg5: memref<1x256xf32, #tpu.memory_space<vmem>>, %arg6: memref<256x128xbf16, #tpu.memory_space<vmem>>, %arg7: memref<1x128xf32, #tpu.memory_space<vmem>>, %arg8: memref<1x128xf32, #tpu.memory_space<vmem>>, %arg9: memref<1x1xf32, #tpu.memory_space<vmem>>, %arg10: memref<256x1xf32, #tpu.memory_space<vmem>>) attributes {dimension_semantics = [#tpu.dimension_semantics<parallel>], iteration_bounds = array<i64: 2>, scalar_prefetch = 0 : i64, scratch_operands = 0 : i64, tpu.core_type = #tpu.core_type<tc>, window_params = [{transform_indices = @transform_0, window_bounds = array<i64: 256, 784>}, {pipeline_mode = #tpu.pipeline_mode<synchronous>, transform_indices = @transform_1, window_bounds = array<i64: 784, 512>}, {pipeline_mode = #tpu.pipeline_mode<synchronous>, transform_indices = @transform_2, window_bounds = array<i64: 1, 512>}, {pipeline_mode = #tpu.pipeline_mode<synchronous>, transform_indices = @transform_3, window_bounds = array<i64: 512, 256>}, {pipeline_mode = #tpu.pipeline_mode<synchronous>, transform_indices = @transform_4, window_bounds = array<i64: 1, 256>}, {pipeline_mode = #tpu.pipeline_mode<synchronous>, transform_indices = @transform_5, window_bounds = array<i64: 256, 128>}, {pipeline_mode = #tpu.pipeline_mode<synchronous>, transform_indices = @transform_6, window_bounds = array<i64: 1, 128>}, {pipeline_mode = #tpu.pipeline_mode<synchronous>, transform_indices = @transform_7, window_bounds = array<i64: 1, 128>}, {pipeline_mode = #tpu.pipeline_mode<synchronous>, transform_indices = @transform_8, window_bounds = array<i64: 1, 1>}, {transform_indices = @transform_9, window_bounds = array<i64: 256, 1>}]} {
    %c0 = arith.constant 0 : index
    %c0_0 = arith.constant 0 : index
    %0 = vector.load %arg1[%c0, %c0_0] : memref<256x784xbf16, #tpu.memory_space<vmem>>, vector<256x784xbf16>
    %c0_1 = arith.constant 0 : index
    %c0_2 = arith.constant 0 : index
    %1 = vector.load %arg2[%c0_1, %c0_2] : memref<784x512xbf16, #tpu.memory_space<vmem>>, vector<784x512xbf16>
    %cst = arith.constant dense<0.000000e+00> : vector<256x512xf32>
    %2 = tpu.matmul %0, %1, %cst {dimension_numbers = #tpu.dot_dimension_numbers<[1], [0], [0], [1], [0, 0, 1, 1], [], []>} : vector<256x784xbf16>, vector<784x512xbf16>, vector<256x512xf32> -> vector<256x512xf32>
    %c0_3 = arith.constant 0 : index
    %c0_4 = arith.constant 0 : index
    %3 = vector.load %arg3[%c0_3, %c0_4] : memref<1x512xf32, #tpu.memory_space<vmem>>, vector<1x512xf32>
    %4 = vector.broadcast %3 : vector<1x512xf32> to vector<256x512xf32>
    %5 = arith.addf %2, %4 : vector<256x512xf32>
    %cst_5 = arith.constant 2.000000e-01 : f32
    %6 = vector.broadcast %cst_5 : f32 to vector<256x512xf32>
    %7 = arith.mulf %6, %5 : vector<256x512xf32>
    %8 = arith.maximumf %5, %7 : vector<256x512xf32>
    %9 = arith.truncf %8 : vector<256x512xf32> to vector<256x512xbf16>
    %c0_6 = arith.constant 0 : index
    %c0_7 = arith.constant 0 : index
    %10 = vector.load %arg4[%c0_6, %c0_7] : memref<512x256xbf16, #tpu.memory_space<vmem>>, vector<512x256xbf16>
    %cst_8 = arith.constant dense<0.000000e+00> : vector<256x256xf32>
    %11 = tpu.matmul %9, %10, %cst_8 {dimension_numbers = #tpu.dot_dimension_numbers<[1], [0], [0], [1], [0, 0, 1, 1], [], []>} : vector<256x512xbf16>, vector<512x256xbf16>, vector<256x256xf32> -> vector<256x256xf32>
    %c0_9 = arith.constant 0 : index
    %c0_10 = arith.constant 0 : index
    %12 = vector.load %arg5[%c0_9, %c0_10] : memref<1x256xf32, #tpu.memory_space<vmem>>, vector<1x256xf32>
    %13 = vector.broadcast %12 : vector<1x256xf32> to vector<256x256xf32>
    %14 = arith.addf %11, %13 : vector<256x256xf32>
    %cst_11 = arith.constant 2.000000e-01 : f32
    %15 = vector.broadcast %cst_11 : f32 to vector<256x256xf32>
    %16 = arith.mulf %15, %14 : vector<256x256xf32>
    %17 = arith.maximumf %14, %16 : vector<256x256xf32>
    %18 = arith.truncf %17 : vector<256x256xf32> to vector<256x256xbf16>
    %c0_12 = arith.constant 0 : index
    %c0_13 = arith.constant 0 : index
    %19 = vector.load %arg6[%c0_12, %c0_13] : memref<256x128xbf16, #tpu.memory_space<vmem>>, vector<256x128xbf16>
    %cst_14 = arith.constant dense<0.000000e+00> : vector<256x128xf32>
    %20 = tpu.matmul %18, %19, %cst_14 {dimension_numbers = #tpu.dot_dimension_numbers<[1], [0], [0], [1], [0, 0, 1, 1], [], []>} : vector<256x256xbf16>, vector<256x128xbf16>, vector<256x128xf32> -> vector<256x128xf32>
    %c0_15 = arith.constant 0 : index
    %c0_16 = arith.constant 0 : index
    %21 = vector.load %arg7[%c0_15, %c0_16] : memref<1x128xf32, #tpu.memory_space<vmem>>, vector<1x128xf32>
    %22 = vector.broadcast %21 : vector<1x128xf32> to vector<256x128xf32>
    %23 = arith.addf %20, %22 : vector<256x128xf32>
    %cst_17 = arith.constant 2.000000e-01 : f32
    %24 = vector.broadcast %cst_17 : f32 to vector<256x128xf32>
    %25 = arith.mulf %24, %23 : vector<256x128xf32>
    %26 = arith.maximumf %23, %25 : vector<256x128xf32>
    %c0_18 = arith.constant 0 : index
    %c0_19 = arith.constant 0 : index
    %27 = vector.load %arg8[%c0_18, %c0_19] : memref<1x128xf32, #tpu.memory_space<vmem>>, vector<1x128xf32>
    %28 = vector.broadcast %27 : vector<1x128xf32> to vector<256x128xf32>
    %29 = arith.mulf %26, %28 : vector<256x128xf32>
    %cst_20 = arith.constant dense<0.000000e+00> : vector<256xf32>
    %30 = vector.multi_reduction <add>, %29, %cst_20 [1] : vector<256x128xf32> to vector<256xf32>
    %31 = vector.shape_cast %30 : vector<256xf32> to vector<256x1xf32>
    %c0_21 = arith.constant 0 : index
    %c0_22 = arith.constant 0 : index
    %32 = vector.load %arg9[%c0_21, %c0_22] : memref<1x1xf32, #tpu.memory_space<vmem>>, vector<1x1xf32>
    %33 = vector.broadcast %32 : vector<1x1xf32> to vector<256x1xf32>
    %34 = arith.addf %31, %33 : vector<256x1xf32>
    %c0_23 = arith.constant 0 : index
    %c0_24 = arith.constant 0 : index
    %35 = vector.load %arg10[%c0_23, %c0_24] : memref<256x1xf32, #tpu.memory_space<vmem>>, vector<256x1xf32>
    tpu.vector_store %arg10[%c0_23, %c0_24], %34 {strides = array<i32>} : memref<256x1xf32, #tpu.memory_space<vmem>>, vector<256x1xf32>,
    return
  }
  func.func @transform_0(%arg0: i32) -> (i32, i32) {
    %c0_i32 = arith.constant 0 : i32
    %c0_i32_0 = arith.constant 0 : i32
    return %arg0, %c0_i32 : i32, i32
  }
  func.func @transform_1(%arg0: i32) -> (i32, i32) {
    %c0_i32 = arith.constant 0 : i32
    %c0_i32_0 = arith.constant 0 : i32
    %c0_i32_1 = arith.constant 0 : i32
    return %c0_i32, %c0_i32_0 : i32, i32
  }
  func.func @transform_2(%arg0: i32) -> (i32, i32) {
    %c0_i32 = arith.constant 0 : i32
    %c0_i32_0 = arith.constant 0 : i32
    %c0_i32_1 = arith.constant 0 : i32
    return %c0_i32, %c0_i32_0 : i32, i32
  }
  func.func @transform_3(%arg0: i32) -> (i32, i32) {
    %c0_i32 = arith.constant 0 : i32
    %c0_i32_0 = arith.constant 0 : i32
    %c0_i32_1 = arith.constant 0 : i32
    return %c0_i32, %c0_i32_0 : i32, i32
  }
  func.func @transform_4(%arg0: i32) -> (i32, i32) {
    %c0_i32 = arith.constant 0 : i32
    %c0_i32_0 = arith.constant 0 : i32
    %c0_i32_1 = arith.constant 0 : i32
    return %c0_i32, %c0_i32_0 : i32, i32
  }
  func.func @transform_5(%arg0: i32) -> (i32, i32) {
    %c0_i32 = arith.constant 0 : i32
    %c0_i32_0 = arith.constant 0 : i32
    %c0_i32_1 = arith.constant 0 : i32
    return %c0_i32, %c0_i32_0 : i32, i32
  }
  func.func @transform_6(%arg0: i32) -> (i32, i32) {
    %c0_i32 = arith.constant 0 : i32
    %c0_i32_0 = arith.constant 0 : i32
    %c0_i32_1 = arith.constant 0 : i32
    return %c0_i32, %c0_i32_0 : i32, i32
  }
  func.func @transform_7(%arg0: i32) -> (i32, i32) {
    %c0_i32 = arith.constant 0 : i32
    %c0_i32_0 = arith.constant 0 : i32
    %c0_i32_1 = arith.constant 0 : i32
    return %c0_i32, %c0_i32_0 : i32, i32
  }
  func.func @transform_8(%arg0: i32) -> (i32, i32) {
    %c0_i32 = arith.constant 0 : i32
    %c0_i32_0 = arith.constant 0 : i32
    %c0_i32_1 = arith.constant 0 : i32
    return %c0_i32, %c0_i32_0 : i32, i32
  }
  func.func @transform_9(%arg0: i32) -> (i32, i32) {
    %c0_i32 = arith.constant 0 : i32
    %c0_i32_0 = arith.constant 0 : i32
    return %arg0, %c0_i32 : i32, i32
  }
}

</mosaic_0001>

<bundles_post_ra>
// kernel: discriminator_forward.1
= control target key start
LH: loop header
LB: loop body
LE: loop exit
PB: predicated region body
PF: predicated region fallthrough
CT: control target
= control target key end

     0   :  { %s7544_s11 = smov 0   ;;  %s9477_s0 = inlined_call_operand.vmem [shape: bf16[512,784], index: 0, kind: input, shape index: {}]   ;;  %s9478_s1 = inlined_call_operand.vmem [shape: bf16[784,512], index: 1, kind: input, shape index: {}]   ;;  %s9479_s2 = inlined_call_operand.vmem [shape: f32[1,512], index: 2, kind: input, shape index: {}]   ;;  %s9480_s3 = inlined_call_operand.vmem [shape: bf16[512,256], index: 3, kind: input, shape index: {}]   ;;  %s9481_s4 = inlined_call_operand.vmem [shape: f32[1,256], index: 4, kind: input, shape index: {}]   ;;  %s9482_s5 = inlined_call_operand.vmem [shape: bf16[256,128], index: 5, kind: input, shape index: {}]   ;;  %s9483_s6 = inlined_call_operand.vmem [shape: f32[1,128], index: 6, kind: input, shape index: {}]   ;;  %s9484_s7 = inlined_call_operand.vmem [shape: f32[1,128], index: 7, kind: input, shape index: {}]   ;;  %s9485_s8 = inlined_call_operand.<no memory space> [shape: f32[1,1], index: 8, kind: input, shape index: {}]   ;;  %s9486_s9 = inlined_call_operand.vmem [shape: f32[512,1], index: 9, kind: output, shape index: {}]  }
   0x1   :  { %v14_v0 = vstv %s9485_s8 }
   0x2   :  { %15 = vst [vmem:[#allocation2] sm:$0x1] %v14_v0 }
   0x3 LB: > { %s5674_s12 = sadd.s32 4294967295, %s7488_s11   ;;  %p5678_p0 = scmp.ge.s32.totalorder %s7488_s11, 1  ;;  %s7488_s11 = sphi %s7544_s11, %s21_s11  }
   0x4   : > { %p291_p1 = scmp.lt.s32.totalorder %s7488_s11, 3 }
   0x6   : > { %p292_p2 = pnand %p5678_p0, %p291_p1 }
   0x8   : > { %295 = sbr.rel (%p292_p2) target bundleno = 1466 (0x5ba), region = 56 }
   0xf   : > { %v6902_v1 = vld [vmem:[%s9478_s1 + $0x4] ss:$16 sps:$4 sm:$0xff]   ;;  %v6904_v2 = vld [vmem:[%s9478_s1] ss:$16 sps:$4 sm:$0xff]   ;;  %s5679_s22 = sshll.u32 %s5674_s12, 5  ;;  %vm2228_vm0 = vcmask 130048  }
  0x10   : > { %2277 = vmatprep.subr.bf16.mxu0 %v6902_v1  ;;  %6220 = vmatprep.subr.bf16.mxu1 %v6902_v1  ;;  %v6905_v3 = vld [vmem:[%s9478_s1 + $0x24] ss:$16 sps:$4 sm:$0xff]   ;;  %v6907_v4 = vld [vmem:[%s9478_s1 + $0x20] ss:$16 sps:$4 sm:$0xff]   ;;  %p329_p3 = scmp.lt.s32.totalorder %s5679_s22, 63  ;;  %vm5585_vm1 = vcmask 7168  }
  0x11   : > { %2278 = vmatpush1.bf16.msra.mxu0 %v6904_v2  ;;  %6236 = vmatpush1.bf16.msra.mxu1 %v6904_v2  ;;  %v6908_v5 = vld [vmem:[%s9478_s1 + $0x44] ss:$16 sps:$4 sm:$0xff]   ;;  %v6910_v6 = vld [vmem:[%s9478_s1 + $0x40] ss:$16 sps:$4 sm:$0xff]   ;;  %v6961_v37 = vld [vmem:[%s9478_s1 + $0xc] ss:$16 sps:$4 sm:$0xff]  }
  0x12   : > { %2279 = vmatprep.subr.bf16.mxu0 %v6905_v3  ;;  %6221 = vmatprep.subr.bf16.mxu1 %v6905_v3  ;;  %v6911_v7 = vld [vmem:[%s9478_s1 + $0x64] ss:$16 sps:$4 sm:$0xff]   ;;  %v6913_v8 = vld [vmem:[%s9478_s1 + $0x60] ss:$16 sps:$4 sm:$0xff]   ;;  %s9502_s22 = smov (!%p329_p3, %s5679_s22), 63 }
  0x13   : > { %v6914_v9 = vld [vmem:[%s9478_s1 + $0x84] ss:$16 sps:$4 sm:$0xff]   ;;  %v6916_v10 = vld [vmem:[%s9478_s1 + $0x80] ss:$16 sps:$4 sm:$0xff]   ;;  %s6892_s13 = smul.u32 28, %s9502_s22  ;;  %s5682_s17 = sshll.u32 %s9502_s22, 3 }
  0x14   : > { %v6917_v11 = vld [vmem:[%s9478_s1 + $0xa4] ss:$16 sps:$4 sm:$0xff]   ;;  %v6919_v12 = vld [vmem:[%s9478_s1 + $0xa0] ss:$16 sps:$4 sm:$0xff]   ;;  %v6959_v40 = vld [vmem:[%s9478_s1 + $0x8] ss:$16 sps:$4 sm:$0xff]   ;;  %s9376_s21 = scalar_lea.vmem %s9486_s9, %s5682_s17 }
  0x15   : > { %2280 = vmatpush1.bf16.msra.mxu0 %v6907_v4  ;;  %6237 = vmatpush1.bf16.msra.mxu1 %v6907_v4  ;;  %s7594_s19 = scalar_lea.vmem %s9477_s0, %s6892_s13  ;;  %v6920_v13 = vld [vmem:[%s9478_s1 + $0xc4] ss:$16 sps:$4 sm:$0xff]   ;;  %v6922_v15 = vld [vmem:[%s9478_s1 + $0xc0] ss:$16 sps:$4 sm:$0xff]   ;;  %v6967_v42 = vld [vmem:[%s9478_s1 + $0x2c] ss:$16 sps:$4 sm:$0xff]  }
  0x16   : > { %2281 = vmatprep.subr.bf16.mxu0 %v6908_v5  ;;  %6222 = vmatprep.subr.bf16.mxu1 %v6908_v5  ;;  %v7600_v14 = vld [vmem:[%s7594_s19 + $0x4] ss:$28 sps:$4 sm:$0xff]   ;;  %v7684_v43 = vld [vmem:[%s7594_s19 + $0x3c] ss:$28 sps:$4 sm:$0xff]   ;;  %v7718_v55 = vld [vmem:[%s7594_s19 + $0x74] ss:$28 sps:$4 sm:$0xff]  }
  0x17   : > { %v6955_v16 = vld [vmem:[%s7594_s19 + $0x1c4] ss:$28 sps:$4 sm:$0xff]   ;;  %2309 = vmatprep.mubr.bf16.mxu0 %v7600_v14  ;;  %v6970_v44 = vld [vmem:[%s7594_s19 + $0x1fc] ss:$28 sps:$4 sm:$0xff]   ;;  %v6988_v56 = vld [vmem:[%s7594_s19 + $0x234] ss:$28 sps:$4 sm:$0xff]  }
  0x18   : > { %v6923_v17 = vld [vmem:[%s9478_s1 + $0xe4] ss:$16 sps:$4 sm:$0xff]   ;;  %2389 = vmatprep.mubr.bf16.mxu1 %v6955_v16  ;;  %v6925_v18 = vld [vmem:[%s9478_s1 + $0xe0] ss:$16 sps:$4 sm:$0xff]   ;;  %v6965_v46 = vld [vmem:[%s9478_s1 + $0x28] ss:$16 sps:$4 sm:$0xff]  }
  0x19   : > { %2282 = vmatpush1.bf16.msra.mxu0 %v6910_v6  ;;  %6238 = vmatpush1.bf16.msra.mxu1 %v6910_v6  ;;  %v6926_v19 = vld [vmem:[%s9478_s1 + $0x104] ss:$16 sps:$4 sm:$0xff]   ;;  %v6928_v20 = vld [vmem:[%s9478_s1 + $0x100] ss:$16 sps:$4 sm:$0xff]   ;;  %v6979_v49 = vld [vmem:[%s9478_s1 + $0x4c] ss:$16 sps:$4 sm:$0xff]  }
  0x1a   : > { %2283 = vmatprep.subr.bf16.mxu0 %v6911_v7  ;;  %6223 = vmatprep.subr.bf16.mxu1 %v6911_v7  ;;  %v6929_v21 = vld [vmem:[%s9478_s1 + $0x124] ss:$16 sps:$4 sm:$0xff]   ;;  %v6931_v22 = vld [vmem:[%s9478_s1 + $0x120] ss:$16 sps:$4 sm:$0xff]   ;;  %v6977_v52 = vld [vmem:[%s9478_s1 + $0x48] ss:$16 sps:$4 sm:$0xff]  }
  0x1b   : > { %v6932_v23 = vld [vmem:[%s9478_s1 + $0x144] ss:$16 sps:$4 sm:$0xff]   ;;  %v6934_v24 = vld [vmem:[%s9478_s1 + $0x140] ss:$16 sps:$4 sm:$0xff]   ;;  %v6985_v54 = vld [vmem:[%s9478_s1 + $0x6c] ss:$16 sps:$4 sm:$0xff]  }
  0x1c   : > { %v6935_v25 = vld [vmem:[%s9478_s1 + $0x164] ss:$16 sps:$4 sm:$0xff]   ;;  %v6937_v26 = vld [vmem:[%s9478_s1 + $0x160] ss:$16 sps:$4 sm:$0xff]   ;;  %v6983_v58 = vld [vmem:[%s9478_s1 + $0x68] ss:$16 sps:$4 sm:$0xff]  }
  0x1d   : > { %2284 = vmatpush1.bf16.msra.mxu0 %v6913_v8  ;;  %6239 = vmatpush1.bf16.msra.mxu1 %v6913_v8  ;;  %v6938_v27 = vld [vmem:[%s9478_s1 + $0x184] ss:$16 sps:$4 sm:$0xff]   ;;  %v6940_v28 = vld [vmem:[%s9478_s1 + $0x180] ss:$16 sps:$4 sm:$0xff]   ;;  %v6997_v61 = vld [vmem:[%s9478_s1 + $0x8c] ss:$16 sps:$4 sm:$0xff]  }
  0x1e   : > { %2285 = vmatprep.subr.bf16.mxu0 %v6914_v9  ;;  %6224 = vmatprep.subr.bf16.mxu1 %v6914_v9  ;;  %v6941_v29 = vld [vmem:[%s9478_s1 + $0x1a4] ss:$16 sps:$4 sm:$0xff]   ;;  %v6943_v30 = vld [vmem:[%s9478_s1 + $0x1a0] ss:$16 sps:$4 sm:$0xff]   ;;  %v6995_v0 = vld [vmem:[%s9478_s1 + $0x88] ss:$16 sps:$4 sm:$0xff]  }
  0x1f   : > { %v6944_v31 = vld [vmem:[%s9478_s1 + $0x1c4] ss:$16 sps:$4 sm:$0xff]   ;;  %v6946_v32 = vld [vmem:[%s9478_s1 + $0x1c0] ss:$16 sps:$4 sm:$0xff]   ;;  %v7003_v2 = vld [vmem:[%s9478_s1 + $0xac] ss:$16 sps:$4 sm:$0xff]  }
  0x20   : > { %v6947_v33 = vld [vmem:[%s9478_s1 + $0x1e4] ss:$16 sps:$4 sm:$0xff]   ;;  %v6949_v34 = vld [vmem:[%s9478_s1 + $0x1e0] ss:$16 sps:$4 sm:$0xff]   ;;  %v7752_v3 = vld [vmem:[%s7594_s19 + $0xac] ss:$28 sps:$4 sm:$0xff]  }
  0x21   : > { %2286 = vmatpush1.bf16.msra.mxu0 %v6916_v10  ;;  %6240 = vmatpush1.bf16.msra.mxu1 %v6916_v10  ;;  %v6958_v35 = vld [vmem:[%s9478_s1 + $0x204] ss:$16 sps:$4 sm:$0xff]   ;;  %v7665_v36 = vld [vmem:[%s7594_s19] ss:$28 sps:$4 sm:$0xff]   ;;  %v7732_v60 = vld [vmem:[%s7594_s19 + $0x70] ss:$28 sps:$4 sm:$0xff]  }
  0x22   : > { %2287 = vmatprep.subr.bf16.mxu0 %v6917_v11  ;;  %6225 = vmatprep.subr.bf16.mxu1 %v6917_v11  ;;  %v6953_v38 = vld [vmem:[%s7594_s19 + $0x1c0] ss:$28 sps:$4 sm:$0xff]   ;;  %v6964_v41 = vld [vmem:[%s9478_s1 + $0x224] ss:$16 sps:$4 sm:$0xff]   ;;  %v6991_v62 = vld [vmem:[%s7594_s19 + $0x230] ss:$28 sps:$4 sm:$0xff]  }
  0x23   : > { %v6956_v39 = vld [vmem:[%s9478_s1 + $0x200] ss:$16 sps:$4 sm:$0xff]   ;;  %v6976_v47 = vld [vmem:[%s9478_s1 + $0x244] ss:$16 sps:$4 sm:$0xff]   ;;  %v7006_v4 = vld [vmem:[%s7594_s19 + $0x26c] ss:$28 sps:$4 sm:$0xff]  }
  0x24   : > { %v6962_v45 = vld [vmem:[%s9478_s1 + $0x220] ss:$16 sps:$4 sm:$0xff]   ;;  %v7698_v48 = vld [vmem:[%s7594_s19 + $0x38] ss:$28 sps:$4 sm:$0xff]   ;;  %v7766_v8 = vld [vmem:[%s7594_s19 + $0xa8] ss:$28 sps:$4 sm:$0xff]  }
  0x25   : > { %2288 = vmatpush1.bf16.msra.mxu0 %v6919_v12  ;;  %6241 = vmatpush1.bf16.msra.mxu1 %v6919_v12  ;;  %v6973_v50 = vld [vmem:[%s7594_s19 + $0x1f8] ss:$28 sps:$4 sm:$0xff]   ;;  %v6974_v51 = vld [vmem:[%s9478_s1 + $0x240] ss:$16 sps:$4 sm:$0xff]   ;;  %v7015_v9 = vld [vmem:[%s9478_s1 + $0xcc] ss:$16 sps:$4 sm:$0xff]  }
  0x26   : > { %2289 = vmatprep.subr.bf16.mxu0 %v6920_v13  ;;  %6226 = vmatprep.subr.bf16.mxu1 %v6920_v13  ;;  %v6982_v53 = vld [vmem:[%s9478_s1 + $0x264] ss:$16 sps:$4 sm:$0xff]   ;;  %v6980_v57 = vld [vmem:[%s9478_s1 + $0x260] ss:$16 sps:$4 sm:$0xff]   ;;  %v7001_v6 = vld [vmem:[%s9478_s1 + $0xa8] ss:$16 sps:$4 sm:$0xff]  }
  0x27   : > { %v6994_v59 = vld [vmem:[%s9478_s1 + $0x284] ss:$16 sps:$4 sm:$0xff]   ;;  %v6992_v63 = vld [vmem:[%s9478_s1 + $0x280] ss:$16 sps:$4 sm:$0xff]   ;;  %v7013_v12 = vld [vmem:[%s9478_s1 + $0xc8] ss:$16 sps:$4 sm:$0xff]  }
  0x28   : > { %v7000_v1 = vld [vmem:[%s9478_s1 + $0x2a4] ss:$16 sps:$4 sm:$0xff]   ;;  %v6998_v5 = vld [vmem:[%s9478_s1 + $0x2a0] ss:$16 sps:$4 sm:$0xff]  }
  0x29   : > { %2290 = vmatpush1.bf16.msra.mxu0 %v6922_v15  ;;  %6242 = vmatpush1.bf16.msra.mxu1 %v6922_v15  ;;  %v7012_v7 = vld [vmem:[%s9478_s1 + $0x2c4] ss:$16 sps:$4 sm:$0xff]   ;;  %v7010_v11 = vld [vmem:[%s9478_s1 + $0x2c0] ss:$16 sps:$4 sm:$0xff]   ;;  %v7021_v15 = vld [vmem:[%s9478_s1 + $0xec] ss:$16 sps:$4 sm:$0xff]  }
  0x2a   : > { %2291 = vmatprep.subr.bf16.mxu0 %v6923_v17  ;;  %6227 = vmatprep.subr.bf16.mxu1 %v6923_v17  ;;  %v7009_v10 = vld [vmem:[%s7594_s19 + $0x268] ss:$28 sps:$4 sm:$0xff]  }
  0x2b   : > { %v7018_v13 = vld [vmem:[%s9478_s1 + $0x2e4] ss:$16 sps:$4 sm:$0xff]  }
  0x2c   : > { %v7786_v16 = vld [vmem:[%s7594_s19 + $0xe4] ss:$28 sps:$4 sm:$0xff]  }
  0x2d   : > { %2292 = vmatpush1.bf16.msra.mxu0 %v6925_v18  ;;  %6243 = vmatpush1.bf16.msra.mxu1 %v6925_v18  ;;  %v7024_v17 = vld [vmem:[%s7594_s19 + $0x2a4] ss:$28 sps:$4 sm:$0xff]  }
  0x2e   : > { %2293 = vmatprep.subr.bf16.mxu0 %v6926_v19  ;;  %6228 = vmatprep.subr.bf16.mxu1 %v6926_v19  ;;  %v7016_v18 = vld [vmem:[%s9478_s1 + $0x2e0] ss:$16 sps:$4 sm:$0xff]   ;;  %v7019_v19 = vld [vmem:[%s9478_s1 + $0xe8] ss:$16 sps:$4 sm:$0xff]  }
  0x31   : > { %2294 = vmatpush1.bf16.msra.mxu0 %v6928_v20  ;;  %6244 = vmatpush1.bf16.msra.mxu1 %v6928_v20  ;;  %v7030_v20 = vld [vmem:[%s9478_s1 + $0x304] ss:$16 sps:$4 sm:$0xff]  }
  0x32   : > { %2295 = vmatprep.subr.bf16.mxu0 %v6929_v21  ;;  %6229 = vmatprep.subr.bf16.mxu1 %v6929_v21  ;;  %v7800_v21 = vld [vmem:[%s7594_s19 + $0xe0] ss:$28 sps:$4 sm:$0xff]  }
  0x35   : > { %2296 = vmatpush1.bf16.msra.mxu0 %v6931_v22  ;;  %6245 = vmatpush1.bf16.msra.mxu1 %v6931_v22  ;;  %v7033_v22 = vld [vmem:[%s9478_s1 + $0x10c] ss:$16 sps:$4 sm:$0xff]  }
  0x36   : > { %2297 = vmatprep.subr.bf16.mxu0 %v6932_v23  ;;  %6230 = vmatprep.subr.bf16.mxu1 %v6932_v23  ;;  %v7027_v23 = vld [vmem:[%s7594_s19 + $0x2a0] ss:$28 sps:$4 sm:$0xff]  }
  0x39   : > { %2298 = vmatpush1.bf16.msra.mxu0 %v6934_v24  ;;  %6246 = vmatpush1.bf16.msra.mxu1 %v6934_v24  ;;  %v7028_v24 = vld [vmem:[%s9478_s1 + $0x300] ss:$16 sps:$4 sm:$0xff]  }
  0x3a   : > { %2299 = vmatprep.subr.bf16.mxu0 %v6935_v25  ;;  %6231 = vmatprep.subr.bf16.mxu1 %v6935_v25  ;;  %v7031_v25 = vld [vmem:[%s9478_s1 + $0x108] ss:$16 sps:$4 sm:$0xff]  }
  0x3d   : > { %2300 = vmatpush1.bf16.msra.mxu0 %v6937_v26  ;;  %6247 = vmatpush1.bf16.msra.mxu1 %v6937_v26  ;;  %v7036_v26 = vld [vmem:[%s9478_s1 + $0x324] ss:$16 sps:$4 sm:$0xff]  }
  0x3e   : > { %2301 = vmatprep.subr.bf16.mxu0 %v6938_v27  ;;  %6232 = vmatprep.subr.bf16.mxu1 %v6938_v27  ;;  %v7039_v27 = vld [vmem:[%s9478_s1 + $0x12c] ss:$16 sps:$4 sm:$0xff]  }
  0x41   : > { %2302 = vmatpush1.bf16.msra.mxu0 %v6940_v28  ;;  %6248 = vmatpush1.bf16.msra.mxu1 %v6940_v28  ;;  %v7820_v28 = vld [vmem:[%s7594_s19 + $0x11c] ss:$28 sps:$4 sm:$0xff]  }
  0x42   : > { %2303 = vmatprep.subr.bf16.mxu0 %v6941_v29  ;;  %6233 = vmatprep.subr.bf16.mxu1 %v6941_v29  ;;  %v7042_v29 = vld [vmem:[%s7594_s19 + $0x2dc] ss:$28 sps:$4 sm:$0xff]  }
  0x45   : > { %2304 = vmatpush1.bf16.msra.mxu0 %v6943_v30  ;;  %6249 = vmatpush1.bf16.msra.mxu1 %v6943_v30  ;;  %v7034_v30 = vld [vmem:[%s9478_s1 + $0x320] ss:$16 sps:$4 sm:$0xff]  }
  0x46   : > { %2305 = vmatprep.subr.bf16.mxu0 %v6944_v31  ;;  %6234 = vmatprep.subr.bf16.mxu1 %v6944_v31  ;;  %v7037_v31 = vld [vmem:[%s9478_s1 + $0x128] ss:$16 sps:$4 sm:$0xff]  }
  0x49   : > { %2306 = vmatpush1.bf16.msra.mxu0 %v6946_v32  ;;  %6250 = vmatpush1.bf16.msra.mxu1 %v6946_v32  ;;  %v7048_v32 = vld [vmem:[%s9478_s1 + $0x344] ss:$16 sps:$4 sm:$0xff]  }
  0x4a   : > { %2307 = vmatprep.subr.bf16.mxu0 %v6947_v33  ;;  %6235 = vmatprep.subr.bf16.mxu1 %v6947_v33  ;;  %v7834_v33 = vld [vmem:[%s7594_s19 + $0x118] ss:$28 sps:$4 sm:$0xff]  }
  0x4d   : > { %2308 = vmatpush1.bf16.msra.mxu0 %v6949_v34  ;;  %6251 = vmatpush1.bf16.msra.mxu1 %v6949_v34  ;;  %v7051_v34 = vld [vmem:[%s9478_s1 + $0x14c] ss:$16 sps:$4 sm:$0xff]  }
  0x4e   : > { %2470 = vmatprep.subr.bf16.mxu0 %v6958_v35  ;;  %3049 = vmatprep.subr.bf16.mxu1 %v6961_v37  ;;  %v7045_v35 = vld [vmem:[%s7594_s19 + $0x2d8] ss:$28 sps:$4 sm:$0xff]   ;;  %v7046_v37 = vld [vmem:[%s9478_s1 + $0x340] ss:$16 sps:$4 sm:$0xff]  }
  0x50   : > { %2310 = vmatmul.mubr.bf16.vlgmr.msra.gmra.mrb[0].mxu0 %v7665_v36  ;;  %2390 = vmatmul.mubr.bf16.vlgmr.msra.gmra.mrb[0].mxu1 %v6953_v38  ;;  %v7049_v38 = vld [vmem:[%s9478_s1 + $0x148] ss:$16 sps:$4 sm:$0xff]  }
  0x51   : > { %2471 = vmatpush1.bf16.msra.mxu0 %v6956_v39  ;;  %3050 = vmatpush1.bf16.msra.mxu1 %v6959_v40  ;;  %v7054_v39 = vld [vmem:[%s9478_s1 + $0x364] ss:$16 sps:$4 sm:$0xff]   ;;  %v7057_v40 = vld [vmem:[%s9478_s1 + $0x16c] ss:$16 sps:$4 sm:$0xff]  }
  0x52   : > { %2472 = vmatprep.subr.bf16.mxu0 %v6964_v41  ;;  %3051 = vmatprep.subr.bf16.mxu1 %v6967_v42  ;;  %v7854_v41 = vld [vmem:[%s7594_s19 + $0x154] ss:$28 sps:$4 sm:$0xff]  }
  0x53   : > { %2319 = vmatprep.mubr.bf16.mxu0 %v7684_v43  ;;  %2399 = vmatprep.mubr.bf16.mxu1 %v6970_v44  ;;  %v7060_v42 = vld [vmem:[%s7594_s19 + $0x314] ss:$28 sps:$4 sm:$0xff]  }
  0x54   : > { %v7052_v44 = vld [vmem:[%s9478_s1 + $0x360] ss:$16 sps:$4 sm:$0xff]  }
  0x55   : > { %2473 = vmatpush1.bf16.msra.mxu0 %v6962_v45  ;;  %3052 = vmatpush1.bf16.msra.mxu1 %v6965_v46  ;;  %v7055_v45 = vld [vmem:[%s9478_s1 + $0x168] ss:$16 sps:$4 sm:$0xff]   ;;  %v7066_v46 = vld [vmem:[%s9478_s1 + $0x384] ss:$16 sps:$4 sm:$0xff]  }
  0x56   : > { %2474 = vmatprep.subr.bf16.mxu0 %v6976_v47  ;;  %3053 = vmatprep.subr.bf16.mxu1 %v6979_v49  ;;  %v7868_v47 = vld [vmem:[%s7594_s19 + $0x150] ss:$28 sps:$4 sm:$0xff]  }
  0x57   : > { %v7069_v49 = vld [vmem:[%s9478_s1 + $0x18c] ss:$16 sps:$4 sm:$0xff]  }
  0x58   : > { %2320 = vmatmul.mubr.bf16.gmra.mrb[4].mxu0 %v7698_v48  ;;  %2400 = vmatmul.mubr.bf16.gmra.mrb[4].mxu1 %v6973_v50  ;;  %v7063_v50 = vld [vmem:[%s7594_s19 + $0x310] ss:$28 sps:$4 sm:$0xff]  }
  0x59   : > { %2475 = vmatpush1.bf16.msra.mxu0 %v6974_v51  ;;  %3054 = vmatpush1.bf16.msra.mxu1 %v6977_v52  ;;  %v7064_v51 = vld [vmem:[%s9478_s1 + $0x380] ss:$16 sps:$4 sm:$0xff]   ;;  %v7067_v52 = vld [vmem:[%s9478_s1 + $0x188] ss:$16 sps:$4 sm:$0xff]  }
  0x5a   : > { %2476 = vmatprep.subr.bf16.mxu0 %v6982_v53  ;;  %3055 = vmatprep.subr.bf16.mxu1 %v6985_v54  ;;  %v7072_v53 = vld [vmem:[%s9478_s1 + $0x3a4] ss:$16 sps:$4 sm:$0xff]   ;;  %v7075_v54 = vld [vmem:[%s9478_s1 + $0x1ac] ss:$16 sps:$4 sm:$0xff]  }
  0x5b   : > { %2329 = vmatprep.mubr.bf16.mxu0 %v7718_v55  ;;  %2409 = vmatprep.mubr.bf16.mxu1 %v6988_v56  ;;  %v7888_v56 = vld [vmem:[%s7594_s19 + $0x18c] ss:$28 sps:$4 sm:$0xff]  }
  0x5d   : > { %2477 = vmatpush1.bf16.msra.mxu0 %v6980_v57  ;;  %3056 = vmatpush1.bf16.msra.mxu1 %v6983_v58  ;;  %v7891_v57 = vld [vmem:[%s7594_s19 + $0x34c] ss:$28 sps:$4 sm:$0xff]   ;;  %v7070_v58 = vld [vmem:[%s9478_s1 + $0x3a0] ss:$16 sps:$4 sm:$0xff]  }
  0x5e   : > { %2478 = vmatprep.subr.bf16.mxu0 %v6994_v59  ;;  %3057 = vmatprep.subr.bf16.mxu1 %v6997_v61  ;;  %v7073_v59 = vld [vmem:[%s9478_s1 + $0x1a8] ss:$16 sps:$4 sm:$0xff]   ;;  %v7084_v61 = vld [vmem:[%s9478_s1 + $0x3c4] ss:$16 sps:$4 sm:$0xff]  }
  0x60   : > { %2330 = vmatmul.mubr.bf16.gmra.mrb[8].mxu0 %v7732_v60  ;;  %2410 = vmatmul.mubr.bf16.gmra.mrb[8].mxu1 %v6991_v62  ;;  %v7087_v62 = vld [vmem:[%s9478_s1 + $0x1cc] ss:$16 sps:$4 sm:$0xff]  }
  0x61   : > { %2479 = vmatpush1.bf16.msra.mxu0 %v6992_v63  ;;  %3058 = vmatpush1.bf16.msra.mxu1 %v6995_v0  ;;  %v7909_v63 = vld [vmem:[%s7594_s19 + $0x188] ss:$28 sps:$4 sm:$0xff]  }
  0x62   : > { %2480 = vmatprep.subr.bf16.mxu0 %v7000_v1  ;;  %3059 = vmatprep.subr.bf16.mxu1 %v7003_v2  ;;  %v7912_v0 = vld [vmem:[%s7594_s19 + $0x348] ss:$28 sps:$4 sm:$0xff]   ;;  %v7082_v1 = vld [vmem:[%s9478_s1 + $0x3c0] ss:$16 sps:$4 sm:$0xff]  }
  0x63   : > { %2339 = vmatprep.mubr.bf16.mxu0 %v7752_v3  ;;  %2419 = vmatprep.mubr.bf16.mxu1 %v7006_v4  ;;  %v7085_v2 = vld [vmem:[%s9478_s1 + $0x1c8] ss:$16 sps:$4 sm:$0xff]   ;;  %v7090_v4 = vld [vmem:[%s9478_s1 + $0x3e4] ss:$16 sps:$4 sm:$0xff]  }
  0x65   : > { %2481 = vmatpush1.bf16.msra.mxu0 %v6998_v5  ;;  %3060 = vmatpush1.bf16.msra.mxu1 %v7001_v6  ;;  %v7093_v5 = vld [vmem:[%s9478_s1 + $0x1ec] ss:$16 sps:$4 sm:$0xff]  }
  0x66   : > { %2482 = vmatprep.subr.bf16.mxu0 %v7012_v7  ;;  %3061 = vmatprep.subr.bf16.mxu1 %v7015_v9  ;;  %v7927_v6 = vld [vmem:[%s7594_s19 + $0xc] ss:$28 sps:$4 sm:$0xff]   ;;  %v7088_v7 = vld [vmem:[%s9478_s1 + $0x3e0] ss:$16 sps:$4 sm:$0xff]  }
  0x67   : > { %v7091_v9 = vld [vmem:[%s9478_s1 + $0x1e8] ss:$16 sps:$4 sm:$0xff]  }
  0x68   : > { %2340 = vmatmul.mubr.bf16.gmra.mrb[12].mxu0 %v7766_v8  ;;  %2420 = vmatmul.mubr.bf16.gmra.mrb[12].mxu1 %v7009_v10  ;;  %v7099_v10 = vld [vmem:[%s9478_s1 + $0x404] ss:$16 sps:$4 sm:$0xff]  }
  0x69   : > { %2483 = vmatpush1.bf16.msra.mxu0 %v7010_v11  ;;  %3062 = vmatpush1.bf16.msra.mxu1 %v7013_v12  ;;  %v7102_v11 = vld [vmem:[%s9478_s1 + $0x20c] ss:$16 sps:$4 sm:$0xff]   ;;  %v7946_v12 = vld [vmem:[%s7594_s19 + $0x8] ss:$28 sps:$4 sm:$0xff]  }
  0x6a   : > { %2484 = vmatprep.subr.bf16.mxu0 %v7018_v13  ;;  %3063 = vmatprep.subr.bf16.mxu1 %v7021_v15  ;;  %v7097_v13 = vld [vmem:[%s9478_s1 + $0x400] ss:$16 sps:$4 sm:$0xff]   ;;  %v7100_v15 = vld [vmem:[%s9478_s1 + $0x208] ss:$16 sps:$4 sm:$0xff]  }
  0x6b   : > { %2349 = vmatprep.mubr.bf16.mxu0 %v7786_v16  ;;  %2429 = vmatprep.mubr.bf16.mxu1 %v7024_v17  ;;  %v7955_v17 = vld [vmem:[%s7594_s19 + $0x44] ss:$28 sps:$4 sm:$0xff]  }
  0x6d   : > { %2485 = vmatpush1.bf16.msra.mxu0 %v7016_v18  ;;  %3064 = vmatpush1.bf16.msra.mxu1 %v7019_v19  ;;  %v7111_v18 = vld [vmem:[%s9478_s1 + $0x22c] ss:$16 sps:$4 sm:$0xff]   ;;  %v7106_v19 = vld [vmem:[%s9478_s1 + $0x420] ss:$16 sps:$4 sm:$0xff]  }
  0x6e   : > { %2486 = vmatprep.subr.bf16.mxu0 %v7030_v20  ;;  %3065 = vmatprep.subr.bf16.mxu1 %v7033_v22  ;;  %v7109_v20 = vld [vmem:[%s9478_s1 + $0x228] ss:$16 sps:$4 sm:$0xff]   ;;  %v7117_v22 = vld [vmem:[%s9478_s1 + $0x444] ss:$16 sps:$4 sm:$0xff]  }
  0x70   : > { %2350 = vmatmul.mubr.bf16.gmra.mrb[16].mxu0 %v7800_v21  ;;  %2430 = vmatmul.mubr.bf16.gmra.mrb[16].mxu1 %v7027_v23  ;;  %v7980_v23 = vld [vmem:[%s7594_s19 + $0x40] ss:$28 sps:$4 sm:$0xff]  }
  0x71   : > { %2487 = vmatpush1.bf16.msra.mxu0 %v7028_v24  ;;  %3066 = vmatpush1.bf16.msra.mxu1 %v7031_v25  ;;  %v7983_v24 = vld [vmem:[%s7594_s19 + $0x7c] ss:$28 sps:$4 sm:$0xff]   ;;  %v7115_v25 = vld [vmem:[%s9478_s1 + $0x440] ss:$16 sps:$4 sm:$0xff]  }
  0x72   : > { %2488 = vmatprep.subr.bf16.mxu0 %v7036_v26  ;;  %3067 = vmatprep.subr.bf16.mxu1 %v7039_v27  ;;  %v7126_v26 = vld [vmem:[%s9478_s1 + $0x464] ss:$16 sps:$4 sm:$0xff]   ;;  %v7129_v27 = vld [vmem:[%s9478_s1 + $0x26c] ss:$16 sps:$4 sm:$0xff]  }
  0x73   : > { %2359 = vmatprep.mubr.bf16.mxu0 %v7820_v28  ;;  %2439 = vmatprep.mubr.bf16.mxu1 %v7042_v29  ;;  %v7124_v29 = vld [vmem:[%s9478_s1 + $0x460] ss:$16 sps:$4 sm:$0xff]  }
  0x75   : > { %2489 = vmatpush1.bf16.msra.mxu0 %v7034_v30  ;;  %3068 = vmatpush1.bf16.msra.mxu1 %v7037_v31  ;;  %v7127_v30 = vld [vmem:[%s9478_s1 + $0x268] ss:$16 sps:$4 sm:$0xff]   ;;  %v7135_v31 = vld [vmem:[%s9478_s1 + $0x484] ss:$16 sps:$4 sm:$0xff]  }
  0x76   : > { %2490 = vmatprep.subr.bf16.mxu0 %v7048_v32  ;;  %3069 = vmatprep.subr.bf16.mxu1 %v7051_v34  ;;  %v8017_v32 = vld [vmem:[%s7594_s19 + $0xb4] ss:$28 sps:$4 sm:$0xff]  }
  0x77   : > { %v7133_v34 = vld [vmem:[%s9478_s1 + $0x480] ss:$16 sps:$4 sm:$0xff]  }
  0x78   : > { %2360 = vmatmul.mubr.bf16.gmra.mrb[20].mxu0 %v7834_v33  ;;  %2440 = vmatmul.mubr.bf16.gmra.mrb[20].mxu1 %v7045_v35  ;;  %v7136_v35 = vld [vmem:[%s9478_s1 + $0x288] ss:$16 sps:$4 sm:$0xff]  }
  0x79   : > { %2491 = vmatpush1.bf16.msra.mxu0 %v7046_v37  ;;  %3070 = vmatpush1.bf16.msra.mxu1 %v7049_v38  ;;  %v7144_v37 = vld [vmem:[%s9478_s1 + $0x4a4] ss:$16 sps:$4 sm:$0xff]   ;;  %v7147_v38 = vld [vmem:[%s9478_s1 + $0x2ac] ss:$16 sps:$4 sm:$0xff]  }
  0x7a   : > { %2492 = vmatprep.subr.bf16.mxu0 %v7054_v39  ;;  %3071 = vmatprep.subr.bf16.mxu1 %v7057_v40  ;;  %v7142_v39 = vld [vmem:[%s9478_s1 + $0x4a0] ss:$16 sps:$4 sm:$0xff]   ;;  %v7145_v40 = vld [vmem:[%s9478_s1 + $0x2a8] ss:$16 sps:$4 sm:$0xff]  }
  0x7b   : > { %2369 = vmatprep.mubr.bf16.mxu0 %v7854_v41  ;;  %2449 = vmatprep.mubr.bf16.mxu1 %v7060_v42  ;;  %v7153_v42 = vld [vmem:[%s9478_s1 + $0x4c4] ss:$16 sps:$4 sm:$0xff]  }
  0x7d   : > { %2493 = vmatpush1.bf16.msra.mxu0 %v7052_v44  ;;  %3072 = vmatpush1.bf16.msra.mxu1 %v7055_v45  ;;  %v8051_v44 = vld [vmem:[%s7594_s19 + $0xec] ss:$28 sps:$4 sm:$0xff]   ;;  %v7151_v45 = vld [vmem:[%s9478_s1 + $0x4c0] ss:$16 sps:$4 sm:$0xff]  }
  0x7e   : > { %2494 = vmatprep.subr.bf16.mxu0 %v7066_v46  ;;  %3073 = vmatprep.subr.bf16.mxu1 %v7069_v49  ;;  %v7154_v46 = vld [vmem:[%s9478_s1 + $0x2c8] ss:$16 sps:$4 sm:$0xff]   ;;  %v7162_v49 = vld [vmem:[%s9478_s1 + $0x4e4] ss:$16 sps:$4 sm:$0xff]  }
  0x80   : > { %2370 = vmatmul.mubr.bf16.gmra.mrb[24].mxu0 %v7868_v47  ;;  %2450 = vmatmul.mubr.bf16.gmra.mrb[24].mxu1 %v7063_v50  ;;  %v7165_v50 = vld [vmem:[%s9478_s1 + $0x2ec] ss:$16 sps:$4 sm:$0xff]  }
  0x81   : > { %2495 = vmatpush1.bf16.msra.mxu0 %v7064_v51  ;;  %3074 = vmatpush1.bf16.msra.mxu1 %v7067_v52  ;;  %v7160_v51 = vld [vmem:[%s9478_s1 + $0x4e0] ss:$16 sps:$4 sm:$0xff]   ;;  %v7163_v52 = vld [vmem:[%s9478_s1 + $0x2e8] ss:$16 sps:$4 sm:$0xff]  }
  0x82   : > { %2496 = vmatprep.subr.bf16.mxu0 %v7072_v53  ;;  %3075 = vmatprep.subr.bf16.mxu1 %v7075_v54  ;;  %v7171_v53 = vld [vmem:[%s9478_s1 + $0x504] ss:$16 sps:$4 sm:$0xff]  }
  0x83   : > { %2379 = vmatprep.mubr.bf16.mxu0 %v7888_v56  ;;  %2459 = vmatprep.mubr.bf16.mxu1 %v7891_v57  ;;  %v8085_v54 = vld [vmem:[%s7594_s19 + $0x124] ss:$28 sps:$4 sm:$0xff]  }
  0x85   : > { %2497 = vmatpush1.bf16.msra.mxu0 %v7070_v58  ;;  %3076 = vmatpush1.bf16.msra.mxu1 %v7073_v59  ;;  %v7169_v58 = vld [vmem:[%s9478_s1 + $0x500] ss:$16 sps:$4 sm:$0xff]   ;;  %v7172_v59 = vld [vmem:[%s9478_s1 + $0x308] ss:$16 sps:$4 sm:$0xff]  }
  0x86   : > { %2498 = vmatprep.subr.bf16.mxu0 %v7084_v61  ;;  %3077 = vmatprep.subr.bf16.mxu1 %v7087_v62  ;;  %v7180_v61 = vld [vmem:[%s9478_s1 + $0x524] ss:$16 sps:$4 sm:$0xff]   ;;  %v7183_v62 = vld [vmem:[%s9478_s1 + $0x32c] ss:$16 sps:$4 sm:$0xff]  }
  0x88   : > { %2380 = vmatmul.mubr.bf16.gmra.mrb[28].mxu0 %v7909_v63  ;;  %2460 = vmatmul.mubr.bf16.gmra.mrb[28].mxu1 %v7912_v0 }
  0x89   : > { %2499 = vmatpush1.bf16.msra.mxu0 %v7082_v1  ;;  %3078 = vmatpush1.bf16.msra.mxu1 %v7085_v2  ;;  %v7178_v1 = vld [vmem:[%s9478_s1 + $0x520] ss:$16 sps:$4 sm:$0xff]   ;;  %v7181_v2 = vld [vmem:[%s9478_s1 + $0x328] ss:$16 sps:$4 sm:$0xff]  }
  0x8a   : > { %2500 = vmatprep.subr.bf16.mxu0 %v7090_v4  ;;  %3079 = vmatprep.subr.bf16.mxu1 %v7093_v5  ;;  %v7189_v4 = vld [vmem:[%s9478_s1 + $0x544] ss:$16 sps:$4 sm:$0xff]   ;;  %v8113_v5 = vld [vmem:[%s7594_s19 + $0x120] ss:$28 sps:$4 sm:$0xff]  }
  0x8b   : > { %2502 = vmatprep.mubr.bf16.mxu0 %v7927_v6  ;;  %3081 = vmatprep.mubr.bf16.mxu1 %v7600_v14  ;;  %v7108_v14 = vld [vmem:[%s9478_s1 + $0x424] ss:$16 sps:$4 sm:$0xff]  }
  0x8d   : > { %2501 = vmatpush1.bf16.msra.mxu0 %v7088_v7  ;;  %3080 = vmatpush1.bf16.msra.mxu1 %v7091_v9  ;;  %v8119_v7 = vld [vmem:[%s7594_s19 + $0x15c] ss:$28 sps:$4 sm:$0xff]  }
  0x8e   : > { %2663 = vmatprep.subr.bf16.mxu0 %v7099_v10  ;;  %3242 = vmatprep.subr.bf16.mxu1 %v7102_v11  ;;  %v7190_v9 = vld [vmem:[%s9478_s1 + $0x348] ss:$16 sps:$4 sm:$0xff]   ;;  %v7198_v10 = vld [vmem:[%s9478_s1 + $0x564] ss:$16 sps:$4 sm:$0xff]   ;;  %v7201_v11 = vld [vmem:[%s9478_s1 + $0x36c] ss:$16 sps:$4 sm:$0xff]  }
  0x90   : > { %2503 = vmatmul.mubr.bf16.vlgmr.msra.gmra.mrb[0].mxu0 %v7946_v12  ;;  %3082 = vmatmul.mubr.bf16.vlgmr.msra.gmra.mrb[32].mxu1 %v7665_v36  ;;  %v7120_v36 = vld [vmem:[%s9478_s1 + $0x24c] ss:$16 sps:$4 sm:$0xff]  }
  0x91   : > { %2664 = vmatpush1.bf16.msra.mxu0 %v7097_v13  ;;  %3243 = vmatpush1.bf16.msra.mxu1 %v7100_v15  ;;  %v7196_v13 = vld [vmem:[%s9478_s1 + $0x560] ss:$16 sps:$4 sm:$0xff]   ;;  %v7199_v15 = vld [vmem:[%s9478_s1 + $0x368] ss:$16 sps:$4 sm:$0xff]  }
  0x92   : > { %2512 = vmatprep.mubr.bf16.mxu0 %v7955_v17  ;;  %3091 = vmatprep.mubr.bf16.mxu1 %v7684_v43  ;;  %v7118_v43 = vld [vmem:[%s9478_s1 + $0x248] ss:$16 sps:$4 sm:$0xff]  }
  0x93   : > { %2665 = vmatprep.subr.bf16.mxu0 %v7108_v14  ;;  %3244 = vmatprep.subr.bf16.mxu1 %v7111_v18  ;;  %v7207_v14 = vld [vmem:[%s9478_s1 + $0x584] ss:$16 sps:$4 sm:$0xff]  }
  0x94   : > { %v8150_v18 = vld [vmem:[%s7594_s19 + $0x158] ss:$28 sps:$4 sm:$0xff]  }
  0x95   : > { %2666 = vmatpush1.bf16.msra.mxu0 %v7106_v19  ;;  %3245 = vmatpush1.bf16.msra.mxu1 %v7109_v20  ;;  %v8153_v19 = vld [vmem:[%s7594_s19 + $0x194] ss:$28 sps:$4 sm:$0xff]   ;;  %v7208_v20 = vld [vmem:[%s9478_s1 + $0x388] ss:$16 sps:$4 sm:$0xff]  }
  0x96   : > { %2667 = vmatprep.subr.bf16.mxu0 %v7117_v22  ;;  %3246 = vmatprep.subr.bf16.mxu1 %v7120_v36  ;;  %v7216_v22 = vld [vmem:[%s9478_s1 + $0x5a4] ss:$16 sps:$4 sm:$0xff]   ;;  %v7219_v36 = vld [vmem:[%s9478_s1 + $0x3ac] ss:$16 sps:$4 sm:$0xff]  }
  0x98   : > { %2513 = vmatmul.mubr.bf16.gmra.mrb[4].mxu0 %v7980_v23  ;;  %3092 = vmatmul.mubr.bf16.gmra.mrb[36].mxu1 %v7698_v48  ;;  %v7138_v48 = vld [vmem:[%s9478_s1 + $0x28c] ss:$16 sps:$4 sm:$0xff]  }
  0x99   : > { %2522 = vmatprep.mubr.bf16.mxu0 %v7983_v24  ;;  %3101 = vmatprep.mubr.bf16.mxu1 %v7718_v55  ;;  %v8014_v55 = vld [vmem:[%s7594_s19 + $0x78] ss:$28 sps:$4 sm:$0xff]  }
  0x9a   : > { %2668 = vmatpush1.bf16.msra.mxu0 %v7115_v25  ;;  %3247 = vmatpush1.bf16.msra.mxu1 %v7118_v43  ;;  %v7214_v25 = vld [vmem:[%s9478_s1 + $0x5a0] ss:$16 sps:$4 sm:$0xff]   ;;  %v7217_v43 = vld [vmem:[%s9478_s1 + $0x3a8] ss:$16 sps:$4 sm:$0xff]  }
  0x9b   : > { %2669 = vmatprep.subr.bf16.mxu0 %v7126_v26  ;;  %3248 = vmatprep.subr.bf16.mxu1 %v7129_v27  ;;  %v7225_v26 = vld [vmem:[%s9478_s1 + $0x5c4] ss:$16 sps:$4 sm:$0xff]   ;;  %v8184_v27 = vld [vmem:[%s7594_s19 + $0x190] ss:$28 sps:$4 sm:$0xff]  }
  0x9e   : > { %2670 = vmatpush1.bf16.msra.mxu0 %v7124_v29  ;;  %3249 = vmatpush1.bf16.msra.mxu1 %v7127_v30  ;;  %v8187_v29 = vld [vmem:[%s7594_s19 + $0x1cc] ss:$28 sps:$4 sm:$0xff]  }
  0x9f   : > { %2671 = vmatprep.subr.bf16.mxu0 %v7135_v31  ;;  %3250 = vmatprep.subr.bf16.mxu1 %v7138_v48  ;;  %v7226_v30 = vld [vmem:[%s9478_s1 + $0x3c8] ss:$16 sps:$4 sm:$0xff]   ;;  %v7234_v31 = vld [vmem:[%s9478_s1 + $0x5e4] ss:$16 sps:$4 sm:$0xff]   ;;  %v7237_v48 = vld [vmem:[%s9478_s1 + $0x3ec] ss:$16 sps:$4 sm:$0xff]  }
  0xa0   : > { %2523 = vmatmul.mubr.bf16.gmra.mrb[8].mxu0 %v8014_v55  ;;  %3102 = vmatmul.mubr.bf16.gmra.mrb[40].mxu1 %v7732_v60  ;;  %v7156_v60 = vld [vmem:[%s9478_s1 + $0x2cc] ss:$16 sps:$4 sm:$0xff]  }
  0xa1   : > { %2532 = vmatprep.mubr.bf16.mxu0 %v8017_v32  ;;  %3111 = vmatprep.mubr.bf16.mxu1 %v7752_v3  ;;  %v8048_v3 = vld [vmem:[%s7594_s19 + $0xb0] ss:$28 sps:$4 sm:$0xff]  }
  0xa2   : > { %2672 = vmatpush1.bf16.msra.mxu0 %v7133_v34  ;;  %3251 = vmatpush1.bf16.msra.mxu1 %v7136_v35  ;;  %v7232_v34 = vld [vmem:[%s9478_s1 + $0x5e0] ss:$16 sps:$4 sm:$0xff]   ;;  %v7235_v35 = vld [vmem:[%s9478_s1 + $0x3e8] ss:$16 sps:$4 sm:$0xff]  }
  0xa3   : > { %2673 = vmatprep.subr.bf16.mxu0 %v7144_v37  ;;  %3252 = vmatprep.subr.bf16.mxu1 %v7147_v38  ;;  %v7468_v37 = vld [vmem:[%s7594_s19 + $0x1c4] ss:$28 sps:$4 sm:$0xff]  }
  0xa4   : > { %v7243_v38 = vld [vmem:[%s9478_s1 + $0x604] ss:$16 sps:$4 sm:$0xff]  }
  0xa6   : > { %2674 = vmatpush1.bf16.msra.mxu0 %v7142_v39  ;;  %3253 = vmatpush1.bf16.msra.mxu1 %v7145_v40  ;;  %v8218_v39 = vld [vmem:[%s7594_s19 + $0x1c8] ss:$28 sps:$4 sm:$0xff]  }
  0xa7   : > { %2675 = vmatprep.subr.bf16.mxu0 %v7153_v42  ;;  %3254 = vmatprep.subr.bf16.mxu1 %v7156_v60  ;;  %v8221_v40 = vld [vmem:[%s7594_s19 + $0x204] ss:$28 sps:$4 sm:$0xff]   ;;  %v7470_v60 = vld [vmem:[%s7594_s19 + $0x1fc] ss:$28 sps:$4 sm:$0xff]  }
  0xa8   : > { %2533 = vmatmul.mubr.bf16.gmra.mrb[12].mxu0 %v8048_v3  ;;  %3112 = vmatmul.mubr.bf16.gmra.mrb[44].mxu1 %v7766_v8  ;;  %v7174_v8 = vld [vmem:[%s9478_s1 + $0x30c] ss:$16 sps:$4 sm:$0xff]  }
  0xa9   : > { %2542 = vmatprep.mubr.bf16.mxu0 %v8051_v44  ;;  %3121 = vmatprep.mubr.bf16.mxu1 %v7786_v16  ;;  %v8082_v16 = vld [vmem:[%s7594_s19 + $0xe8] ss:$28 sps:$4 sm:$0xff]   ;;  %v7469_v42 = vld [vmem:[%s7594_s19 + $0x1c0] ss:$28 sps:$4 sm:$0xff]  }
  0xaa   : > { %2676 = vmatpush1.bf16.msra.mxu0 %v7151_v45  ;;  %3255 = vmatpush1.bf16.msra.mxu1 %v7154_v46  ;;  %v8228_v45 = vld [vmem:[%s7594_s19 + $0x200] ss:$28 sps:$4 sm:$0xff]  }
  0xab   : > { %2677 = vmatprep.subr.bf16.mxu0 %v7162_v49  ;;  %3256 = vmatprep.subr.bf16.mxu1 %v7165_v50  ;;  %v8231_v46 = vld [vmem:[%s7594_s19 + $0x23c] ss:$28 sps:$4 sm:$0xff]   ;;  %v7472_v50 = vld [vmem:[%s7594_s19 + $0x234] ss:$28 sps:$4 sm:$0xff]  }
  0xac   : > { %v7471_v49 = vld [vmem:[%s7594_s19 + $0x1f8] ss:$28 sps:$4 sm:$0xff]  }
  0xae   : > { %2678 = vmatpush1.bf16.msra.mxu0 %v7160_v51  ;;  %3257 = vmatpush1.bf16.msra.mxu1 %v7163_v52  ;;  %v8238_v51 = vld [vmem:[%s7594_s19 + $0x238] ss:$28 sps:$4 sm:$0xff]  }
  0xaf   : > { %2679 = vmatprep.subr.bf16.mxu0 %v7171_v53  ;;  %3258 = vmatprep.subr.bf16.mxu1 %v7174_v8  ;;  %v8241_v52 = vld [vmem:[%s7594_s19 + $0x274] ss:$28 sps:$4 sm:$0xff]   ;;  %v7474_v8 = vld [vmem:[%s7594_s19 + $0x26c] ss:$28 sps:$4 sm:$0xff]  }
  0xb0   : > { %2543 = vmatmul.mubr.bf16.gmra.mrb[16].mxu0 %v8082_v16  ;;  %3122 = vmatmul.mubr.bf16.gmra.mrb[48].mxu1 %v7800_v21  ;;  %v7192_v21 = vld [vmem:[%s9478_s1 + $0x34c] ss:$16 sps:$4 sm:$0xff]  }
  0xb1   : > { %2552 = vmatprep.mubr.bf16.mxu0 %v8085_v54  ;;  %3131 = vmatprep.mubr.bf16.mxu1 %v7820_v28  ;;  %v7187_v28 = vld [vmem:[%s9478_s1 + $0x540] ss:$16 sps:$4 sm:$0xff]  }
  0xb2   : > { %2680 = vmatpush1.bf16.msra.mxu0 %v7169_v58  ;;  %3259 = vmatpush1.bf16.msra.mxu1 %v7172_v59  ;;  %v7473_v53 = vld [vmem:[%s7594_s19 + $0x230] ss:$28 sps:$4 sm:$0xff]  }
  0xb3   : > { %2681 = vmatprep.subr.bf16.mxu0 %v7180_v61  ;;  %3260 = vmatprep.subr.bf16.mxu1 %v7183_v62  ;;  %v8248_v58 = vld [vmem:[%s7594_s19 + $0x270] ss:$28 sps:$4 sm:$0xff]   ;;  %v7475_v61 = vld [vmem:[%s7594_s19 + $0x268] ss:$28 sps:$4 sm:$0xff]  }
  0xb4   : > { %v8251_v59 = vld [vmem:[%s7594_s19 + $0x2ac] ss:$28 sps:$4 sm:$0xff]   ;;  %v7476_v62 = vld [vmem:[%s7594_s19 + $0x2a4] ss:$28 sps:$4 sm:$0xff]  }
  0xb6   : > { %2682 = vmatpush1.bf16.msra.mxu0 %v7178_v1  ;;  %3261 = vmatpush1.bf16.msra.mxu1 %v7181_v2  ;;  %v8258_v1 = vld [vmem:[%s7594_s19 + $0x2a8] ss:$28 sps:$4 sm:$0xff]  }
  0xb7   : > { %2683 = vmatprep.subr.bf16.mxu0 %v7189_v4  ;;  %3262 = vmatprep.subr.bf16.mxu1 %v7192_v21  ;;  %v8261_v2 = vld [vmem:[%s7594_s19 + $0x2e4] ss:$28 sps:$4 sm:$0xff]   ;;  %v7478_v21 = vld [vmem:[%s7594_s19 + $0x2dc] ss:$28 sps:$4 sm:$0xff]  }
  0xb8   : > { %2553 = vmatmul.mubr.bf16.gmra.mrb[20].mxu0 %v8113_v5  ;;  %3132 = vmatmul.mubr.bf16.gmra.mrb[52].mxu1 %v7834_v33  ;;  %v7210_v33 = vld [vmem:[%s9478_s1 + $0x38c] ss:$16 sps:$4 sm:$0xff]  }
  0xb9   : > { %2562 = vmatprep.mubr.bf16.mxu0 %v8119_v7  ;;  %3141 = vmatprep.mubr.bf16.mxu1 %v7854_v41  ;;  %v7205_v41 = vld [vmem:[%s9478_s1 + $0x580] ss:$16 sps:$4 sm:$0xff]  }
  0xba   : > { %2684 = vmatpush1.bf16.msra.mxu0 %v7187_v28  ;;  %3263 = vmatpush1.bf16.msra.mxu1 %v7190_v9  ;;  %v7477_v4 = vld [vmem:[%s7594_s19 + $0x2a0] ss:$28 sps:$4 sm:$0xff]  }
  0xbb   : > { %2685 = vmatprep.subr.bf16.mxu0 %v7198_v10  ;;  %3264 = vmatprep.subr.bf16.mxu1 %v7201_v11  ;;  %v8268_v28 = vld [vmem:[%s7594_s19 + $0x2e0] ss:$28 sps:$4 sm:$0xff]   ;;  %v7479_v10 = vld [vmem:[%s7594_s19 + $0x2d8] ss:$28 sps:$4 sm:$0xff]  }
  0xbc   : > { %v8271_v9 = vld [vmem:[%s7594_s19 + $0x31c] ss:$28 sps:$4 sm:$0xff]   ;;  %v7480_v11 = vld [vmem:[%s7594_s19 + $0x314] ss:$28 sps:$4 sm:$0xff]  }
  0xbe   : > { %2686 = vmatpush1.bf16.msra.mxu0 %v7196_v13  ;;  %3265 = vmatpush1.bf16.msra.mxu1 %v7199_v15  ;;  %v8278_v13 = vld [vmem:[%s7594_s19 + $0x318] ss:$28 sps:$4 sm:$0xff]  }
  0xbf   : > { %2687 = vmatprep.subr.bf16.mxu0 %v7207_v14  ;;  %3266 = vmatprep.subr.bf16.mxu1 %v7210_v33  ;;  %v8281_v15 = vld [vmem:[%s7594_s19 + $0x354] ss:$28 sps:$4 sm:$0xff]  }
  0xc0   : > { %2563 = vmatmul.mubr.bf16.gmra.mrb[24].mxu0 %v8150_v18  ;;  %3142 = vmatmul.mubr.bf16.gmra.mrb[56].mxu1 %v7868_v47  ;;  %v7228_v47 = vld [vmem:[%s9478_s1 + $0x3cc] ss:$16 sps:$4 sm:$0xff]  }
  0xc1   : > { %2572 = vmatprep.mubr.bf16.mxu0 %v8153_v19  ;;  %3151 = vmatprep.mubr.bf16.mxu1 %v7888_v56  ;;  %v7223_v56 = vld [vmem:[%s9478_s1 + $0x5c0] ss:$16 sps:$4 sm:$0xff]  }
  0xc2   : > { %2688 = vmatpush1.bf16.msra.mxu0 %v7205_v41  ;;  %3267 = vmatpush1.bf16.msra.mxu1 %v7208_v20  ;;  %v7481_v14 = vld [vmem:[%s7594_s19 + $0x310] ss:$28 sps:$4 sm:$0xff]  }
  0xc3   : > { %2689 = vmatprep.subr.bf16.mxu0 %v7216_v22  ;;  %3268 = vmatprep.subr.bf16.mxu1 %v7219_v36  ;;  %v8288_v33 = vld [vmem:[%s7594_s19 + $0x350] ss:$28 sps:$4 sm:$0xff]   ;;  %v7244_v22 = vld [vmem:[%s9478_s1 + $0x408] ss:$16 sps:$4 sm:$0xff]  }
  0xc4   : > { %v8291_v41 = vld [vmem:[%s7594_s19 + $0x14] ss:$28 sps:$4 sm:$0xff]   ;;  %v8307_v36 = vld [vmem:[%s7594_s19 + $0x4c] ss:$28 sps:$4 sm:$0xff]  }
  0xc5   : > { %v8298_v20 = vld [vmem:[%s7594_s19 + $0x10] ss:$28 sps:$4 sm:$0xff]  }
  0xc6   : > { %2690 = vmatpush1.bf16.msra.mxu0 %v7214_v25  ;;  %3269 = vmatpush1.bf16.msra.mxu1 %v7217_v43  ;;  %v7258_v25 = vld [vmem:[%s9478_s1 + $0x44c] ss:$16 sps:$4 sm:$0xff]   ;;  %v8323_v43 = vld [vmem:[%s7594_s19 + $0x48] ss:$28 sps:$4 sm:$0xff]  }
  0xc7   : > { %2691 = vmatprep.subr.bf16.mxu0 %v7225_v26  ;;  %3270 = vmatprep.subr.bf16.mxu1 %v7228_v47  ;;  %v7256_v26 = vld [vmem:[%s9478_s1 + $0x448] ss:$16 sps:$4 sm:$0xff]  }
  0xc8   : > { %2573 = vmatmul.mubr.bf16.gmra.mrb[28].mxu0 %v8184_v27  ;;  %3152 = vmatmul.mubr.bf16.gmra.mrb[60].mxu1 %v7909_v63  ;;  %v7246_v63 = vld [vmem:[%s9478_s1 + $0x40c] ss:$16 sps:$4 sm:$0xff]   ;;  %v7262_v47 = vld [vmem:[%s9478_s1 + $0x468] ss:$16 sps:$4 sm:$0xff]  }
  0xc9   : > { %2582 = vmatprep.mubr.bf16.mxu0 %v8187_v29  ;;  %3161 = vmatprep.mubr.bf16.mxu1 %v7468_v37 }
  0xca   : > { %2692 = vmatpush1.bf16.msra.mxu0 %v7223_v56  ;;  %3271 = vmatpush1.bf16.msra.mxu1 %v7226_v30  ;;  %v7270_v56 = vld [vmem:[%s9478_s1 + $0x48c] ss:$16 sps:$4 sm:$0xff]  }
  0xcb   : > { %2693 = vmatprep.subr.bf16.mxu0 %v7234_v31  ;;  %3272 = vmatprep.subr.bf16.mxu1 %v7237_v48  ;;  %v8345_v30 = vld [vmem:[%s7594_s19 + $0x80] ss:$28 sps:$4 sm:$0xff]   ;;  %v7274_v48 = vld [vmem:[%s9478_s1 + $0x4a8] ss:$16 sps:$4 sm:$0xff]  }
  0xcc   : > { %v8348_v31 = vld [vmem:[%s7594_s19 + $0xbc] ss:$28 sps:$4 sm:$0xff]  }
  0xce   : > { %2694 = vmatpush1.bf16.msra.mxu0 %v7232_v34  ;;  %3273 = vmatpush1.bf16.msra.mxu1 %v7235_v35  ;;  %v7282_v35 = vld [vmem:[%s9478_s1 + $0x4cc] ss:$16 sps:$4 sm:$0xff]  }
  0xcf   : > { %2856 = vmatprep.subr.bf16.mxu0 %v7243_v38  ;;  %3435 = vmatprep.subr.bf16.mxu1 %v7246_v63  ;;  %v8371_v38 = vld [vmem:[%s7594_s19 + $0xb8] ss:$28 sps:$4 sm:$0xff]  }
  0xd0   : > { %2583 = vmatmul.mubr.bf16.gmra.mrb[32].mxu0 %v8218_v39  ;;  %3162 = vmatmul.mubr.bf16.gmra.mrb[64].mxu1 %v7469_v42  ;;  %v8376_v63 = vld [vmem:[%s7594_s19 + $0xf4] ss:$28 sps:$4 sm:$0xff]   ;;  %v7280_v42 = vld [vmem:[%s9478_s1 + $0x4c8] ss:$16 sps:$4 sm:$0xff]  }
  0xd1   : > { %2592 = vmatprep.mubr.bf16.mxu0 %v8221_v40  ;;  %3171 = vmatprep.mubr.bf16.mxu1 %v7470_v60  ;;  %v7288_v60 = vld [vmem:[%s9478_s1 + $0x4ec] ss:$16 sps:$4 sm:$0xff]  }
  0xd8   : > { %2593 = vmatmul.mubr.bf16.gmra.mrb[36].mxu0 %v8228_v45  ;;  %3172 = vmatmul.mubr.bf16.gmra.mrb[68].mxu1 %v7471_v49  ;;  %v7286_v49 = vld [vmem:[%s9478_s1 + $0x4e8] ss:$16 sps:$4 sm:$0xff]  }
  0xd9   : > { %2602 = vmatprep.mubr.bf16.mxu0 %v8231_v46  ;;  %3181 = vmatprep.mubr.bf16.mxu1 %v7472_v50 }
  0xe0   : > { %2603 = vmatmul.mubr.bf16.gmra.mrb[40].mxu0 %v8238_v51  ;;  %3182 = vmatmul.mubr.bf16.gmra.mrb[72].mxu1 %v7473_v53  ;;  %v7294_v53 = vld [vmem:[%s9478_s1 + $0x50c] ss:$16 sps:$4 sm:$0xff]  }
  0xe1   : > { %2612 = vmatprep.mubr.bf16.mxu0 %v8241_v52  ;;  %3191 = vmatprep.mubr.bf16.mxu1 %v7474_v8 }
  0xe8   : > { %2613 = vmatmul.mubr.bf16.gmra.mrb[44].mxu0 %v8248_v58  ;;  %3192 = vmatmul.mubr.bf16.gmra.mrb[76].mxu1 %v7475_v61  ;;  %v8401_v61 = vld [vmem:[%s7594_s19 + $0xf0] ss:$28 sps:$4 sm:$0xff]  }
  0xe9   : > { %2622 = vmatprep.mubr.bf16.mxu0 %v8251_v59  ;;  %3201 = vmatprep.mubr.bf16.mxu1 %v7476_v62  ;;  %v8406_v62 = vld [vmem:[%s7594_s19 + $0x12c] ss:$28 sps:$4 sm:$0xff]  }
  0xf0   : > { %2623 = vmatmul.mubr.bf16.gmra.mrb[48].mxu0 %v8258_v1  ;;  %3202 = vmatmul.mubr.bf16.gmra.mrb[80].mxu1 %v7477_v4  ;;  %v7292_v4 = vld [vmem:[%s9478_s1 + $0x508] ss:$16 sps:$4 sm:$0xff]  }
  0xf1   : > { %2632 = vmatprep.mubr.bf16.mxu0 %v8261_v2  ;;  %3211 = vmatprep.mubr.bf16.mxu1 %v7478_v21  ;;  %v7300_v21 = vld [vmem:[%s9478_s1 + $0x52c] ss:$16 sps:$4 sm:$0xff]  }
  0xf8   : > { %2633 = vmatmul.mubr.bf16.gmra.mrb[52].mxu0 %v8268_v28  ;;  %3212 = vmatmul.mubr.bf16.gmra.mrb[84].mxu1 %v7479_v10  ;;  %v7298_v10 = vld [vmem:[%s9478_s1 + $0x528] ss:$16 sps:$4 sm:$0xff]  }
  0xf9   : > { %2642 = vmatprep.mubr.bf16.mxu0 %v8271_v9  ;;  %3221 = vmatprep.mubr.bf16.mxu1 %v7480_v11 }
 0x100   : > { %2643 = vmatmul.mubr.bf16.gmra.mrb[56].mxu0 %v8278_v13  ;;  %3222 = vmatmul.mubr.bf16.gmra.mrb[88].mxu1 %v7481_v14  ;;  %v7306_v14 = vld [vmem:[%s9478_s1 + $0x54c] ss:$16 sps:$4 sm:$0xff]  }
 0x101   : > { %2652 = vmatprep.mubr.bf16.mxu0 %v8281_v15  ;;  %3231 = vmatprep.mubr.bf16.mxu1 %v7891_v57  ;;  %v7241_v57 = vld [vmem:[%s9478_s1 + $0x600] ss:$16 sps:$4 sm:$0xff]  }
 0x108   : > { %2653 = vmatmul.mubr.bf16.gmra.mrb[60].mxu0 %v8288_v33  ;;  %3232 = vmatmul.mubr.bf16.gmra.mrb[92].mxu1 %v7912_v0  ;;  %v7252_v0 = vld [vmem:[%s9478_s1 + $0x42c] ss:$16 sps:$4 sm:$0xff]  }
 0x109   : > { %2695 = vmatprep.mubr.bf16.mxu0 %v8291_v41  ;;  %3274 = vmatprep.mubr.bf16.mxu1 %v7927_v6  ;;  %v7250_v6 = vld [vmem:[%s9478_s1 + $0x428] ss:$16 sps:$4 sm:$0xff]  }
 0x110   : > { %2696 = vmatmul.mubr.bf16.vlgmr.msra.gmra.mrb[0].mxu0 %v8298_v20  ;;  %3275 = vmatmul.mubr.bf16.vlgmr.msra.gmra.mrb[32].mxu1 %v7946_v12  ;;  %v8326_v12 = vld [vmem:[%s7594_s19 + $0x84] ss:$28 sps:$4 sm:$0xff]  }
 0x111   : > { %2857 = vmatpush1.bf16.msra.mxu0 %v7241_v57  ;;  %3436 = vmatpush1.bf16.msra.mxu1 %v7244_v22  ;;  %v8431_v22 = vld [vmem:[%s7594_s19 + $0x128] ss:$28 sps:$4 sm:$0xff]  }
 0x112   : > { %2705 = vmatprep.mubr.bf16.mxu0 %v8307_v36  ;;  %3284 = vmatprep.mubr.bf16.mxu1 %v7955_v17  ;;  %v7264_v17 = vld [vmem:[%s9478_s1 + $0x46c] ss:$16 sps:$4 sm:$0xff]  }
 0x113   : > { %3437 = vmatprep.subr.bf16.mxu1 %v7252_v0  ;;  %v8436_v0 = vld [vmem:[%s7594_s19 + $0x164] ss:$28 sps:$4 sm:$0xff]  }
 0x115   : > { %3438 = vmatpush1.bf16.msra.mxu1 %v7250_v6  ;;  %v7304_v6 = vld [vmem:[%s9478_s1 + $0x548] ss:$16 sps:$4 sm:$0xff]  }
 0x116   : > { %3439 = vmatprep.subr.bf16.mxu1 %v7258_v25  ;;  %v7312_v25 = vld [vmem:[%s9478_s1 + $0x56c] ss:$16 sps:$4 sm:$0xff]  }
 0x118   : > { %2706 = vmatmul.mubr.bf16.gmra.mrb[4].mxu0 %v8323_v43  ;;  %3285 = vmatmul.mubr.bf16.gmra.mrb[36].mxu1 %v7980_v23  ;;  %v7268_v23 = vld [vmem:[%s9478_s1 + $0x488] ss:$16 sps:$4 sm:$0xff]  }
 0x119   : > { %2715 = vmatprep.mubr.bf16.mxu0 %v8326_v12  ;;  %3294 = vmatprep.mubr.bf16.mxu1 %v7983_v24  ;;  %v7276_v24 = vld [vmem:[%s9478_s1 + $0x4ac] ss:$16 sps:$4 sm:$0xff]  }
 0x11a   : > { %3440 = vmatpush1.bf16.msra.mxu1 %v7256_v26  ;;  %v7310_v26 = vld [vmem:[%s9478_s1 + $0x568] ss:$16 sps:$4 sm:$0xff]  }
 0x11b   : > { %3441 = vmatprep.subr.bf16.mxu1 %v7264_v17 }
 0x11e   : > { %3442 = vmatpush1.bf16.msra.mxu1 %v7262_v47  ;;  %v7318_v47 = vld [vmem:[%s9478_s1 + $0x58c] ss:$16 sps:$4 sm:$0xff]  }
 0x11f   : > { %3443 = vmatprep.subr.bf16.mxu1 %v7270_v56 }
 0x120   : > { %2716 = vmatmul.mubr.bf16.gmra.mrb[8].mxu0 %v8345_v30  ;;  %3295 = vmatmul.mubr.bf16.gmra.mrb[40].mxu1 %v8014_v55 }
 0x121   : > { %2725 = vmatprep.mubr.bf16.mxu0 %v8348_v31  ;;  %3304 = vmatprep.mubr.bf16.mxu1 %v8017_v32 }
 0x122   : > { %3444 = vmatpush1.bf16.msra.mxu1 %v7268_v23  ;;  %v8461_v23 = vld [vmem:[%s7594_s19 + $0x160] ss:$28 sps:$4 sm:$0xff]  }
 0x123   : > { %v8363_v34 = vpop.f32.mrb[0].mxu1  ;;  %3445 = vmatprep.subr.bf16.mxu1 %v7276_v24  ;;  %v8466_v24 = vld [vmem:[%s7594_s19 + $0x19c] ss:$28 sps:$4 sm:$0xff]  }
 0x124   : > { %v8368_v37 = vpop.f32.mrb[1].mxu1 }
 0x125   : > { %v8373_v55 = vpop.f32.mrb[2].mxu1 }
 0x126   : > { %v8378_v32 = vpop.f32.mrb[3].mxu1  ;;  %3446 = vmatpush1.bf16.msra.mxu1 %v7274_v48  ;;  %v7316_v48 = vld [vmem:[%s9478_s1 + $0x588] ss:$16 sps:$4 sm:$0xff]  }
 0x127   : > { %3447 = vmatprep.subr.bf16.mxu1 %v7282_v35  ;;  %v7324_v35 = vld [vmem:[%s9478_s1 + $0x5ac] ss:$16 sps:$4 sm:$0xff]  }
 0x128   : > { %2726 = vmatmul.mubr.bf16.gmra.mrb[12].mxu0 %v8371_v38  ;;  %3305 = vmatmul.mubr.bf16.gmra.mrb[44].mxu1 %v8048_v3 }
 0x129   : > { %2735 = vmatprep.mubr.bf16.mxu0 %v8376_v63  ;;  %3314 = vmatprep.mubr.bf16.mxu1 %v8051_v44 }
 0x12a   : > { %3448 = vmatpush1.bf16.msra.mxu1 %v7280_v42  ;;  %v7322_v42 = vld [vmem:[%s9478_s1 + $0x5a8] ss:$16 sps:$4 sm:$0xff]  }
 0x12b   : > { %v8393_v50 = vpop.f32.mrb[4].mxu1  ;;  %3449 = vmatprep.subr.bf16.mxu1 %v7288_v60 }
 0x12c   : > { %v8398_v8 = vpop.f32.mrb[5].mxu1 }
 0x12d   : > { %v8403_v3 = vpop.f32.mrb[6].mxu1 }
 0x12e   : > { %v8408_v44 = vpop.f32.mrb[7].mxu1  ;;  %3450 = vmatpush1.bf16.msra.mxu1 %v7286_v49  ;;  %v7330_v49 = vld [vmem:[%s9478_s1 + $0x5cc] ss:$16 sps:$4 sm:$0xff]  }
 0x12f   : > { %3451 = vmatprep.subr.bf16.mxu1 %v7294_v53 }
 0x130   : > { %2736 = vmatmul.mubr.bf16.gmra.mrb[16].mxu0 %v8401_v61  ;;  %3315 = vmatmul.mubr.bf16.gmra.mrb[48].mxu1 %v8082_v16 }
 0x131   : > { %2745 = vmatprep.mubr.bf16.mxu0 %v8406_v62  ;;  %3324 = vmatprep.mubr.bf16.mxu1 %v8085_v54 }
 0x132   : > { %3452 = vmatpush1.bf16.msra.mxu1 %v7292_v4  ;;  %v8491_v4 = vld [vmem:[%s7594_s19 + $0x198] ss:$28 sps:$4 sm:$0xff]  }
 0x133   : > { %v8423_v11 = vpop.f32.mrb[8].mxu1  ;;  %3453 = vmatprep.subr.bf16.mxu1 %v7300_v21  ;;  %v8496_v21 = vld [vmem:[%s7594_s19 + $0x1d4] ss:$28 sps:$4 sm:$0xff]  }
 0x134   : > { %v8428_v57 = vpop.f32.mrb[9].mxu1 }
 0x135   : > { %v8433_v16 = vpop.f32.mrb[10].mxu1 }
 0x136   : > { %v8438_v54 = vpop.f32.mrb[11].mxu1  ;;  %3454 = vmatpush1.bf16.msra.mxu1 %v7298_v10  ;;  %v7328_v10 = vld [vmem:[%s9478_s1 + $0x5c8] ss:$16 sps:$4 sm:$0xff]  }
 0x137   : > { %3455 = vmatprep.subr.bf16.mxu1 %v7306_v14  ;;  %v7336_v14 = vld [vmem:[%s9478_s1 + $0x5ec] ss:$16 sps:$4 sm:$0xff]  }
 0x138   : > { %2746 = vmatmul.mubr.bf16.gmra.mrb[20].mxu0 %v8431_v22  ;;  %3325 = vmatmul.mubr.bf16.gmra.mrb[52].mxu1 %v8113_v5 }
 0x139   : > { %2755 = vmatprep.mubr.bf16.mxu0 %v8436_v0  ;;  %3334 = vmatprep.mubr.bf16.mxu1 %v8119_v7 }
 0x13a   : > { %3456 = vmatpush1.bf16.msra.mxu1 %v7304_v6  ;;  %v7334_v6 = vld [vmem:[%s9478_s1 + $0x5e8] ss:$16 sps:$4 sm:$0xff]  }
 0x13b   : > { %v8453_v17 = vpop.f32.mrb[12].mxu1  ;;  %3457 = vmatprep.subr.bf16.mxu1 %v7312_v25 }
 0x13c   : > { %v8458_v56 = vpop.f32.mrb[13].mxu1 }
 0x13d   : > { %v8463_v5 = vpop.f32.mrb[14].mxu1 }
 0x13e   : > { %v8468_v7 = vpop.f32.mrb[15].mxu1  ;;  %3458 = vmatpush1.bf16.msra.mxu1 %v7310_v26  ;;  %v7340_v26 = vld [vmem:[%s9478_s1 + $0x60c] ss:$16 sps:$4 sm:$0xff]  }
 0x13f   : > { %3459 = vmatprep.subr.bf16.mxu1 %v7318_v47 }
 0x140   : > { %2756 = vmatmul.mubr.bf16.gmra.mrb[24].mxu0 %v8461_v23  ;;  %3335 = vmatmul.mubr.bf16.gmra.mrb[56].mxu1 %v8150_v18 }
 0x141   : > { %2765 = vmatprep.mubr.bf16.mxu0 %v8466_v24  ;;  %3344 = vmatprep.mubr.bf16.mxu1 %v8153_v19 }
 0x142   : > { %3460 = vmatpush1.bf16.msra.mxu1 %v7316_v48 }
 0x143   : > { %v8483_v60 = vpop.f32.mrb[16].mxu1  ;;  %3461 = vmatprep.subr.bf16.mxu1 %v7324_v35 }
 0x144   : > { %v8488_v53 = vpop.f32.mrb[17].mxu1 }
 0x145   : > { %v8493_v18 = vpop.f32.mrb[18].mxu1 }
 0x146   : > { %v8498_v19 = vpop.f32.mrb[19].mxu1  ;;  %3462 = vmatpush1.bf16.msra.mxu1 %v7322_v42 }
 0x147   : > { %3463 = vmatprep.subr.bf16.mxu1 %v7330_v49 }
 0x148   : > { %2766 = vmatmul.mubr.bf16.gmra.mrb[28].mxu0 %v8491_v4  ;;  %3345 = vmatmul.mubr.bf16.gmra.mrb[60].mxu1 %v8184_v27  ;;  %v8521_v27 = vld [vmem:[%s7594_s19 + $0x1d0] ss:$28 sps:$4 sm:$0xff]  }
 0x149   : > { %2775 = vmatprep.mubr.bf16.mxu0 %v8496_v21  ;;  %3354 = vmatprep.mubr.bf16.mxu1 %v8187_v29  ;;  %v8526_v29 = vld [vmem:[%s7594_s19 + $0x20c] ss:$28 sps:$4 sm:$0xff]  }
 0x14a   : > { %3464 = vmatpush1.bf16.msra.mxu1 %v7328_v10  ;;  %v8539_v10 = vld [vmem:[%s7594_s19 + $0x208] ss:$28 sps:$4 sm:$0xff]  }
 0x14b   : > { %v8513_v25 = vpop.f32.mrb[20].mxu1  ;;  %3465 = vmatprep.subr.bf16.mxu1 %v7336_v14 }
 0x14c   : > { %v8518_v47 = vpop.f32.mrb[21].mxu1 }
 0x14d   : > { %v8523_v48 = vpop.f32.mrb[22].mxu1 }
 0x14e   : > { %v8528_v35 = vpop.f32.mrb[23].mxu1  ;;  %3466 = vmatpush1.bf16.msra.mxu1 %v7334_v6  ;;  %v8544_v6 = vld [vmem:[%s7594_s19 + $0x244] ss:$28 sps:$4 sm:$0xff]  }
 0x14f   : > { %3628 = vmatprep.subr.bf16.mxu1 %v7340_v26 }
 0x150   : > { %2776 = vmatmul.mubr.bf16.gmra.mrb[32].mxu0 %v8521_v27  ;;  %3355 = vmatmul.mubr.bf16.gmra.mrb[64].mxu1 %v8218_v39 }
 0x151   : > { %2785 = vmatprep.mubr.bf16.mxu0 %v8526_v29  ;;  %3364 = vmatprep.mubr.bf16.mxu1 %v8221_v40 }
 0x153   : > { %v8534_v42 = vpop.f32.mrb[24].mxu1 }
 0x154   : > { %9487 = vst [vmem:[#allocation3_spill] sm:$0xff] %v8534_v42  ;;  %v8536_v49 = vpop.f32.mrb[25].mxu1 }
 0x155   : > { %9488 = vst [vmem:[#allocation4_spill] sm:$0xff] %v8536_v49  ;;  %v8541_v14 = vpop.f32.mrb[26].mxu1 }
 0x156   : > { %9489 = vst [vmem:[#allocation5_spill] sm:$0xff] %v8541_v14  ;;  %v8546_v26 = vpop.f32.mrb[27].mxu1  ;;  %v8557_v14 = vld [vmem:[%s7594_s19 + $0x240] ss:$28 sps:$4 sm:$0xff]  }
 0x157   : > { %9490 = vst [vmem:[#allocation6_spill] sm:$0xff] %v8546_v26  ;;  %v8562_v26 = vld [vmem:[%s7594_s19 + $0x27c] ss:$28 sps:$4 sm:$0xff]  }
 0x158   : > { %2786 = vmatmul.mubr.bf16.gmra.mrb[36].mxu0 %v8539_v10  ;;  %3365 = vmatmul.mubr.bf16.gmra.mrb[68].mxu1 %v8228_v45  ;;  %v8571_v45 = vld [vmem:[%s7594_s19 + $0x278] ss:$28 sps:$4 sm:$0xff]  }
 0x159   : > { %2795 = vmatprep.mubr.bf16.mxu0 %v8544_v6  ;;  %3374 = vmatprep.mubr.bf16.mxu1 %v8231_v46  ;;  %v8574_v46 = vld [vmem:[%s7594_s19 + $0x2b4] ss:$28 sps:$4 sm:$0xff]  }
 0x15b   : > { %v8552_v39 = vpop.f32.mrb[28].mxu1 }
 0x15c   : > { %v8554_v40 = vpop.f32.mrb[29].mxu1 }
 0x15d   : > { %9491 = vst [vmem:[#allocation7_spill] sm:$0xff] %v8554_v40  ;;  %v8559_v49 = vpop.f32.mrb[30].mxu1  ;;  %v8644_v40 = vld [vmem:[%s7594_s19 + $0x50] ss:$28 sps:$4 sm:$0xff]  }
 0x15e   : > { %9492 = vst [vmem:[#allocation8_spill] sm:$0xff] %v8559_v49  ;;  %v8564_v42 = vpop.f32.mrb[31].mxu1  ;;  %v8607_v49 = vld [vmem:[%s7594_s19 + $0x35c] ss:$28 sps:$4 sm:$0xff]  }
 0x15f   : > { %9493 = vst [vmem:[#allocation9_spill] sm:$0xff] %v8564_v42  ;;  %v8584_v42 = vld [vmem:[%s7594_s19 + $0x2ec] ss:$28 sps:$4 sm:$0xff]  }
 0x160   : > { %2796 = vmatmul.mubr.bf16.gmra.mrb[40].mxu0 %v8557_v14  ;;  %3375 = vmatmul.mubr.bf16.gmra.mrb[72].mxu1 %v8238_v51  ;;  %v8581_v51 = vld [vmem:[%s7594_s19 + $0x2b0] ss:$28 sps:$4 sm:$0xff]  }
 0x161   : > { %2805 = vmatprep.mubr.bf16.mxu0 %v8562_v26  ;;  %3384 = vmatprep.mubr.bf16.mxu1 %v8241_v52  ;;  %v7355_v52 = vld [vmem:[%s9480_s3 + $0x4] ss:$8 sps:$4 sm:$0xff]  }
 0x162   : > { %4537 = vmatprep.subr.bf16.mxu0 %v7355_v52  ;;  %v7363_v52 = vld [vmem:[%s9480_s3 + $0x24] ss:$8 sps:$4 sm:$0xff]  }
 0x168   : > { %2806 = vmatmul.mubr.bf16.gmra.mrb[44].mxu0 %v8571_v45  ;;  %3385 = vmatmul.mubr.bf16.gmra.mrb[76].mxu1 %v8248_v58  ;;  %v8594_v58 = vld [vmem:[%s7594_s19 + $0x2e8] ss:$28 sps:$4 sm:$0xff]  }
 0x169   : > { %2815 = vmatprep.mubr.bf16.mxu0 %v8574_v46  ;;  %3394 = vmatprep.mubr.bf16.mxu1 %v8251_v59  ;;  %v8597_v59 = vld [vmem:[%s7594_s19 + $0x324] ss:$28 sps:$4 sm:$0xff]  }
 0x170   : > { %2816 = vmatmul.mubr.bf16.gmra.mrb[48].mxu0 %v8581_v51  ;;  %3395 = vmatmul.mubr.bf16.gmra.mrb[80].mxu1 %v8258_v1  ;;  %v8604_v1 = vld [vmem:[%s7594_s19 + $0x320] ss:$28 sps:$4 sm:$0xff]  }
 0x171   : > { %2825 = vmatprep.mubr.bf16.mxu0 %v8584_v42  ;;  %3404 = vmatprep.mubr.bf16.mxu1 %v8261_v2  ;;  %v8614_v2 = vld [vmem:[%s7594_s19 + $0x358] ss:$28 sps:$4 sm:$0xff]  }
 0x178   : > { %2826 = vmatmul.mubr.bf16.gmra.mrb[52].mxu0 %v8594_v58  ;;  %3405 = vmatmul.mubr.bf16.gmra.mrb[84].mxu1 %v8268_v28  ;;  %v7490_v28 = vmov 0  }
 0x179   : > { %2835 = vmatprep.mubr.bf16.mxu0 %v8597_v59  ;;  %3414 = vmatprep.mubr.bf16.mxu1 %v8271_v9  ;;  %v8621_v9 = vld [vmem:[%s7594_s19 + $0x18] ss:$28 sps:$4 sm:$0xff]  }
 0x180   : > { %2836 = vmatmul.mubr.bf16.gmra.mrb[56].mxu0 %v8604_v1  ;;  %3415 = vmatmul.mubr.bf16.gmra.mrb[88].mxu1 %v8278_v13  ;;  %v7338_v13 = vld [vmem:[%s9478_s1 + $0x608] ss:$16 sps:$4 sm:$0xff]  }
 0x181   : > { %2845 = vmatprep.mubr.bf16.mxu0 %v8607_v49  ;;  %3424 = vmatprep.mubr.bf16.mxu1 %v8281_v15  ;;  %v7353_v15 = vld [vmem:[%s9480_s3] ss:$8 sps:$4 sm:$0xff]  }
 0x188   : > { %2846 = vmatmul.mubr.bf16.gmra.mrb[60].mxu0 %v8614_v2  ;;  %3425 = vmatmul.mubr.bf16.gmra.mrb[92].mxu1 %v8288_v33  ;;  %v7359_v33 = vld [vmem:[%s9480_s3 + $0x14] ss:$8 sps:$4 sm:$0xff]  }
 0x189   : > { %2888 = vmatprep.mubr.bf16.mxu0 %v7490_v28  ;;  %3467 = vmatprep.mubr.bf16.mxu1 %v8291_v41  ;;  %v7357_v41 = vld [vmem:[%s9480_s3 + $0x10] ss:$8 sps:$4 sm:$0xff]  }
 0x190   : > { %5991 = vmatmul.mubr.msk.bf16.vlgmr.msra.gmra.mrb[0].mxu0 %vm2228_vm0, %v8621_v9  ;;  %3468 = vmatmul.mubr.bf16.vlgmr.msra.gmra.mrb[32].mxu1 %v8298_v20  ;;  %v7361_v20 = vld [vmem:[%s9480_s3 + $0x20] ss:$8 sps:$4 sm:$0xff]  }
 0x191   : > { %3629 = vmatpush1.bf16.msra.mxu1 %v7338_v13  ;;  %2898 = vmatprep.mubr.bf16.mxu0 %v7490_v28  ;;  %v7365_v13 = vld [vmem:[%s9480_s3 + $0x30] ss:$8 sps:$4 sm:$0xff]  }
 0x192   : > { %3477 = vmatprep.mubr.bf16.mxu1 %v8307_v36  ;;  %4538 = vmatpush1.bf16.msra.mxu0 %v7353_v15  ;;  %v7367_v36 = vld [vmem:[%s9480_s3 + $0x34] ss:$8 sps:$4 sm:$0xff]   ;;  %v7370_v15 = vld [vmem:[%s9480_s3 + $0x44] ss:$8 sps:$4 sm:$0xff]  }
 0x193   : > { %4539 = vmatprep.subr.bf16.mxu0 %v7359_v33  ;;  %v8664_v33 = vld [vmem:[%s7594_s19 + $0x88] ss:$28 sps:$4 sm:$0xff]  }
 0x196   : > { %4540 = vmatpush1.bf16.msra.mxu0 %v7357_v41  ;;  %v7371_v41 = vld [vmem:[%s9480_s3 + $0x50] ss:$8 sps:$4 sm:$0xff]  }
 0x197   : > { %4541 = vmatprep.subr.bf16.mxu0 %v7363_v52  ;;  %v7376_v52 = vld [vmem:[%s9480_s3 + $0x64] ss:$8 sps:$4 sm:$0xff]  }
 0x198   : > { %5992 = vmatmul.mubr.msk.bf16.gmra.mrb[4].mxu0 %vm2228_vm0, %v8644_v40  ;;  %3478 = vmatmul.mubr.bf16.gmra.mrb[36].mxu1 %v8323_v43  ;;  %v7368_v43 = vld [vmem:[%s9480_s3 + $0x40] ss:$8 sps:$4 sm:$0xff]  }
 0x199   : > { %2908 = vmatprep.mubr.bf16.mxu0 %v7490_v28  ;;  %3487 = vmatprep.mubr.bf16.mxu1 %v8326_v12  ;;  %v7373_v12 = vld [vmem:[%s9480_s3 + $0x54] ss:$8 sps:$4 sm:$0xff]  }
 0x19a   : > { %4542 = vmatpush1.bf16.msra.mxu0 %v7361_v20  ;;  %v8684_v20 = vld [vmem:[%s7594_s19 + $0xc0] ss:$28 sps:$4 sm:$0xff]  }
 0x19b   : > { %4543 = vmatprep.subr.bf16.mxu0 %v7367_v36  ;;  %v7377_v36 = vld [vmem:[%s9480_s3 + $0x70] ss:$8 sps:$4 sm:$0xff]  }
 0x19e   : > { %4544 = vmatpush1.bf16.msra.mxu0 %v7365_v13  ;;  %v8701_v13 = vld [vmem:[%s7594_s19 + $0xf8] ss:$28 sps:$4 sm:$0xff]  }
 0x19f   : > { %4545 = vmatprep.subr.bf16.mxu0 %v7370_v15  ;;  %v8715_v15 = vld [vmem:[%s7594_s19 + $0x130] ss:$28 sps:$4 sm:$0xff]  }
 0x1a0   : > { %5993 = vmatmul.mubr.msk.bf16.gmra.mrb[8].mxu0 %vm2228_vm0, %v8664_v33  ;;  %3488 = vmatmul.mubr.bf16.gmra.mrb[40].mxu1 %v8345_v30  ;;  %v7374_v30 = vld [vmem:[%s9480_s3 + $0x60] ss:$8 sps:$4 sm:$0xff]  }
 0x1a1   : > { %2918 = vmatprep.mubr.bf16.mxu0 %v7490_v28  ;;  %3497 = vmatprep.mubr.bf16.mxu1 %v8348_v31  ;;  %v7379_v31 = vld [vmem:[%s9480_s3 + $0x74] ss:$8 sps:$4 sm:$0xff]  }
 0x1a2   : > { %4546 = vmatpush1.bf16.msra.mxu0 %v7368_v43  ;;  %v7385_v43 = vld [vmem:[%s9480_s3 + $0x94] ss:$8 sps:$4 sm:$0xff]  }
 0x1a3   : > { %4547 = vmatprep.subr.bf16.mxu0 %v7373_v12  ;;  %v7388_v12 = vld [vmem:[%s9480_s3 + $0xa4] ss:$8 sps:$4 sm:$0xff]  }
 0x1a6   : > { %4548 = vmatpush1.bf16.msra.mxu0 %v7371_v41  ;;  %v7391_v41 = vld [vmem:[%s9480_s3 + $0xb4] ss:$8 sps:$4 sm:$0xff]  }
 0x1a7   : > { %4549 = vmatprep.subr.bf16.mxu0 %v7376_v52  ;;  %v7394_v52 = vld [vmem:[%s9480_s3 + $0xc4] ss:$8 sps:$4 sm:$0xff]  }
 0x1a8   : > { %5994 = vmatmul.mubr.msk.bf16.gmra.mrb[12].mxu0 %vm2228_vm0, %v8684_v20  ;;  %3498 = vmatmul.mubr.bf16.gmra.mrb[44].mxu1 %v8371_v38  ;;  %v7380_v38 = vld [vmem:[%s9480_s3 + $0x80] ss:$8 sps:$4 sm:$0xff]  }
 0x1a9   : > { %2928 = vmatprep.mubr.bf16.mxu0 %v7490_v28  ;;  %3507 = vmatprep.mubr.bf16.mxu1 %v8376_v63  ;;  %v7382_v63 = vld [vmem:[%s9480_s3 + $0x84] ss:$8 sps:$4 sm:$0xff]  }
 0x1aa   : > { %4550 = vmatpush1.bf16.msra.mxu0 %v7374_v30  ;;  %v7397_v30 = vld [vmem:[%s9480_s3 + $0xd4] ss:$8 sps:$4 sm:$0xff]  }
 0x1ab   : > { %4551 = vmatprep.subr.bf16.mxu0 %v7379_v31  ;;  %v7400_v31 = vld [vmem:[%s9480_s3 + $0xe4] ss:$8 sps:$4 sm:$0xff]  }
 0x1ae   : > { %4552 = vmatpush1.bf16.msra.mxu0 %v7377_v36  ;;  %v8813_v36 = vld [vmem:[%s7594_s19 + $0x2b8] ss:$28 sps:$4 sm:$0xff]  }
 0x1af   : > { %4553 = vmatprep.subr.bf16.mxu0 %v7382_v63 }
 0x1b0   : > { %5995 = vmatmul.mubr.msk.bf16.gmra.mrb[16].mxu0 %vm2228_vm0, %v8701_v13  ;;  %3508 = vmatmul.mubr.bf16.gmra.mrb[48].mxu1 %v8401_v61  ;;  %v7383_v61 = vld [vmem:[%s9480_s3 + $0x90] ss:$8 sps:$4 sm:$0xff]  }
 0x1b1   : > { %2938 = vmatprep.mubr.bf16.mxu0 %v7490_v28  ;;  %3517 = vmatprep.mubr.bf16.mxu1 %v8406_v62  ;;  %v8729_v62 = vld [vmem:[%s7594_s19 + $0x168] ss:$28 sps:$4 sm:$0xff]  }
 0x1b2   : > { %4554 = vmatpush1.bf16.msra.mxu0 %v7380_v38 }
 0x1b3   : > { %4555 = vmatprep.subr.bf16.mxu0 %v7385_v43 }
 0x1b6   : > { %4556 = vmatpush1.bf16.msra.mxu0 %v7383_v61 }
 0x1b7   : > { %4557 = vmatprep.subr.bf16.mxu0 %v7388_v12 }
 0x1b8   : > { %5996 = vmatmul.mubr.msk.bf16.gmra.mrb[20].mxu0 %vm2228_vm0, %v8715_v15  ;;  %3518 = vmatmul.mubr.bf16.gmra.mrb[52].mxu1 %v8431_v22  ;;  %v7386_v22 = vld [vmem:[%s9480_s3 + $0xa0] ss:$8 sps:$4 sm:$0xff]  }
 0x1b9   : > { %2948 = vmatprep.mubr.bf16.mxu0 %v7490_v28  ;;  %3527 = vmatprep.mubr.bf16.mxu1 %v8436_v0  ;;  %v8743_v0 = vld [vmem:[%s7594_s19 + $0x1a0] ss:$28 sps:$4 sm:$0xff]  }
 0x1ba   : > { %4558 = vmatpush1.bf16.msra.mxu0 %v7386_v22 }
 0x1bb   : > { %4559 = vmatprep.subr.bf16.mxu0 %v7391_v41 }
 0x1c0   : > { %5997 = vmatmul.mubr.msk.bf16.gmra.mrb[24].mxu0 %vm2228_vm0, %v8729_v62  ;;  %3528 = vmatmul.mubr.bf16.gmra.mrb[56].mxu1 %v8461_v23  ;;  %v7389_v23 = vld [vmem:[%s9480_s3 + $0xb0] ss:$8 sps:$4 sm:$0xff]  }
 0x1c1   : > { %2958 = vmatprep.mubr.bf16.mxu0 %v7490_v28  ;;  %3537 = vmatprep.mubr.bf16.mxu1 %v8466_v24  ;;  %v8757_v24 = vld [vmem:[%s7594_s19 + $0x1d8] ss:$28 sps:$4 sm:$0xff]  }
 0x1c2   : > { %4560 = vmatpush1.bf16.msra.mxu0 %v7389_v23 }
 0x1c3   : > { %4561 = vmatprep.subr.bf16.mxu0 %v7394_v52 }
 0x1c8   : > { %5998 = vmatmul.mubr.msk.bf16.gmra.mrb[28].mxu0 %vm2228_vm0, %v8743_v0  ;;  %3538 = vmatmul.mubr.bf16.gmra.mrb[60].mxu1 %v8491_v4  ;;  %v7392_v4 = vld [vmem:[%s9480_s3 + $0xc0] ss:$8 sps:$4 sm:$0xff]  }
 0x1c9   : > { %2968 = vmatprep.mubr.bf16.mxu0 %v7490_v28  ;;  %3547 = vmatprep.mubr.bf16.mxu1 %v8496_v21  ;;  %v8771_v21 = vld [vmem:[%s7594_s19 + $0x210] ss:$28 sps:$4 sm:$0xff]  }
 0x1ca   : > { %4562 = vmatpush1.bf16.msra.mxu0 %v7392_v4 }
 0x1cb   : > { %4563 = vmatprep.subr.bf16.mxu0 %v7397_v30 }
 0x1d0   : > { %5999 = vmatmul.mubr.msk.bf16.gmra.mrb[32].mxu0 %vm2228_vm0, %v8757_v24  ;;  %3548 = vmatmul.mubr.bf16.gmra.mrb[64].mxu1 %v8521_v27  ;;  %v7395_v27 = vld [vmem:[%s9480_s3 + $0xd0] ss:$8 sps:$4 sm:$0xff]  }
 0x1d1   : > { %2978 = vmatprep.mubr.bf16.mxu0 %v7490_v28  ;;  %3557 = vmatprep.mubr.bf16.mxu1 %v8526_v29  ;;  %v8785_v29 = vld [vmem:[%s7594_s19 + $0x248] ss:$28 sps:$4 sm:$0xff]  }
 0x1d2   : > { %4564 = vmatpush1.bf16.msra.mxu0 %v7395_v27 }
 0x1d3   : > { %4565 = vmatprep.subr.bf16.mxu0 %v7400_v31 }
 0x1d8   : > { %6000 = vmatmul.mubr.msk.bf16.gmra.mrb[36].mxu0 %vm2228_vm0, %v8771_v21  ;;  %3558 = vmatmul.mubr.bf16.gmra.mrb[68].mxu1 %v8539_v10  ;;  %v7398_v10 = vld [vmem:[%s9480_s3 + $0xe0] ss:$8 sps:$4 sm:$0xff]  }
 0x1d9   : > { %2988 = vmatprep.mubr.bf16.mxu0 %v7490_v28  ;;  %3567 = vmatprep.mubr.bf16.mxu1 %v8544_v6  ;;  %v8799_v6 = vld [vmem:[%s7594_s19 + $0x280] ss:$28 sps:$4 sm:$0xff]  }
 0x1da   : > { %4566 = vmatpush1.bf16.msra.mxu0 %v7398_v10 }
 0x1e0   : > { %6001 = vmatmul.mubr.msk.bf16.gmra.mrb[40].mxu0 %vm2228_vm0, %v8785_v29  ;;  %3568 = vmatmul.mubr.bf16.gmra.mrb[72].mxu1 %v8557_v14  ;;  %v7403_v14 = vld [vmem:[%s9480_s3 + $0xf4] ss:$8 sps:$4 sm:$0xff]  }
 0x1e1   : > { %2998 = vmatprep.mubr.bf16.mxu0 %v7490_v28  ;;  %3577 = vmatprep.mubr.bf16.mxu1 %v8562_v26  ;;  %v7401_v26 = vld [vmem:[%s9480_s3 + $0xf0] ss:$8 sps:$4 sm:$0xff]  }
 0x1e2   : > { %4567 = vmatprep.subr.bf16.mxu0 %v7403_v14 }
 0x1e3   : > { %4568 = vmatpush1.bf16.msra.mxu0 %v7401_v26 }
 0x1e8   : > { %6002 = vmatmul.mubr.msk.bf16.gmra.mrb[44].mxu0 %vm2228_vm0, %v8799_v6  ;;  %3578 = vmatmul.mubr.bf16.gmra.mrb[76].mxu1 %v8571_v45  ;;  %v7406_v45 = vld [vmem:[%s9480_s3 + $0x104] ss:$8 sps:$4 sm:$0xff]  }
 0x1e9   : > { %3008 = vmatprep.mubr.bf16.mxu0 %v7490_v28  ;;  %3587 = vmatprep.mubr.bf16.mxu1 %v8574_v46  ;;  %v8824_v46 = vld [vmem:[%s7594_s19 + $0x2f0] ss:$28 sps:$4 sm:$0xff]  }
 0x1ea   : > { %4730 = vmatprep.subr.bf16.mxu0 %v7406_v45 }
 0x1f0   : > { %6003 = vmatmul.mubr.msk.bf16.gmra.mrb[48].mxu0 %vm2228_vm0, %v8813_v36  ;;  %3588 = vmatmul.mubr.bf16.gmra.mrb[80].mxu1 %v8581_v51  ;;  %v8832_v51 = vld [vmem:[%s7594_s19 + $0x328] ss:$28 sps:$4 sm:$0xff]  }
 0x1f1   : > { %3018 = vmatprep.mubr.bf16.mxu0 %v7490_v28  ;;  %3597 = vmatprep.mubr.bf16.mxu1 %v8584_v42  ;;  %v8840_v42 = vld [vmem:[%s7594_s19 + $0x360] ss:$28 sps:$4 sm:$0xff]  }
 0x1f8   : > { %6004 = vmatmul.mubr.msk.bf16.gmra.mrb[52].mxu0 %vm2228_vm0, %v8824_v46  ;;  %3598 = vmatmul.mubr.bf16.gmra.mrb[84].mxu1 %v8594_v58 }
 0x1f9   : > { %3028 = vmatprep.mubr.bf16.mxu0 %v7490_v28  ;;  %3607 = vmatprep.mubr.bf16.mxu1 %v8597_v59  ;;  %v8882_v59 = vld [vmem:[%s9479_s2] sm:$0xf] }
 0x200   : > { %6005 = vmatmul.mubr.msk.bf16.gmra.mrb[56].mxu0 %vm2228_vm0, %v8832_v51  ;;  %3608 = vmatmul.mubr.bf16.gmra.mrb[88].mxu1 %v8604_v1 }
 0x201   : > { %3038 = vmatprep.mubr.bf16.mxu0 %v7490_v28  ;;  %3617 = vmatprep.mubr.bf16.mxu1 %v8607_v49  ;;  %v668_v49 = vlaneseq }
 0x208   : > { %6006 = vmatmul.mubr.msk.bf16.gmra.mrb[60].mxu0 %vm2228_vm0, %v8840_v42  ;;  %3618 = vmatmul.mubr.bf16.gmra.mrb[92].mxu1 %v8614_v2 }
 0x209   : > { %3660 = vmatprep.mubr.bf16.mxu1 %v7490_v28 }
 0x210   : > { %6007 = vmatmul.mubr.msk.bf16.vlgmr.msra.gmra.mrb[32].mxu1 %vm2228_vm0, %v8621_v9 }
 0x211   : > { %3670 = vmatprep.mubr.bf16.mxu1 %v7490_v28 }
 0x218   : > { %6008 = vmatmul.mubr.msk.bf16.gmra.mrb[36].mxu1 %vm2228_vm0, %v8644_v40  ;;  %v8876_v40 = vshrl.u32 %v668_v49, 7  ;;  %v7409_v49 = vld [vmem:[%s9480_s3 + $0x114] ss:$8 sps:$4 sm:$0xff]  }
 0x219   : > { %3680 = vmatprep.mubr.bf16.mxu1 %v7490_v28 }
 0x21a   : > { %v670_v58 = vsub.s32 0, %v8876_v40  ;;  %v674_v1 = vsub.s32 1, %v8876_v40 }
 0x21c   : > { %v8891_v2 = vrot.slane %v8882_v59, %v670_v58  ;;  %v8896_v9 = vrot.slane %v8882_v59, %v674_v1 }
 0x220   : > { %6009 = vmatmul.mubr.msk.bf16.gmra.mrb[40].mxu1 %vm2228_vm0, %v8664_v33 }
 0x221   : > { %3690 = vmatprep.mubr.bf16.mxu1 %v7490_v28 }
 0x228   : > { %6010 = vmatmul.mubr.msk.bf16.gmra.mrb[44].mxu1 %vm2228_vm0, %v8684_v20 }
 0x229   : > { %3700 = vmatprep.mubr.bf16.mxu1 %v7490_v28 }
 0x230   : > { %6011 = vmatmul.mubr.msk.bf16.gmra.mrb[48].mxu1 %vm2228_vm0, %v8701_v13 }
 0x231   : > { %3710 = vmatprep.mubr.bf16.mxu1 %v7490_v28 }
 0x238   : > { %6012 = vmatmul.mubr.msk.bf16.gmra.mrb[52].mxu1 %vm2228_vm0, %v8715_v15 }
 0x239   : > { %3720 = vmatprep.mubr.bf16.mxu1 %v7490_v28 }
 0x240   : > { %6013 = vmatmul.mubr.msk.bf16.gmra.mrb[56].mxu1 %vm2228_vm0, %v8729_v62 }
 0x241   : > { %3730 = vmatprep.mubr.bf16.mxu1 %v7490_v28 }
 0x248   : > { %6014 = vmatmul.mubr.msk.bf16.gmra.mrb[60].mxu1 %vm2228_vm0, %v8743_v0 }
 0x249   : > { %3740 = vmatprep.mubr.bf16.mxu1 %v7490_v28 }
 0x250   : > { %6015 = vmatmul.mubr.msk.bf16.gmra.mrb[64].mxu1 %vm2228_vm0, %v8757_v24 }
 0x251   : > { %3750 = vmatprep.mubr.bf16.mxu1 %v7490_v28 }
 0x258   : > { %6016 = vmatmul.mubr.msk.bf16.gmra.mrb[68].mxu1 %vm2228_vm0, %v8771_v21 }
 0x259   : > { %3760 = vmatprep.mubr.bf16.mxu1 %v7490_v28 }
 0x260   : > { %6017 = vmatmul.mubr.msk.bf16.gmra.mrb[72].mxu1 %vm2228_vm0, %v8785_v29 }
 0x261   : > { %3770 = vmatprep.mubr.bf16.mxu1 %v7490_v28 }
 0x263   : > { %v2890_v33 = vpop.f32.mrb[0].mxu0 }
 0x264   : > { %v6252_v20 = vadd.f32 %v2890_v33, %v8891_v2  ;;  %v2892_v13 = vpop.f32.mrb[1].mxu0 }
 0x265   : > { %v6253_v38 = vadd.f32 %v2892_v13, %v8896_v9  ;;  %v2894_v63 = vpop.f32.mrb[2].mxu0 }
 0x266   : > { %v3821_v15 = vmul.f32 0.2, %v6252_v20  ;;  %v6254_v61 = vadd.f32 %v2894_v63, %v8891_v2  ;;  %v2896_v43 = vpop.f32.mrb[3].mxu0  ;;  %v7407_v63 = vld [vmem:[%s9480_s3 + $0x110] ss:$8 sps:$4 sm:$0xff]  }
 0x267   : > { %v3822_v62 = vmul.f32 0.2, %v6253_v38  ;;  %v6255_v22 = vadd.f32 %v2896_v43, %v8896_v9  ;;  %v7412_v43 = vld [vmem:[%s9480_s3 + $0x124] ss:$8 sps:$4 sm:$0xff]  }
 0x268   : > { %v3825_v12 = vmul.f32 0.2, %v6254_v61  ;;  %6018 = vmatmul.mubr.msk.bf16.gmra.mrb[76].mxu1 %vm2228_vm0, %v8799_v6  ;;  %v3949_v23 = vmax.f32 %v6252_v20, %v3821_v15  ;;  %v7404_v6 = vld [vmem:[%s9480_s3 + $0x100] ss:$8 sps:$4 sm:$0xff]  }
 0x269   : > { %v3826_v0 = vmul.f32 0.2, %v6255_v22  ;;  %3780 = vmatprep.mubr.bf16.mxu1 %v7490_v28  ;;  %v3950_v24 = vmax.f32 %v6253_v38, %v3822_v62 }
 0x26a   : > { %v3953_v41 = vmax.f32 %v6254_v61, %v3825_v12 }
 0x26b   : > { %v3954_v4 = vmax.f32 %v6255_v22, %v3826_v0  ;;  %v2900_v52 = vpop.f32.mrb[4].mxu0 }
 0x26c   : > { %v4077_v21 = vpack.c.bf16 %v3953_v41, %v3949_v23  ;;  %v6256_v27 = vadd.f32 %v2900_v52, %v8891_v2  ;;  %v2902_v30 = vpop.f32.mrb[5].mxu0  ;;  %v7410_v52 = vld [vmem:[%s9480_s3 + $0x120] ss:$8 sps:$4 sm:$0xff]  }
 0x26d   : > { %v6257_v29 = vadd.f32 %v2902_v30, %v8896_v9  ;;  %v2904_v10 = vpop.f32.mrb[6].mxu0  ;;  %v4078_v31 = vpack.c.bf16 %v3954_v4, %v3950_v24 }
 0x26e   : > { %v3829_v14 = vmul.f32 0.2, %v6256_v27  ;;  %v6258_v26 = vadd.f32 %v2904_v10, %v8891_v2  ;;  %v2906_v45 = vpop.f32.mrb[7].mxu0 }
 0x26f   : > { %v3830_v33 = vmul.f32 0.2, %v6257_v29  ;;  %v6259_v20 = vadd.f32 %v2906_v45, %v8896_v9  ;;  %4569 = vmatprep.mubr.bf16.mxu0 %v4078_v31 }
 0x270   : > { %v3833_v13 = vmul.f32 0.2, %v6258_v26  ;;  %6019 = vmatmul.mubr.msk.bf16.gmra.mrb[80].mxu1 %vm2228_vm0, %v8813_v36  ;;  %4570 = vmatmul.mubr.bf16.vlgmr.msra.gmra.mrb[64].mxu0 %v4077_v21  ;;  %v3957_v15 = vmax.f32 %v6256_v27, %v3829_v14 }
 0x271   : > { %v3834_v38 = vmul.f32 0.2, %v6259_v20  ;;  %4731 = vmatpush1.bf16.msra.mxu0 %v7404_v6  ;;  %3790 = vmatprep.mubr.bf16.mxu1 %v7490_v28  ;;  %v3958_v62 = vmax.f32 %v6257_v29, %v3830_v33  ;;  %v7415_v29 = vld [vmem:[%s9480_s3 + $0x134] ss:$8 sps:$4 sm:$0xff]   ;;  %v7418_v33 = vld [vmem:[%s9480_s3 + $0x144] ss:$8 sps:$4 sm:$0xff]  }
 0x272   : > { %v3961_v61 = vmax.f32 %v6258_v26, %v3833_v13  ;;  %4732 = vmatprep.subr.bf16.mxu0 %v7409_v49  ;;  %v7413_v26 = vld [vmem:[%s9480_s3 + $0x130] ss:$8 sps:$4 sm:$0xff]  }
 0x273   : > { %v3962_v22 = vmax.f32 %v6259_v20, %v3834_v38  ;;  %v2910_v12 = vpop.f32.mrb[8].mxu0 }
 0x274   : > { %v6260_v36 = vadd.f32 %v2910_v12, %v8891_v2  ;;  %v2912_v0 = vpop.f32.mrb[9].mxu0  ;;  %v4081_v23 = vpack.c.bf16 %v3961_v61, %v3957_v15 }
 0x275   : > { %v6261_v41 = vadd.f32 %v2912_v0, %v8896_v9  ;;  %v2914_v24 = vpop.f32.mrb[10].mxu0  ;;  %v4082_v4 = vpack.c.bf16 %v3962_v22, %v3958_v62  ;;  %4733 = vmatpush1.bf16.msra.mxu0 %v7407_v63  ;;  %v7416_v22 = vld [vmem:[%s9480_s3 + $0x140] ss:$8 sps:$4 sm:$0xff]  }
 0x276   : > { %v3837_v21 = vmul.f32 0.2, %v6260_v36  ;;  %v6262_v27 = vadd.f32 %v2914_v24, %v8891_v2  ;;  %v2916_v30 = vpop.f32.mrb[11].mxu0  ;;  %4734 = vmatprep.subr.bf16.mxu0 %v7412_v43 }
 0x277   : > { %v3838_v10 = vmul.f32 0.2, %v6261_v41  ;;  %v6263_v31 = vadd.f32 %v2916_v30, %v8896_v9  ;;  %4579 = vmatprep.mubr.bf16.mxu0 %v4082_v4 }
 0x278   : > { %v3841_v6 = vmul.f32 0.2, %v6262_v27  ;;  %6020 = vmatmul.mubr.msk.bf16.gmra.mrb[84].mxu1 %vm2228_vm0, %v8824_v46  ;;  %4580 = vmatmul.mubr.bf16.gmra.mrb[68].mxu0 %v4081_v23  ;;  %v3965_v45 = vmax.f32 %v6260_v36, %v3837_v21  ;;  %v7421_v23 = vld [vmem:[%s9480_s3 + $0x154] ss:$8 sps:$4 sm:$0xff]   ;;  %v7419_v21 = vld [vmem:[%s9480_s3 + $0x150] ss:$8 sps:$4 sm:$0xff]  }
 0x279   : > { %v3842_v14 = vmul.f32 0.2, %v6263_v31  ;;  %3800 = vmatprep.mubr.bf16.mxu1 %v7490_v28  ;;  %4735 = vmatpush1.bf16.msra.mxu0 %v7410_v52  ;;  %v3966_v20 = vmax.f32 %v6261_v41, %v3838_v10 }
 0x27a   : > { %v3969_v49 = vmax.f32 %v6262_v27, %v3841_v6  ;;  %4736 = vmatprep.subr.bf16.mxu0 %v7415_v29  ;;  %v7424_v29 = vld [vmem:[%s9480_s3 + $0x164] ss:$8 sps:$4 sm:$0xff]  }
 0x27b   : > { %v3970_v13 = vmax.f32 %v6263_v31, %v3842_v14  ;;  %v2920_v38 = vpop.f32.mrb[12].mxu0 }
 0x27c   : > { %v6264_v46 = vadd.f32 %v2920_v38, %v8891_v2  ;;  %v2922_v63 = vpop.f32.mrb[13].mxu0  ;;  %v4085_v15 = vpack.c.bf16 %v3969_v49, %v3965_v45 }
 0x27d   : > { %v6265_v61 = vadd.f32 %v2922_v63, %v8896_v9  ;;  %v2924_v43 = vpop.f32.mrb[14].mxu0  ;;  %v4086_v62 = vpack.c.bf16 %v3970_v13, %v3966_v20  ;;  %4737 = vmatpush1.bf16.msra.mxu0 %v7413_v26 }
 0x27e   : > { %v3845_v12 = vmul.f32 0.2, %v6264_v46  ;;  %v6266_v36 = vadd.f32 %v2924_v43, %v8891_v2  ;;  %v2926_v0 = vpop.f32.mrb[15].mxu0  ;;  %4738 = vmatprep.subr.bf16.mxu0 %v7418_v33  ;;  %v7422_v33 = vld [vmem:[%s9480_s3 + $0x160] ss:$8 sps:$4 sm:$0xff]  }
 0x27f   : > { %v3846_v41 = vmul.f32 0.2, %v6265_v61  ;;  %v6267_v24 = vadd.f32 %v2926_v0, %v8896_v9  ;;  %4589 = vmatprep.mubr.bf16.mxu0 %v4086_v62  ;;  %v7425_v62 = vld [vmem:[%s9480_s3 + $0x170] ss:$8 sps:$4 sm:$0xff]  }
 0x280   : > { %v3849_v4 = vmul.f32 0.2, %v6266_v36  ;;  %6021 = vmatmul.mubr.msk.bf16.gmra.mrb[88].mxu1 %vm2228_vm0, %v8832_v51  ;;  %4590 = vmatmul.mubr.bf16.gmra.mrb[72].mxu0 %v4085_v15  ;;  %v3973_v27 = vmax.f32 %v6264_v46, %v3845_v12  ;;  %v7427_v46 = vld [vmem:[%s9480_s3 + $0x174] ss:$8 sps:$4 sm:$0xff]  }
 0x281   : > { %v3850_v52 = vmul.f32 0.2, %v6267_v24  ;;  %3810 = vmatprep.mubr.bf16.mxu1 %v7490_v28  ;;  %4739 = vmatpush1.bf16.msra.mxu0 %v7416_v22  ;;  %v3974_v10 = vmax.f32 %v6265_v61, %v3846_v41 }
 0x282   : > { %v3977_v30 = vmax.f32 %v6266_v36, %v3849_v4  ;;  %4740 = vmatprep.subr.bf16.mxu0 %v7421_v23  ;;  %v7430_v36 = vld [vmem:[%s9480_s3 + $0x184] ss:$8 sps:$4 sm:$0xff]  }
 0x283   : > { %v3978_v31 = vmax.f32 %v6267_v24, %v3850_v52  ;;  %v2930_v6 = vpop.f32.mrb[16].mxu0 }
 0x284   : > { %v6268_v51 = vadd.f32 %v2930_v6, %v8891_v2  ;;  %v2932_v14 = vpop.f32.mrb[17].mxu0  ;;  %v4089_v26 = vpack.c.bf16 %v3977_v30, %v3973_v27  ;;  %v7428_v30 = vld [vmem:[%s9480_s3 + $0x180] ss:$8 sps:$4 sm:$0xff]   ;;  %v7433_v6 = vld [vmem:[%s9480_s3 + $0x194] ss:$8 sps:$4 sm:$0xff]  }
 0x285   : > { %v6269_v28 = vadd.f32 %v2932_v14, %v8896_v9  ;;  %v2934_v45 = vpop.f32.mrb[18].mxu0  ;;  %v4090_v49 = vpack.c.bf16 %v3978_v31, %v3974_v10  ;;  %4741 = vmatpush1.bf16.msra.mxu0 %v7419_v21 }
 0x286   : > { %v3853_v20 = vmul.f32 0.2, %v6268_v51  ;;  %v6270_v13 = vadd.f32 %v2934_v45, %v8891_v2  ;;  %v2936_v38 = vpop.f32.mrb[19].mxu0  ;;  %4742 = vmatprep.subr.bf16.mxu0 %v7424_v29  ;;  %v7431_v45 = vld [vmem:[%s9480_s3 + $0x190] ss:$8 sps:$4 sm:$0xff]  }
 0x287   : > { %v3854_v63 = vmul.f32 0.2, %v6269_v28  ;;  %v6271_v15 = vadd.f32 %v2936_v38, %v8896_v9  ;;  %4599 = vmatprep.mubr.bf16.mxu0 %v4090_v49 }
 0x288   : > { %v3857_v61 = vmul.f32 0.2, %v6270_v13  ;;  %6022 = vmatmul.mubr.msk.bf16.gmra.mrb[92].mxu1 %vm2228_vm0, %v8840_v42  ;;  %4600 = vmatmul.mubr.bf16.gmra.mrb[76].mxu0 %v4089_v26  ;;  %v3981_v22 = vmax.f32 %v6268_v51, %v3853_v20  ;;  %v7436_v20 = vld [vmem:[%s9480_s3 + $0x1a4] ss:$8 sps:$4 sm:$0xff]  }
 0x289   : > { %v3858_v43 = vmul.f32 0.2, %v6271_v15  ;;  %4743 = vmatpush1.bf16.msra.mxu0 %v7422_v33  ;;  %v3982_v0 = vmax.f32 %v6269_v28, %v3854_v63 }
 0x28a   : > { %v3985_v12 = vmax.f32 %v6270_v13, %v3857_v61  ;;  %4744 = vmatprep.subr.bf16.mxu0 %v7427_v46 }
 0x28b   : > { %v3986_v23 = vmax.f32 %v6271_v15, %v3858_v43  ;;  %v2940_v41 = vpop.f32.mrb[20].mxu0 }
 0x28c   : > { %v6272_v24 = vadd.f32 %v2940_v41, %v8891_v2  ;;  %v2942_v42 = vpop.f32.mrb[21].mxu0  ;;  %v4093_v4 = vpack.c.bf16 %v3985_v12, %v3981_v22  ;;  %v7434_v12 = vld [vmem:[%s9480_s3 + $0x1a0] ss:$8 sps:$4 sm:$0xff]   ;;  %v7439_v41 = vld [vmem:[%s9480_s3 + $0x1b4] ss:$8 sps:$4 sm:$0xff]  }
 0x28d   : > { %v6273_v52 = vadd.f32 %v2942_v42, %v8896_v9  ;;  %v2944_v21 = vpop.f32.mrb[22].mxu0  ;;  %v4094_v27 = vpack.c.bf16 %v3986_v23, %v3982_v0  ;;  %4745 = vmatpush1.bf16.msra.mxu0 %v7425_v62 }
 0x28e   : > { %v3861_v29 = vmul.f32 0.2, %v6272_v24  ;;  %v6274_v10 = vadd.f32 %v2944_v21, %v8891_v2  ;;  %v2946_v31 = vpop.f32.mrb[23].mxu0  ;;  %4746 = vmatprep.subr.bf16.mxu0 %v7430_v36  ;;  %v7437_v21 = vld [vmem:[%s9480_s3 + $0x1b0] ss:$8 sps:$4 sm:$0xff]  }
 0x28f   : > { %v3862_v51 = vmul.f32 0.2, %v6273_v52  ;;  %v6275_v14 = vadd.f32 %v2946_v31, %v8896_v9  ;;  %4609 = vmatprep.mubr.bf16.mxu0 %v4094_v27 }
 0x290   : > { %v3865_v26 = vmul.f32 0.2, %v6274_v10  ;;  %4610 = vmatmul.mubr.bf16.gmra.mrb[80].mxu0 %v4093_v4  ;;  %v3989_v49 = vmax.f32 %v6272_v24, %v3861_v29  ;;  %v7442_v29 = vld [vmem:[%s9480_s3 + $0x1c4] ss:$8 sps:$4 sm:$0xff]  }
 0x291   : > { %v3866_v28 = vmul.f32 0.2, %v6275_v14  ;;  %4747 = vmatpush1.bf16.msra.mxu0 %v7428_v30  ;;  %v3990_v13 = vmax.f32 %v6273_v52, %v3862_v51 }
 0x292   : > { %v3993_v33 = vmax.f32 %v6274_v10, %v3865_v26  ;;  %4748 = vmatprep.subr.bf16.mxu0 %v7433_v6 }
 0x293   : > { %v3994_v38 = vmax.f32 %v6275_v14, %v3866_v28  ;;  %v2950_v46 = vpop.f32.mrb[24].mxu0 }
 0x294   : > { %v6276_v63 = vadd.f32 %v2950_v46, %v8891_v2  ;;  %v2952_v15 = vpop.f32.mrb[25].mxu0  ;;  %v4097_v61 = vpack.c.bf16 %v3993_v33, %v3989_v49  ;;  %v7440_v33 = vld [vmem:[%s9480_s3 + $0x1c0] ss:$8 sps:$4 sm:$0xff]   ;;  %v7445_v46 = vld [vmem:[%s9480_s3 + $0x1d4] ss:$8 sps:$4 sm:$0xff]  }
 0x295   : > { %v6277_v43 = vadd.f32 %v2952_v15, %v8896_v9  ;;  %v2954_v62 = vpop.f32.mrb[26].mxu0  ;;  %v4098_v22 = vpack.c.bf16 %v3994_v38, %v3990_v13  ;;  %4749 = vmatpush1.bf16.msra.mxu0 %v7431_v45 }
 0x296   : > { %v3869_v36 = vmul.f32 0.2, %v6276_v63  ;;  %v6278_v0 = vadd.f32 %v2954_v62, %v8891_v2  ;;  %v2956_v23 = vpop.f32.mrb[27].mxu0  ;;  %4750 = vmatprep.subr.bf16.mxu0 %v7436_v20  ;;  %v7443_v62 = vld [vmem:[%s9480_s3 + $0x1d0] ss:$8 sps:$4 sm:$0xff]  }
 0x297   : > { %v3870_v24 = vmul.f32 0.2, %v6277_v43  ;;  %v6279_v42 = vadd.f32 %v2956_v23, %v8896_v9  ;;  %4619 = vmatprep.mubr.bf16.mxu0 %v4098_v22  ;;  %v2392_v22 = vadd.f32 %v8363_v34, %v8891_v2  ;;  %v2394_v23 = vadd.f32 %v8368_v37, %v8896_v9  ;;  %v7446_v37 = vld [vmem:[%s9480_s3 + $0x1e0] ss:$8 sps:$4 sm:$0xff]  }
 0x298   : > { %v3873_v4 = vmul.f32 0.2, %v6278_v0  ;;  %4620 = vmatmul.mubr.bf16.gmra.mrb[84].mxu0 %v4097_v61  ;;  %v3997_v27 = vmax.f32 %v6276_v63, %v3869_v36  ;;  %v2398_v34 = vadd.f32 %v8378_v32, %v8896_v9 }
 0x299   : > { %v3874_v52 = vmul.f32 0.2, %v6279_v42  ;;  %4751 = vmatpush1.bf16.msra.mxu0 %v7434_v12  ;;  %v3998_v10 = vmax.f32 %v6277_v43, %v3870_v24 }
 0x29a   : > { %v4001_v30 = vmax.f32 %v6278_v0, %v3873_v4  ;;  %4752 = vmatprep.subr.bf16.mxu0 %v7439_v41  ;;  %v7448_v0 = vld [vmem:[%s9480_s3 + $0x1e4] ss:$8 sps:$4 sm:$0xff]   ;;  %v2396_v4 = vadd.f32 %v8373_v55, %v8891_v2  ;;  %v7451_v55 = vld [vmem:[%s9480_s3 + $0x1f4] ss:$8 sps:$4 sm:$0xff]  }
 0x29b   : > { %v4002_v31 = vmax.f32 %v6279_v42, %v3874_v52  ;;  %v2960_v6 = vpop.f32.mrb[28].mxu0 }
 0x29c   : > { %v6280_v51 = vadd.f32 %v2960_v6, %v8891_v2  ;;  %v2962_v14 = vpop.f32.mrb[29].mxu0  ;;  %v4101_v26 = vpack.c.bf16 %v4001_v30, %v3997_v27 }
 0x29d   : > { %v6281_v28 = vadd.f32 %v2962_v14, %v8896_v9  ;;  %v2964_v45 = vpop.f32.mrb[30].mxu0  ;;  %v4102_v49 = vpack.c.bf16 %v4002_v31, %v3998_v10  ;;  %4753 = vmatpush1.bf16.msra.mxu0 %v7437_v21 }
 0x29e   : > { %v3877_v20 = vmul.f32 0.2, %v6280_v51  ;;  %v6282_v13 = vadd.f32 %v2964_v45, %v8891_v2  ;;  %v2966_v38 = vpop.f32.mrb[31].mxu0  ;;  %4754 = vmatprep.subr.bf16.mxu0 %v7442_v29  ;;  %v7449_v45 = vld [vmem:[%s9480_s3 + $0x1f0] ss:$8 sps:$4 sm:$0xff]  }
 0x29f   : > { %v3878_v63 = vmul.f32 0.2, %v6281_v28  ;;  %v6283_v15 = vadd.f32 %v2966_v38, %v8896_v9  ;;  %4629 = vmatprep.mubr.bf16.mxu0 %v4102_v49  ;;  %v2402_v49 = vadd.f32 %v8393_v50, %v8891_v2 }
 0x2a0   : > { %v3881_v61 = vmul.f32 0.2, %v6282_v13  ;;  %4630 = vmatmul.mubr.bf16.gmra.mrb[88].mxu0 %v4101_v26  ;;  %v4005_v12 = vmax.f32 %v6280_v51, %v3877_v20 }
 0x2a1   : > { %v3882_v43 = vmul.f32 0.2, %v6283_v15  ;;  %4755 = vmatpush1.bf16.msra.mxu0 %v7440_v33  ;;  %v4006_v41 = vmax.f32 %v6281_v28, %v3878_v63 }
 0x2a2   : > { %v4009_v36 = vmax.f32 %v6282_v13, %v3881_v61  ;;  %4756 = vmatprep.subr.bf16.mxu0 %v7445_v46  ;;  %v2404_v13 = vadd.f32 %v8398_v8, %v8896_v9 }
 0x2a3   : > { %v4010_v24 = vmax.f32 %v6283_v15, %v3882_v43  ;;  %v2970_v42 = vpop.f32.mrb[32].mxu0  ;;  %v2406_v15 = vadd.f32 %v8403_v3, %v8891_v2  ;;  %v2412_v3 = vadd.f32 %v8423_v11, %v8891_v2 }
 0x2a4   : > { %v6285_v52 = vadd.f32 %v2970_v42, %v2392_v22  ;;  %v2972_v21 = vpop.f32.mrb[33].mxu0  ;;  %v4105_v27 = vpack.c.bf16 %v4009_v36, %v4005_v12  ;;  %v2408_v22 = vadd.f32 %v8408_v44, %v8896_v9  ;;  %v2414_v44 = vadd.f32 %v8428_v57, %v8896_v9 }
 0x2a5   : > { %v6287_v30 = vadd.f32 %v2972_v21, %v2394_v23  ;;  %v2974_v29 = vpop.f32.mrb[34].mxu0  ;;  %v4106_v10 = vpack.c.bf16 %v4010_v24, %v4006_v41  ;;  %4757 = vmatpush1.bf16.msra.mxu0 %v7443_v62 }
 0x2a6   : > { %v3885_v31 = vmul.f32 0.2, %v6285_v52  ;;  %v6289_v6 = vadd.f32 %v2974_v29, %v2396_v4  ;;  %v2976_v51 = vpop.f32.mrb[35].mxu0  ;;  %4758 = vmatprep.subr.bf16.mxu0 %v7448_v0  ;;  %v2416_v29 = vadd.f32 %v8433_v16, %v8891_v2  ;;  %v2422_v16 = vadd.f32 %v8453_v17, %v8891_v2 }
 0x2a7   : > { %v3886_v14 = vmul.f32 0.2, %v6287_v30  ;;  %v6291_v26 = vadd.f32 %v2976_v51, %v2398_v34  ;;  %4639 = vmatprep.mubr.bf16.mxu0 %v4106_v10 }
 0x2a8   : > { %v3889_v32 = vmul.f32 0.2, %v6289_v6  ;;  %4640 = vmatmul.mubr.bf16.gmra.mrb[92].mxu0 %v4105_v27  ;;  %v4013_v33 = vmax.f32 %v6285_v52, %v3885_v31 }
 0x2a9   : > { %v3890_v28 = vmul.f32 0.2, %v6291_v26  ;;  %4759 = vmatpush1.bf16.msra.mxu0 %v7446_v37  ;;  %v4014_v38 = vmax.f32 %v6287_v30, %v3886_v14 }
 0x2aa   : > { %v4017_v20 = vmax.f32 %v6289_v6, %v3889_v32  ;;  %4760 = vmatprep.subr.bf16.mxu0 %v7451_v55  ;;  %v2418_v6 = vadd.f32 %v8438_v54, %v8896_v9  ;;  %v2424_v54 = vadd.f32 %v8458_v56, %v8896_v9 }
 0x2ab   : > { %v4018_v46 = vmax.f32 %v6291_v26, %v3890_v28  ;;  %v2980_v63 = vpop.f32.mrb[36].mxu0 }
 0x2ac   : > { %v6293_v61 = vadd.f32 %v2980_v63, %v2402_v49  ;;  %v2982_v43 = vpop.f32.mrb[37].mxu0  ;;  %v4109_v62 = vpack.c.bf16 %v4017_v20, %v4013_v33  ;;  %v2426_v63 = vadd.f32 %v8463_v5, %v8891_v2  ;;  %v2432_v5 = vadd.f32 %v8483_v60, %v8891_v2 }
 0x2ad   : > { %v6295_v12 = vadd.f32 %v2982_v43, %v2404_v13  ;;  %v2984_v50 = vpop.f32.mrb[38].mxu0  ;;  %v4110_v36 = vpack.c.bf16 %v4018_v46, %v4014_v38  ;;  %4761 = vmatpush1.bf16.msra.mxu0 %v7449_v45 }
 0x2ae   : > { %v3893_v0 = vmul.f32 0.2, %v6293_v61  ;;  %v6297_v23 = vadd.f32 %v2984_v50, %v2406_v15  ;;  %v2986_v41 = vpop.f32.mrb[39].mxu0 }
 0x2af   : > { %v3894_v8 = vmul.f32 0.2, %v6295_v12  ;;  %v6299_v24 = vadd.f32 %v2986_v41, %v2408_v22  ;;  %4649 = vmatprep.mubr.bf16.mxu0 %v4110_v36 }
 0x2b0   : > { %v3897_v42 = vmul.f32 0.2, %v6297_v23  ;;  %4650 = vmatmul.mubr.bf16.gmra.mrb[96].mxu0 %v4109_v62  ;;  %v4021_v52 = vmax.f32 %v6293_v61, %v3893_v0  ;;  %v2428_v62 = vadd.f32 %v8468_v7, %v8896_v9  ;;  %v2434_v7 = vadd.f32 %v8488_v53, %v8896_v9 }
 0x2b1   : > { %v3898_v4 = vmul.f32 0.2, %v6299_v24  ;;  %v4022_v27 = vmax.f32 %v6295_v12, %v3894_v8 }
 0x2b2   : > { %v4025_v21 = vmax.f32 %v6297_v23, %v3897_v42 }
 0x2b3   : > { %v4026_v34 = vmax.f32 %v6299_v24, %v3898_v4  ;;  %v2990_v30 = vpop.f32.mrb[40].mxu0 }
 0x2b4   : > { %v6301_v10 = vadd.f32 %v2990_v30, %v2412_v3  ;;  %v2992_v37 = vpop.f32.mrb[41].mxu0  ;;  %v4113_v31 = vpack.c.bf16 %v4025_v21, %v4021_v52  ;;  %v2436_v21 = vadd.f32 %v8493_v18, %v8891_v2  ;;  %v2438_v30 = vadd.f32 %v8498_v19, %v8896_v9 }
 0x2b5   : > { %v6303_v51 = vadd.f32 %v2992_v37, %v2414_v44  ;;  %v2994_v55 = vpop.f32.mrb[42].mxu0  ;;  %v4114_v11 = vpack.c.bf16 %v4026_v34, %v4022_v27  ;;  %v2442_v18 = vadd.f32 %v8513_v25, %v8891_v2  ;;  %v2444_v19 = vadd.f32 %v8518_v47, %v8896_v9 }
 0x2b6   : > { %v3901_v14 = vmul.f32 0.2, %v6301_v10  ;;  %v6305_v26 = vadd.f32 %v2994_v55, %v2416_v29  ;;  %v2996_v32 = vpop.f32.mrb[43].mxu0 }
 0x2b7   : > { %v3902_v28 = vmul.f32 0.2, %v6303_v51  ;;  %v6307_v57 = vadd.f32 %v2996_v32, %v2418_v6  ;;  %4659 = vmatprep.mubr.bf16.mxu0 %v4114_v11 }
 0x2b8   : > { %v3905_v45 = vmul.f32 0.2, %v6305_v26  ;;  %4660 = vmatmul.mubr.bf16.gmra.mrb[100].mxu0 %v4113_v31  ;;  %v4029_v33 = vmax.f32 %v6301_v10, %v3901_v14 }
 0x2b9   : > { %v3906_v49 = vmul.f32 0.2, %v6307_v57  ;;  %v4030_v13 = vmax.f32 %v6303_v51, %v3902_v28 }
 0x2ba   : > { %v4033_v20 = vmax.f32 %v6305_v26, %v3905_v45  ;;  %v2446_v45 = vadd.f32 %v8523_v48, %v8891_v2  ;;  %v9494_v48 = vld [vmem:[#allocation3_spill] sm:$0xff] }
 0x2bb   : > { %v4034_v38 = vmax.f32 %v6307_v57, %v3906_v49  ;;  %v3000_v46 = vpop.f32.mrb[44].mxu0 }
 0x2bc   : > { %v6309_v15 = vadd.f32 %v3000_v46, %v2422_v16  ;;  %v3002_v61 = vpop.f32.mrb[45].mxu0  ;;  %v4117_v43 = vpack.c.bf16 %v4033_v20, %v4029_v33  ;;  %v2448_v20 = vadd.f32 %v8528_v35, %v8896_v9 }
 0x2bd   : > { %v6311_v22 = vadd.f32 %v3002_v61, %v2424_v54  ;;  %v3004_v12 = vpop.f32.mrb[46].mxu0  ;;  %v4118_v17 = vpack.c.bf16 %v4034_v38, %v4030_v13 }
 0x2be   : > { %v3909_v50 = vmul.f32 0.2, %v6309_v15  ;;  %v6313_v36 = vadd.f32 %v3004_v12, %v2426_v63  ;;  %v3006_v0 = vpop.f32.mrb[47].mxu0 }
 0x2bf   : > { %v3910_v23 = vmul.f32 0.2, %v6311_v22  ;;  %v6315_v56 = vadd.f32 %v3006_v0, %v2428_v62  ;;  %4669 = vmatprep.mubr.bf16.mxu0 %v4118_v17  ;;  %v2452_v62 = vadd.f32 %v9494_v48, %v8891_v2  ;;  %v9495_v17 = vld [vmem:[#allocation4_spill] sm:$0xff] }
 0x2c0   : > { %v3913_v41 = vmul.f32 0.2, %v6313_v36  ;;  %4670 = vmatmul.mubr.bf16.gmra.mrb[104].mxu0 %v4117_v43  ;;  %v4037_v24 = vmax.f32 %v6309_v15, %v3909_v50  ;;  %v2454_v35 = vadd.f32 %v9495_v17, %v8896_v9 }
 0x2c1   : > { %v3914_v8 = vmul.f32 0.2, %v6315_v56  ;;  %v4038_v4 = vmax.f32 %v6311_v22, %v3910_v23  ;;  %v7452_v23 = vld [vmem:[%s9482_s5 + $0x40] sm:$0xff]  }
 0x2c2   : > { %v4041_v42 = vmax.f32 %v6313_v36, %v3913_v41  ;;  %v9496_v41 = vld [vmem:[#allocation5_spill] sm:$0xff]  ;;  %6108 = vmatprep.subr.bf16.mxu1 %v7452_v23 }
 0x2c3   : > { %v4042_v3 = vmax.f32 %v6315_v56, %v3914_v8  ;;  %v3010_v52 = vpop.f32.mrb[48].mxu0  ;;  %v7453_v56 = vld [vmem:[%s9482_s5] sm:$0xff]   ;;  %v2456_v8 = vadd.f32 %v9496_v41, %v8891_v2 }
 0x2c4   : > { %v6317_v44 = vadd.f32 %v3010_v52, %v2432_v5  ;;  %v3012_v27 = vpop.f32.mrb[49].mxu0  ;;  %v4121_v34 = vpack.c.bf16 %v4041_v42, %v4037_v24  ;;  %6109 = vmatpush3.bf16.msra.mxu1 %v7453_v56 }
 0x2c5   : > { %v6319_v29 = vadd.f32 %v3012_v27, %v2434_v7  ;;  %v3014_v10 = vpop.f32.mrb[50].mxu0  ;;  %v4122_v60 = vpack.c.bf16 %v4042_v3, %v4038_v4  ;;  %v9497_v7 = vld [vmem:[#allocation6_spill] sm:$0xff] }
 0x2c6   : > { %v3917_v37 = vmul.f32 0.2, %v6317_v44  ;;  %v6321_v31 = vadd.f32 %v3014_v10, %v2436_v21  ;;  %v3016_v6 = vpop.f32.mrb[51].mxu0  ;;  %v2458_v4 = vadd.f32 %v9497_v7, %v8896_v9  ;;  %v7457_v7 = vld [vmem:[%s9482_s5 + $0x10] sm:$0xff]  }
 0x2c7   : > { %v3918_v51 = vmul.f32 0.2, %v6319_v29  ;;  %v6323_v53 = vadd.f32 %v3016_v6, %v2438_v30  ;;  %4679 = vmatprep.mubr.bf16.mxu0 %v4122_v60 }
 0x2c8   : > { %v3921_v55 = vmul.f32 0.2, %v6321_v31  ;;  %4680 = vmatmul.mubr.bf16.gmra.mrb[108].mxu0 %v4121_v34  ;;  %v4045_v14 = vmax.f32 %v6317_v44, %v3917_v37  ;;  %v2462_v37 = vadd.f32 %v8552_v39, %v8891_v2 }
 0x2c9   : > { %v3922_v11 = vmul.f32 0.2, %v6323_v53  ;;  %v4046_v32 = vmax.f32 %v6319_v29, %v3918_v51  ;;  %v9498_v51 = vld [vmem:[#allocation7_spill] sm:$0xff] }
 0x2ca   : > { %v4049_v26 = vmax.f32 %v6321_v31, %v3921_v55 }
 0x2cb   : > { %v4050_v28 = vmax.f32 %v6323_v53, %v3922_v11  ;;  %v3020_v57 = vpop.f32.mrb[52].mxu0  ;;  %v2464_v53 = vadd.f32 %v9498_v51, %v8896_v9 }
 0x2cc   : > { %v6325_v49 = vadd.f32 %v3020_v57, %v2442_v18  ;;  %v3022_v16 = vpop.f32.mrb[53].mxu0  ;;  %v4125_v33 = vpack.c.bf16 %v4049_v26, %v4045_v14  ;;  %v9499_v14 = vld [vmem:[#allocation8_spill] sm:$0xff]  ;;  %v678_v57 = vsub.s32 2, %v8876_v40 }
 0x2cd   : > { %v6327_v54 = vadd.f32 %v3022_v16, %v2444_v19  ;;  %v3024_v13 = vpop.f32.mrb[54].mxu0  ;;  %v4126_v25 = vpack.c.bf16 %v4050_v28, %v4046_v32  ;;  %v2466_v26 = vadd.f32 %v9499_v14, %v8891_v2 }
 0x2ce   : > { %v3925_v38 = vmul.f32 0.2, %v6325_v49  ;;  %v6329_v46 = vadd.f32 %v3024_v13, %v2446_v45  ;;  %v3026_v63 = vpop.f32.mrb[55].mxu0  ;;  %v9500_v45 = vld [vmem:[#allocation9_spill] sm:$0xff] }
 0x2cf   : > { %v3926_v15 = vmul.f32 0.2, %v6327_v54  ;;  %v6331_v47 = vadd.f32 %v3026_v63, %v2448_v20  ;;  %4689 = vmatprep.mubr.bf16.mxu0 %v4126_v25  ;;  %v682_v20 = vsub.s32 3, %v8876_v40  ;;  %v9110_v63 = vrot.slane %v8882_v59, %v678_v57 }
 0x2d0   : > { %v3929_v61 = vmul.f32 0.2, %v6329_v46  ;;  %4690 = vmatmul.mubr.bf16.gmra.mrb[112].mxu0 %v4125_v33  ;;  %v4053_v22 = vmax.f32 %v6325_v49, %v3925_v38  ;;  %v2468_v49 = vadd.f32 %v9500_v45, %v8896_v9 }
 0x2d1   : > { %v3930_v43 = vmul.f32 0.2, %v6331_v47  ;;  %v4054_v50 = vmax.f32 %v6327_v54, %v3926_v15 }
 0x2d2   : > { %v4057_v12 = vmax.f32 %v6329_v46, %v3929_v61 }
 0x2d3   : > { %v4058_v36 = vmax.f32 %v6331_v47, %v3930_v43  ;;  %v3030_v0 = vpop.f32.mrb[56].mxu0  ;;  %v9113_v47 = vrot.slane %v8882_v59, %v682_v20 }
 0x2d4   : > { %v6333_v5 = vadd.f32 %v3030_v0, %v2452_v62  ;;  %v3032_v24 = vpop.f32.mrb[57].mxu0  ;;  %v4129_v42 = vpack.c.bf16 %v4057_v12, %v4053_v22  ;;  %v7454_v22 = vld [vmem:[%s9482_s5 + $0x48] sm:$0xff]  }
 0x2d5   : > { %v6335_v3 = vadd.f32 %v3032_v24, %v2454_v35  ;;  %v3034_v52 = vpop.f32.mrb[58].mxu0  ;;  %v4130_v21 = vpack.c.bf16 %v4058_v36, %v4054_v50  ;;  %v7455_v12 = vld [vmem:[%s9482_s5 + $0x8] sm:$0xff]   ;;  %6110 = vmatprep.subr.bf16.mxu1 %v7454_v22 }
 0x2d6   : > { %v3933_v44 = vmul.f32 0.2, %v6333_v5  ;;  %v6337_v27 = vadd.f32 %v3034_v52, %v2456_v8  ;;  %v3036_v34 = vpop.f32.mrb[59].mxu0  ;;  %6111 = vmatpush3.bf16.msra.mxu1 %v7455_v12  ;;  %v7466_v12 = vld [vmem:[%s9482_s5 + $0x78] sm:$0xff]  }
 0x2d7   : > { %v3934_v30 = vmul.f32 0.2, %v6335_v3  ;;  %v6339_v29 = vadd.f32 %v3036_v34, %v2458_v4  ;;  %4699 = vmatprep.mubr.bf16.mxu0 %v4130_v21  ;;  %v7458_v4 = vld [vmem:[%s9482_s5 + $0x58] sm:$0xff]  }
 0x2d8   : > { %v3937_v10 = vmul.f32 0.2, %v6337_v27  ;;  %4700 = vmatmul.mubr.bf16.gmra.mrb[116].mxu0 %v4129_v42  ;;  %v4061_v31 = vmax.f32 %v6333_v5, %v3933_v44  ;;  %v7456_v42 = vld [vmem:[%s9482_s5 + $0x50] sm:$0xff]  }
 0x2d9   : > { %v3938_v60 = vmul.f32 0.2, %v6339_v29  ;;  %v4062_v55 = vmax.f32 %v6335_v3, %v3934_v30  ;;  %6112 = vmatprep.subr.bf16.mxu1 %v7456_v42  ;;  %v7459_v30 = vld [vmem:[%s9482_s5 + $0x18] sm:$0xff]  }
 0x2da   : > { %v4065_v6 = vmax.f32 %v6337_v27, %v3937_v10  ;;  %6113 = vmatpush3.bf16.msra.mxu1 %v7457_v7 }
 0x2db   : > { %v4066_v11 = vmax.f32 %v6339_v29, %v3938_v60  ;;  %v3040_v18 = vpop.f32.mrb[60].mxu0  ;;  %6114 = vmatprep.subr.bf16.mxu1 %v7458_v4 }
 0x2dc   : > { %v6341_v19 = vadd.f32 %v3040_v18, %v2462_v37  ;;  %v3042_v32 = vpop.f32.mrb[61].mxu0  ;;  %v4133_v28 = vpack.c.bf16 %v4065_v6, %v4061_v31  ;;  %v7460_v37 = vld [vmem:[%s9482_s5 + $0x60] sm:$0xff]  }
 0x2dd   : > { %v6343_v39 = vadd.f32 %v3042_v32, %v2464_v53  ;;  %v3044_v16 = vpop.f32.mrb[62].mxu0  ;;  %v4134_v33 = vpack.c.bf16 %v4066_v11, %v4062_v55  ;;  %v7462_v32 = vld [vmem:[%s9482_s5 + $0x68] sm:$0xff]  }
 0x2de   : > { %v3941_v54 = vmul.f32 0.2, %v6341_v19  ;;  %v6345_v13 = vadd.f32 %v3044_v16, %v2466_v26  ;;  %v3046_v25 = vpop.f32.mrb[63].mxu0  ;;  %6115 = vmatpush3.bf16.msra.mxu1 %v7459_v30  ;;  %v7461_v26 = vld [vmem:[%s9482_s5 + $0x20] sm:$0xff]  }
 0x2df   : > { %v3942_v38 = vmul.f32 0.2, %v6343_v39  ;;  %v6347_v46 = vadd.f32 %v3046_v25, %v2468_v49  ;;  %4709 = vmatprep.mubr.bf16.mxu0 %v4134_v33  ;;  %6116 = vmatprep.subr.bf16.mxu1 %v7460_v37  ;;  %v7463_v33 = vld [vmem:[%s9482_s5 + $0x28] sm:$0xff]   ;;  %v7464_v25 = vld [vmem:[%s9482_s5 + $0x70] sm:$0xff]  }
 0x2e0   : > { %v3945_v2 = vmul.f32 0.2, %v6345_v13  ;;  %4710 = vmatmul.mubr.bf16.gmra.mrb[120].mxu0 %v4133_v28  ;;  %v4069_v9 = vmax.f32 %v6341_v19, %v3941_v54 }
 0x2e1   : > { %v3946_v15 = vmul.f32 0.2, %v6347_v46  ;;  %v4070_v43 = vmax.f32 %v6343_v39, %v3942_v38 }
 0x2e2   : > { %v4073_v61 = vmax.f32 %v6345_v13, %v3945_v2  ;;  %6117 = vmatpush3.bf16.msra.mxu1 %v7461_v26 }
 0x2e3   : > { %v4074_v48 = vmax.f32 %v6347_v46, %v3946_v15  ;;  %v3662_v62 = vpop.f32.mrb[32].mxu1  ;;  %6118 = vmatprep.subr.bf16.mxu1 %v7462_v32 }
 0x2e4   : > { %v6348_v17 = vadd.f32 %v3662_v62, %v9110_v63  ;;  %v3664_v35 = vpop.f32.mrb[33].mxu1  ;;  %v4137_v50 = vpack.c.bf16 %v4073_v61, %v4069_v9  ;;  %v7465_v62 = vld [vmem:[%s9482_s5 + $0x30] sm:$0xff]  }
 0x2e5   : > { %v6349_v59 = vadd.f32 %v3664_v35, %v9113_v47  ;;  %v3666_v36 = vpop.f32.mrb[34].mxu1  ;;  %v4138_v0 = vpack.c.bf16 %v4074_v48, %v4070_v43 }
 0x2e6   : > { %v3823_v23 = vmul.f32 0.2, %v6348_v17  ;;  %v6350_v56 = vadd.f32 %v3666_v36, %v9110_v63  ;;  %v3668_v41 = vpop.f32.mrb[35].mxu1  ;;  %6119 = vmatpush3.bf16.msra.mxu1 %v7463_v33 }
 0x2e7   : > { %v3824_v8 = vmul.f32 0.2, %v6349_v59  ;;  %v6351_v5 = vadd.f32 %v3668_v41, %v9113_v47  ;;  %4719 = vmatprep.mubr.bf16.mxu0 %v4138_v0  ;;  %6120 = vmatprep.subr.bf16.mxu1 %v7464_v25 }
 0x2e8   : > { %v3827_v24 = vmul.f32 0.2, %v6350_v56  ;;  %4720 = vmatmul.mubr.bf16.gmra.mrb[124].mxu0 %v4137_v50  ;;  %v3951_v52 = vmax.f32 %v6348_v17, %v3823_v23  ;;  %v7467_v23 = vld [vmem:[%s9482_s5 + $0x38] sm:$0xff]  }
 0x2e9   : > { %v3828_v3 = vmul.f32 0.2, %v6351_v5  ;;  %v3952_v44 = vmax.f32 %v6349_v59, %v3824_v8 }
 0x2ea   : > { %v3955_v21 = vmax.f32 %v6350_v56, %v3827_v24  ;;  %6121 = vmatpush3.bf16.msra.mxu1 %v7465_v62 }
 0x2eb   : > { %v3956_v27 = vmax.f32 %v6351_v5, %v3828_v3  ;;  %v3672_v34 = vpop.f32.mrb[36].mxu1  ;;  %6122 = vmatprep.subr.bf16.mxu1 %v7466_v12 }
 0x2ec   : > { %v4079_v29 = vpack.c.bf16 %v3955_v21, %v3951_v52  ;;  %v6352_v10 = vadd.f32 %v3672_v34, %v9110_v63  ;;  %v3674_v60 = vpop.f32.mrb[37].mxu1 }
 0x2ed   : > { %v6353_v31 = vadd.f32 %v3674_v60, %v9113_v47  ;;  %v3676_v6 = vpop.f32.mrb[38].mxu1  ;;  %v4080_v51 = vpack.c.bf16 %v3956_v27, %v3952_v44 }
 0x2ee   : > { %v3831_v53 = vmul.f32 0.2, %v6352_v10  ;;  %v6354_v55 = vadd.f32 %v3676_v6, %v9110_v63  ;;  %v3678_v11 = vpop.f32.mrb[39].mxu1  ;;  %6123 = vmatpush3.bf16.msra.mxu1 %v7467_v23 }
 0x2ef   : > { %v3832_v18 = vmul.f32 0.2, %v6353_v31  ;;  %v6355_v14 = vadd.f32 %v3678_v11, %v9113_v47  ;;  %4762 = vmatprep.mubr.bf16.mxu0 %v4080_v51 }
 0x2f0   : > { %v3835_v19 = vmul.f32 0.2, %v6354_v55  ;;  %4763 = vmatmul.mubr.bf16.vlgmr.msra.gmra.mrb[64].mxu0 %v4079_v29  ;;  %v3959_v57 = vmax.f32 %v6352_v10, %v3831_v53 }
 0x2f1   : > { %v3836_v28 = vmul.f32 0.2, %v6355_v14  ;;  %v3960_v49 = vmax.f32 %v6353_v31, %v3832_v18 }
 0x2f2   : > { %v3963_v45 = vmax.f32 %v6354_v55, %v3835_v19 }
 0x2f3   : > { %v3964_v39 = vmax.f32 %v6355_v14, %v3836_v28  ;;  %v3682_v16 = vpop.f32.mrb[40].mxu1 }
 0x2f4   : > { %v6356_v20 = vadd.f32 %v3682_v16, %v9110_v63  ;;  %v3684_v54 = vpop.f32.mrb[41].mxu1  ;;  %v4083_v13 = vpack.c.bf16 %v3963_v45, %v3959_v57 }
 0x2f5   : > { %v6357_v38 = vadd.f32 %v3684_v54, %v9113_v47  ;;  %v3686_v46 = vpop.f32.mrb[42].mxu1  ;;  %v4084_v2 = vpack.c.bf16 %v3964_v39, %v3960_v49 }
 0x2f6   : > { %v3839_v15 = vmul.f32 0.2, %v6356_v20  ;;  %v6358_v9 = vadd.f32 %v3686_v46, %v9110_v63  ;;  %v3688_v61 = vpop.f32.mrb[43].mxu1 }
 0x2f7   : > { %v3840_v43 = vmul.f32 0.2, %v6357_v38  ;;  %v6359_v48 = vadd.f32 %v3688_v61, %v9113_v47  ;;  %4772 = vmatprep.mubr.bf16.mxu0 %v4084_v2 }
 0x2f8   : > { %v3843_v22 = vmul.f32 0.2, %v6358_v9  ;;  %4773 = vmatmul.mubr.bf16.gmra.mrb[68].mxu0 %v4083_v13  ;;  %v3967_v35 = vmax.f32 %v6356_v20, %v3839_v15 }
 0x2f9   : > { %v3844_v17 = vmul.f32 0.2, %v6359_v48  ;;  %v3968_v59 = vmax.f32 %v6357_v38, %v3840_v43 }
 0x2fa   : > { %v3971_v50 = vmax.f32 %v6358_v9, %v3843_v22 }
 0x2fb   : > { %v3972_v36 = vmax.f32 %v6359_v48, %v3844_v17  ;;  %v3692_v0 = vpop.f32.mrb[44].mxu1 }
 0x2fc   : > { %v6360_v56 = vadd.f32 %v3692_v0, %v9110_v63  ;;  %v3694_v41 = vpop.f32.mrb[45].mxu1  ;;  %v4087_v8 = vpack.c.bf16 %v3971_v50, %v3967_v35 }
 0x2fd   : > { %v6361_v5 = vadd.f32 %v3694_v41, %v9113_v47  ;;  %v3696_v24 = vpop.f32.mrb[46].mxu1  ;;  %v4088_v42 = vpack.c.bf16 %v3972_v36, %v3968_v59 }
 0x2fe   : > { %v3847_v7 = vmul.f32 0.2, %v6360_v56  ;;  %v6362_v4 = vadd.f32 %v3696_v24, %v9110_v63  ;;  %v3698_v3 = vpop.f32.mrb[47].mxu1 }
 0x2ff   : > { %v3848_v52 = vmul.f32 0.2, %v6361_v5  ;;  %v6363_v21 = vadd.f32 %v3698_v3, %v9113_v47  ;;  %4782 = vmatprep.mubr.bf16.mxu0 %v4088_v42 }
 0x300   : > { %v3851_v44 = vmul.f32 0.2, %v6362_v4  ;;  %4783 = vmatmul.mubr.bf16.gmra.mrb[72].mxu0 %v4087_v8  ;;  %v3975_v34 = vmax.f32 %v6360_v56, %v3847_v7 }
 0x301   : > { %v3852_v27 = vmul.f32 0.2, %v6363_v21  ;;  %v3976_v29 = vmax.f32 %v6361_v5, %v3848_v52 }
 0x302   : > { %v3979_v30 = vmax.f32 %v6362_v4, %v3851_v44 }
 0x303   : > { %v3980_v10 = vmax.f32 %v6363_v21, %v3852_v27  ;;  %v3702_v60 = vpop.f32.mrb[48].mxu1 }
 0x304   : > { %v6364_v37 = vadd.f32 %v3702_v60, %v9110_v63  ;;  %v3704_v31 = vpop.f32.mrb[49].mxu1  ;;  %v4091_v6 = vpack.c.bf16 %v3979_v30, %v3975_v34 }
 0x305   : > { %v6365_v51 = vadd.f32 %v3704_v31, %v9113_v47  ;;  %v3706_v53 = vpop.f32.mrb[50].mxu1  ;;  %v4092_v55 = vpack.c.bf16 %v3980_v10, %v3976_v29 }
 0x306   : > { %v3855_v11 = vmul.f32 0.2, %v6364_v37  ;;  %v6366_v18 = vadd.f32 %v3706_v53, %v9110_v63  ;;  %v3708_v14 = vpop.f32.mrb[51].mxu1 }
 0x307   : > { %v3856_v26 = vmul.f32 0.2, %v6365_v51  ;;  %v6367_v19 = vadd.f32 %v3708_v14, %v9113_v47  ;;  %4792 = vmatprep.mubr.bf16.mxu0 %v4092_v55 }
 0x308   : > { %v3859_v32 = vmul.f32 0.2, %v6366_v18  ;;  %4793 = vmatmul.mubr.bf16.gmra.mrb[76].mxu0 %v4091_v6  ;;  %v3983_v57 = vmax.f32 %v6364_v37, %v3855_v11 }
 0x309   : > { %v3860_v28 = vmul.f32 0.2, %v6367_v19  ;;  %v3984_v49 = vmax.f32 %v6365_v51, %v3856_v26 }
 0x30a   : > { %v3987_v45 = vmax.f32 %v6366_v18, %v3859_v32 }
 0x30b   : > { %v3988_v39 = vmax.f32 %v6367_v19, %v3860_v28  ;;  %v3712_v16 = vpop.f32.mrb[52].mxu1 }
 0x30c   : > { %v6368_v33 = vadd.f32 %v3712_v16, %v9110_v63  ;;  %v3714_v20 = vpop.f32.mrb[53].mxu1  ;;  %v4095_v54 = vpack.c.bf16 %v3987_v45, %v3983_v57 }
 0x30d   : > { %v6369_v13 = vadd.f32 %v3714_v20, %v9113_v47  ;;  %v3716_v25 = vpop.f32.mrb[54].mxu1  ;;  %v4096_v38 = vpack.c.bf16 %v3988_v39, %v3984_v49 }
 0x30e   : > { %v3863_v46 = vmul.f32 0.2, %v6368_v33  ;;  %v6370_v2 = vadd.f32 %v3716_v25, %v9110_v63  ;;  %v3718_v15 = vpop.f32.mrb[55].mxu1 }
 0x30f   : > { %v3864_v9 = vmul.f32 0.2, %v6369_v13  ;;  %v6371_v61 = vadd.f32 %v3718_v15, %v9113_v47  ;;  %4802 = vmatprep.mubr.bf16.mxu0 %v4096_v38 }
 0x310   : > { %v3867_v43 = vmul.f32 0.2, %v6370_v2  ;;  %4803 = vmatmul.mubr.bf16.gmra.mrb[80].mxu0 %v4095_v54  ;;  %v3991_v62 = vmax.f32 %v6368_v33, %v3863_v46 }
 0x311   : > { %v3868_v48 = vmul.f32 0.2, %v6371_v61  ;;  %v3992_v12 = vmax.f32 %v6369_v13, %v3864_v9 }
 0x312   : > { %v3995_v22 = vmax.f32 %v6370_v2, %v3867_v43 }
 0x313   : > { %v3996_v17 = vmax.f32 %v6371_v61, %v3868_v48  ;;  %v3722_v35 = vpop.f32.mrb[56].mxu1 }
 0x314   : > { %v6372_v50 = vadd.f32 %v3722_v35, %v9110_v63  ;;  %v3724_v59 = vpop.f32.mrb[57].mxu1  ;;  %v4099_v36 = vpack.c.bf16 %v3995_v22, %v3991_v62 }
 0x315   : > { %v6373_v0 = vadd.f32 %v3724_v59, %v9113_v47  ;;  %v3726_v23 = vpop.f32.mrb[58].mxu1  ;;  %v4100_v56 = vpack.c.bf16 %v3996_v17, %v3992_v12 }
 0x316   : > { %v3871_v41 = vmul.f32 0.2, %v6372_v50  ;;  %v6374_v8 = vadd.f32 %v3726_v23, %v9110_v63  ;;  %v3728_v5 = vpop.f32.mrb[59].mxu1 }
 0x317   : > { %v3872_v24 = vmul.f32 0.2, %v6373_v0  ;;  %v6375_v42 = vadd.f32 %v3728_v5, %v9113_v47  ;;  %4812 = vmatprep.mubr.bf16.mxu0 %v4100_v56 }
 0x318   : > { %v3875_v7 = vmul.f32 0.2, %v6374_v8  ;;  %4813 = vmatmul.mubr.bf16.gmra.mrb[84].mxu0 %v4099_v36  ;;  %v3999_v3 = vmax.f32 %v6372_v50, %v3871_v41 }
 0x319   : > { %v3876_v4 = vmul.f32 0.2, %v6375_v42  ;;  %v4000_v21 = vmax.f32 %v6373_v0, %v3872_v24 }
 0x31a   : > { %v4003_v52 = vmax.f32 %v6374_v8, %v3875_v7 }
 0x31b   : > { %v4004_v44 = vmax.f32 %v6375_v42, %v3876_v4  ;;  %v3732_v27 = vpop.f32.mrb[60].mxu1 }
 0x31c   : > { %v6376_v34 = vadd.f32 %v3732_v27, %v9110_v63  ;;  %v3734_v30 = vpop.f32.mrb[61].mxu1  ;;  %v4103_v29 = vpack.c.bf16 %v4003_v52, %v3999_v3 }
 0x31d   : > { %v6377_v10 = vadd.f32 %v3734_v30, %v9113_v47  ;;  %v3736_v60 = vpop.f32.mrb[62].mxu1  ;;  %v4104_v37 = vpack.c.bf16 %v4004_v44, %v4000_v21 }
 0x31e   : > { %v3879_v31 = vmul.f32 0.2, %v6376_v34  ;;  %v6378_v6 = vadd.f32 %v3736_v60, %v9110_v63  ;;  %v3738_v51 = vpop.f32.mrb[63].mxu1 }
 0x31f   : > { %v3880_v53 = vmul.f32 0.2, %v6377_v10  ;;  %v6379_v55 = vadd.f32 %v3738_v51, %v9113_v47  ;;  %4822 = vmatprep.mubr.bf16.mxu0 %v4104_v37 }
 0x320   : > { %v3883_v11 = vmul.f32 0.2, %v6378_v6  ;;  %4823 = vmatmul.mubr.bf16.gmra.mrb[88].mxu0 %v4103_v29  ;;  %v4007_v14 = vmax.f32 %v6376_v34, %v3879_v31 }
 0x321   : > { %v3884_v18 = vmul.f32 0.2, %v6379_v55  ;;  %v4008_v19 = vmax.f32 %v6377_v10, %v3880_v53 }
 0x322   : > { %v4011_v26 = vmax.f32 %v6378_v6, %v3883_v11 }
 0x323   : > { %v4012_v32 = vmax.f32 %v6379_v55, %v3884_v18  ;;  %v3742_v28 = vpop.f32.mrb[64].mxu1 }
 0x324   : > { %v6380_v57 = vadd.f32 %v3742_v28, %v9110_v63  ;;  %v3744_v45 = vpop.f32.mrb[65].mxu1  ;;  %v4107_v49 = vpack.c.bf16 %v4011_v26, %v4007_v14 }
 0x325   : > { %v6381_v39 = vadd.f32 %v3744_v45, %v9113_v47  ;;  %v3746_v16 = vpop.f32.mrb[66].mxu1  ;;  %v4108_v33 = vpack.c.bf16 %v4012_v32, %v4008_v19 }
 0x326   : > { %v3887_v20 = vmul.f32 0.2, %v6380_v57  ;;  %v6382_v54 = vadd.f32 %v3746_v16, %v9110_v63  ;;  %v3748_v13 = vpop.f32.mrb[67].mxu1 }
 0x327   : > { %v3888_v25 = vmul.f32 0.2, %v6381_v39  ;;  %v6383_v38 = vadd.f32 %v3748_v13, %v9113_v47  ;;  %4832 = vmatprep.mubr.bf16.mxu0 %v4108_v33 }
 0x328   : > { %v3891_v46 = vmul.f32 0.2, %v6382_v54  ;;  %4833 = vmatmul.mubr.bf16.gmra.mrb[92].mxu0 %v4107_v49  ;;  %v4015_v15 = vmax.f32 %v6380_v57, %v3887_v20 }
 0x329   : > { %v3892_v2 = vmul.f32 0.2, %v6383_v38  ;;  %v4016_v61 = vmax.f32 %v6381_v39, %v3888_v25 }
 0x32a   : > { %v4019_v9 = vmax.f32 %v6382_v54, %v3891_v46 }
 0x32b   : > { %v4020_v43 = vmax.f32 %v6383_v38, %v3892_v2  ;;  %v3752_v48 = vpop.f32.mrb[68].mxu1 }
 0x32c   : > { %v6384_v62 = vadd.f32 %v3752_v48, %v9110_v63  ;;  %v3754_v22 = vpop.f32.mrb[69].mxu1  ;;  %v4111_v12 = vpack.c.bf16 %v4019_v9, %v4015_v15 }
 0x32d   : > { %v6385_v17 = vadd.f32 %v3754_v22, %v9113_v47  ;;  %v3756_v35 = vpop.f32.mrb[70].mxu1  ;;  %v4112_v50 = vpack.c.bf16 %v4020_v43, %v4016_v61 }
 0x32e   : > { %v3895_v59 = vmul.f32 0.2, %v6384_v62  ;;  %v6386_v36 = vadd.f32 %v3756_v35, %v9110_v63  ;;  %v3758_v0 = vpop.f32.mrb[71].mxu1 }
 0x32f   : > { %v3896_v23 = vmul.f32 0.2, %v6385_v17  ;;  %v6387_v56 = vadd.f32 %v3758_v0, %v9113_v47  ;;  %4842 = vmatprep.mubr.bf16.mxu0 %v4112_v50 }
 0x330   : > { %v3899_v41 = vmul.f32 0.2, %v6386_v36  ;;  %4843 = vmatmul.mubr.bf16.gmra.mrb[96].mxu0 %v4111_v12  ;;  %v4023_v5 = vmax.f32 %v6384_v62, %v3895_v59 }
 0x331   : > { %v3900_v8 = vmul.f32 0.2, %v6387_v56  ;;  %v4024_v42 = vmax.f32 %v6385_v17, %v3896_v23 }
 0x332   : > { %v4027_v24 = vmax.f32 %v6386_v36, %v3899_v41 }
 0x333   : > { %v4028_v7 = vmax.f32 %v6387_v56, %v3900_v8  ;;  %v3762_v4 = vpop.f32.mrb[72].mxu1 }
 0x334   : > { %v6388_v3 = vadd.f32 %v3762_v4, %v9110_v63  ;;  %v3764_v52 = vpop.f32.mrb[73].mxu1  ;;  %v4115_v21 = vpack.c.bf16 %v4027_v24, %v4023_v5 }
 0x335   : > { %v6389_v44 = vadd.f32 %v3764_v52, %v9113_v47  ;;  %v3766_v27 = vpop.f32.mrb[74].mxu1  ;;  %v4116_v34 = vpack.c.bf16 %v4028_v7, %v4024_v42 }
 0x336   : > { %v3903_v30 = vmul.f32 0.2, %v6388_v3  ;;  %v6390_v29 = vadd.f32 %v3766_v27, %v9110_v63  ;;  %v3768_v10 = vpop.f32.mrb[75].mxu1 }
 0x337   : > { %v3904_v60 = vmul.f32 0.2, %v6389_v44  ;;  %v6391_v37 = vadd.f32 %v3768_v10, %v9113_v47  ;;  %4852 = vmatprep.mubr.bf16.mxu0 %v4116_v34 }
 0x338   : > { %v3907_v31 = vmul.f32 0.2, %v6390_v29  ;;  %4853 = vmatmul.mubr.bf16.gmra.mrb[100].mxu0 %v4115_v21  ;;  %v4031_v51 = vmax.f32 %v6388_v3, %v3903_v30 }
 0x339   : > { %v3908_v6 = vmul.f32 0.2, %v6391_v37  ;;  %v4032_v55 = vmax.f32 %v6389_v44, %v3904_v60 }
 0x33a   : > { %v4035_v53 = vmax.f32 %v6390_v29, %v3907_v31 }
 0x33b   : > { %v4036_v11 = vmax.f32 %v6391_v37, %v3908_v6  ;;  %v3772_v18 = vpop.f32.mrb[76].mxu1 }
 0x33c   : > { %v6392_v14 = vadd.f32 %v3772_v18, %v9110_v63  ;;  %v3774_v26 = vpop.f32.mrb[77].mxu1  ;;  %v4119_v19 = vpack.c.bf16 %v4035_v53, %v4031_v51 }
 0x33d   : > { %v6393_v32 = vadd.f32 %v3774_v26, %v9113_v47  ;;  %v3776_v28 = vpop.f32.mrb[78].mxu1  ;;  %v4120_v57 = vpack.c.bf16 %v4036_v11, %v4032_v55 }
 0x33e   : > { %v3911_v45 = vmul.f32 0.2, %v6392_v14  ;;  %v6394_v49 = vadd.f32 %v3776_v28, %v9110_v63  ;;  %v3778_v39 = vpop.f32.mrb[79].mxu1 }
 0x33f   : > { %v3912_v16 = vmul.f32 0.2, %v6393_v32  ;;  %v6395_v33 = vadd.f32 %v3778_v39, %v9113_v47  ;;  %4862 = vmatprep.mubr.bf16.mxu0 %v4120_v57 }
 0x340   : > { %v3915_v20 = vmul.f32 0.2, %v6394_v49  ;;  %4863 = vmatmul.mubr.bf16.gmra.mrb[104].mxu0 %v4119_v19  ;;  %v4039_v13 = vmax.f32 %v6392_v14, %v3911_v45 }
 0x341   : > { %v3916_v54 = vmul.f32 0.2, %v6395_v33  ;;  %v4040_v38 = vmax.f32 %v6393_v32, %v3912_v16 }
 0x342   : > { %v4043_v25 = vmax.f32 %v6394_v49, %v3915_v20 }
 0x343   : > { %v4044_v46 = vmax.f32 %v6395_v33, %v3916_v54  ;;  %v3782_v2 = vpop.f32.mrb[80].mxu1 }
 0x344   : > { %v6396_v15 = vadd.f32 %v3782_v2, %v9110_v63  ;;  %v3784_v9 = vpop.f32.mrb[81].mxu1  ;;  %v4123_v61 = vpack.c.bf16 %v4043_v25, %v4039_v13 }
 0x345   : > { %v6397_v43 = vadd.f32 %v3784_v9, %v9113_v47  ;;  %v3786_v48 = vpop.f32.mrb[82].mxu1  ;;  %v4124_v62 = vpack.c.bf16 %v4044_v46, %v4040_v38 }
 0x346   : > { %v3919_v22 = vmul.f32 0.2, %v6396_v15  ;;  %v6398_v12 = vadd.f32 %v3786_v48, %v9110_v63  ;;  %v3788_v17 = vpop.f32.mrb[83].mxu1 }
 0x347   : > { %v3920_v35 = vmul.f32 0.2, %v6397_v43  ;;  %v6399_v50 = vadd.f32 %v3788_v17, %v9113_v47  ;;  %4872 = vmatprep.mubr.bf16.mxu0 %v4124_v62 }
 0x348   : > { %v3923_v59 = vmul.f32 0.2, %v6398_v12  ;;  %4873 = vmatmul.mubr.bf16.gmra.mrb[108].mxu0 %v4123_v61  ;;  %v4047_v0 = vmax.f32 %v6396_v15, %v3919_v22 }
 0x349   : > { %v3924_v36 = vmul.f32 0.2, %v6399_v50  ;;  %v4048_v56 = vmax.f32 %v6397_v43, %v3920_v35 }
 0x34a   : > { %v4051_v23 = vmax.f32 %v6398_v12, %v3923_v59 }
 0x34b   : > { %v4052_v41 = vmax.f32 %v6399_v50, %v3924_v36  ;;  %v3792_v8 = vpop.f32.mrb[84].mxu1 }
 0x34c   : > { %v6400_v5 = vadd.f32 %v3792_v8, %v9110_v63  ;;  %v3794_v24 = vpop.f32.mrb[85].mxu1  ;;  %v4127_v42 = vpack.c.bf16 %v4051_v23, %v4047_v0 }
 0x34d   : > { %v6401_v7 = vadd.f32 %v3794_v24, %v9113_v47  ;;  %v3796_v4 = vpop.f32.mrb[86].mxu1  ;;  %v4128_v3 = vpack.c.bf16 %v4052_v41, %v4048_v56 }
 0x34e   : > { %v3927_v52 = vmul.f32 0.2, %v6400_v5  ;;  %v6402_v21 = vadd.f32 %v3796_v4, %v9110_v63  ;;  %v3798_v44 = vpop.f32.mrb[87].mxu1 }
 0x34f   : > { %v3928_v27 = vmul.f32 0.2, %v6401_v7  ;;  %v6403_v34 = vadd.f32 %v3798_v44, %v9113_v47  ;;  %4882 = vmatprep.mubr.bf16.mxu0 %v4128_v3 }
 0x350   : > { %v3931_v30 = vmul.f32 0.2, %v6402_v21  ;;  %4883 = vmatmul.mubr.bf16.gmra.mrb[112].mxu0 %v4127_v42  ;;  %v4055_v10 = vmax.f32 %v6400_v5, %v3927_v52 }
 0x351   : > { %v3932_v29 = vmul.f32 0.2, %v6403_v34  ;;  %v4056_v37 = vmax.f32 %v6401_v7, %v3928_v27 }
 0x352   : > { %v4059_v60 = vmax.f32 %v6402_v21, %v3931_v30 }
 0x353   : > { %v4060_v31 = vmax.f32 %v6403_v34, %v3932_v29  ;;  %v3802_v6 = vpop.f32.mrb[88].mxu1 }
 0x354   : > { %v6404_v51 = vadd.f32 %v3802_v6, %v9110_v63  ;;  %v3804_v53 = vpop.f32.mrb[89].mxu1  ;;  %v4131_v55 = vpack.c.bf16 %v4059_v60, %v4055_v10 }
 0x355   : > { %v6405_v11 = vadd.f32 %v3804_v53, %v9113_v47  ;;  %v3806_v18 = vpop.f32.mrb[90].mxu1  ;;  %v4132_v14 = vpack.c.bf16 %v4060_v31, %v4056_v37 }
 0x356   : > { %v3935_v26 = vmul.f32 0.2, %v6404_v51  ;;  %v6406_v19 = vadd.f32 %v3806_v18, %v9110_v63  ;;  %v3808_v32 = vpop.f32.mrb[91].mxu1 }
 0x357   : > { %v3936_v28 = vmul.f32 0.2, %v6405_v11  ;;  %v6407_v57 = vadd.f32 %v3808_v32, %v9113_v47  ;;  %4892 = vmatprep.mubr.bf16.mxu0 %v4132_v14 }
 0x358   : > { %v3939_v45 = vmul.f32 0.2, %v6406_v19  ;;  %4893 = vmatmul.mubr.bf16.gmra.mrb[116].mxu0 %v4131_v55  ;;  %v4063_v39 = vmax.f32 %v6404_v51, %v3935_v26 }
 0x359   : > { %v3940_v49 = vmul.f32 0.2, %v6407_v57  ;;  %v4064_v33 = vmax.f32 %v6405_v11, %v3936_v28 }
 0x35a   : > { %v4067_v16 = vmax.f32 %v6406_v19, %v3939_v45 }
 0x35b   : > { %v4068_v20 = vmax.f32 %v6407_v57, %v3940_v49  ;;  %v3812_v54 = vpop.f32.mrb[92].mxu1 }
 0x35c   : > { %v6408_v13 = vadd.f32 %v3812_v54, %v9110_v63  ;;  %v3814_v25 = vpop.f32.mrb[93].mxu1  ;;  %v4135_v38 = vpack.c.bf16 %v4067_v16, %v4063_v39 }
 0x35d   : > { %v6409_v46 = vadd.f32 %v3814_v25, %v9113_v47  ;;  %v3816_v2 = vpop.f32.mrb[94].mxu1  ;;  %v4136_v15 = vpack.c.bf16 %v4068_v20, %v4064_v33 }
 0x35e   : > { %v3943_v9 = vmul.f32 0.2, %v6408_v13  ;;  %v6410_v61 = vadd.f32 %v3816_v2, %v9110_v63  ;;  %v3818_v43 = vpop.f32.mrb[95].mxu1  ;;  %v4205_v63 = vld [vmem:[%s9481_s4] sm:$0x3] }
 0x35f   : > { %v3944_v48 = vmul.f32 0.2, %v6409_v46  ;;  %v6411_v62 = vadd.f32 %v3818_v43, %v9113_v47  ;;  %4902 = vmatprep.mubr.bf16.mxu0 %v4136_v15  ;;  %v9226_v23 = vrot.slane %v4205_v63, %v670_v58  ;;  %v9230_v47 = vrot.slane %v4205_v63, %v674_v1 }
 0x360   : > { %v3947_v22 = vmul.f32 0.2, %v6410_v61  ;;  %4903 = vmatmul.mubr.bf16.gmra.mrb[120].mxu0 %v4135_v38  ;;  %v4071_v17 = vmax.f32 %v6408_v13, %v3943_v9 }
 0x361   : > { %v3948_v12 = vmul.f32 0.2, %v6411_v62  ;;  %v4072_v50 = vmax.f32 %v6409_v46, %v3944_v48 }
 0x362   : > { %v4075_v35 = vmax.f32 %v6410_v61, %v3947_v22 }
 0x363   : > { %v4076_v59 = vmax.f32 %v6411_v62, %v3948_v12 }
 0x364   : > { %v4139_v36 = vpack.c.bf16 %v4075_v35, %v4071_v17 }
 0x365   : > { %v4140_v0 = vpack.c.bf16 %v4076_v59, %v4072_v50 }
 0x367   : > { %4912 = vmatprep.mubr.bf16.mxu0 %v4140_v0 }
 0x368   : > { %4913 = vmatmul.mubr.bf16.gmra.mrb[124].mxu0 %v4139_v36 }
 0x3c3   : > { %v4764_v56 = vpop.f32.mrb[64].mxu0 }
 0x3c4   : > { %v6412_v41 = vadd.f32 %v4764_v56, %v9226_v23  ;;  %v4766_v8 = vpop.f32.mrb[65].mxu0 }
 0x3c5   : > { %v6413_v5 = vadd.f32 %v4766_v8, %v9230_v47  ;;  %v4768_v24 = vpop.f32.mrb[66].mxu0 }
 0x3c6   : > { %v4923_v42 = vmul.f32 0.2, %v6412_v41  ;;  %v6414_v7 = vadd.f32 %v4768_v24, %v9226_v23  ;;  %v4770_v4 = vpop.f32.mrb[67].mxu0 }
 0x3c7   : > { %v4924_v3 = vmul.f32 0.2, %v6413_v5  ;;  %v6415_v52 = vadd.f32 %v4770_v4, %v9230_v47 }
 0x3c8   : > { %v4925_v58 = vmul.f32 0.2, %v6414_v7  ;;  %v4987_v44 = vmax.f32 %v6412_v41, %v4923_v42 }
 0x3c9   : > { %v4926_v21 = vmul.f32 0.2, %v6415_v52  ;;  %v4988_v1 = vmax.f32 %v6413_v5, %v4924_v3 }
 0x3ca   : > { %v4989_v40 = vmax.f32 %v6414_v7, %v4925_v58 }
 0x3cb   : > { %v4990_v27 = vmax.f32 %v6415_v52, %v4926_v21  ;;  %v4774_v34 = vpop.f32.mrb[68].mxu0 }
 0x3cc   : > { %v5051_v30 = vpack.c.bf16 %v4989_v40, %v4987_v44  ;;  %v6416_v29 = vadd.f32 %v4774_v34, %v9226_v23  ;;  %v4776_v10 = vpop.f32.mrb[69].mxu0 }
 0x3cd   : > { %v6417_v60 = vadd.f32 %v4776_v10, %v9230_v47  ;;  %v4778_v37 = vpop.f32.mrb[70].mxu0  ;;  %v5052_v31 = vpack.c.bf16 %v4990_v27, %v4988_v1 }
 0x3ce   : > { %v4927_v6 = vmul.f32 0.2, %v6416_v29  ;;  %v6418_v51 = vadd.f32 %v4778_v37, %v9226_v23  ;;  %v4780_v53 = vpop.f32.mrb[71].mxu0 }
 0x3cf   : > { %v4928_v55 = vmul.f32 0.2, %v6417_v60  ;;  %v6419_v11 = vadd.f32 %v4780_v53, %v9230_v47  ;;  %5250 = vmatprep.mubr.bf16.mxu1 %v5052_v31 }
 0x3d0   : > { %v4929_v18 = vmul.f32 0.2, %v6418_v51  ;;  %5251 = vmatmul.mubr.bf16.vlgmr.msra.gmra.mrb[96].mxu1 %v5051_v30  ;;  %v4991_v26 = vmax.f32 %v6416_v29, %v4927_v6 }
 0x3d1   : > { %v4930_v14 = vmul.f32 0.2, %v6419_v11  ;;  %v4992_v32 = vmax.f32 %v6417_v60, %v4928_v55 }
 0x3d2   : > { %v4993_v19 = vmax.f32 %v6418_v51, %v4929_v18 }
 0x3d3   : > { %v4994_v28 = vmax.f32 %v6419_v11, %v4930_v14  ;;  %v4784_v57 = vpop.f32.mrb[72].mxu0 }
 0x3d4   : > { %v6420_v45 = vadd.f32 %v4784_v57, %v9226_v23  ;;  %v4786_v49 = vpop.f32.mrb[73].mxu0  ;;  %v5053_v39 = vpack.c.bf16 %v4993_v19, %v4991_v26 }
 0x3d5   : > { %v6421_v16 = vadd.f32 %v4786_v49, %v9230_v47  ;;  %v4788_v33 = vpop.f32.mrb[74].mxu0  ;;  %v5054_v20 = vpack.c.bf16 %v4994_v28, %v4992_v32 }
 0x3d6   : > { %v4931_v54 = vmul.f32 0.2, %v6420_v45  ;;  %v6422_v13 = vadd.f32 %v4788_v33, %v9226_v23  ;;  %v4790_v25 = vpop.f32.mrb[75].mxu0 }
 0x3d7   : > { %v4932_v38 = vmul.f32 0.2, %v6421_v16  ;;  %v6423_v46 = vadd.f32 %v4790_v25, %v9230_v47  ;;  %5258 = vmatprep.mubr.bf16.mxu1 %v5054_v20 }
 0x3d8   : > { %v4933_v2 = vmul.f32 0.2, %v6422_v13  ;;  %5259 = vmatmul.mubr.bf16.gmra.mrb[100].mxu1 %v5053_v39  ;;  %v4995_v9 = vmax.f32 %v6420_v45, %v4931_v54 }
 0x3d9   : > { %v4934_v15 = vmul.f32 0.2, %v6423_v46  ;;  %v4996_v43 = vmax.f32 %v6421_v16, %v4932_v38 }
 0x3da   : > { %v4997_v61 = vmax.f32 %v6422_v13, %v4933_v2 }
 0x3db   : > { %v4998_v48 = vmax.f32 %v6423_v46, %v4934_v15  ;;  %v4794_v62 = vpop.f32.mrb[76].mxu0 }
 0x3dc   : > { %v6424_v22 = vadd.f32 %v4794_v62, %v9226_v23  ;;  %v4796_v12 = vpop.f32.mrb[77].mxu0  ;;  %v5055_v17 = vpack.c.bf16 %v4997_v61, %v4995_v9 }
 0x3dd   : > { %v6425_v35 = vadd.f32 %v4796_v12, %v9230_v47  ;;  %v4798_v50 = vpop.f32.mrb[78].mxu0  ;;  %v5056_v59 = vpack.c.bf16 %v4998_v48, %v4996_v43 }
 0x3de   : > { %v4935_v36 = vmul.f32 0.2, %v6424_v22  ;;  %v6426_v0 = vadd.f32 %v4798_v50, %v9226_v23  ;;  %v4800_v63 = vpop.f32.mrb[79].mxu0 }
 0x3df   : > { %v4936_v56 = vmul.f32 0.2, %v6425_v35  ;;  %v6427_v41 = vadd.f32 %v4800_v63, %v9230_v47  ;;  %5266 = vmatprep.mubr.bf16.mxu1 %v5056_v59 }
 0x3e0   : > { %v4937_v8 = vmul.f32 0.2, %v6426_v0  ;;  %5267 = vmatmul.mubr.bf16.gmra.mrb[104].mxu1 %v5055_v17  ;;  %v4999_v24 = vmax.f32 %v6424_v22, %v4935_v36 }
 0x3e1   : > { %v4938_v5 = vmul.f32 0.2, %v6427_v41  ;;  %v5000_v7 = vmax.f32 %v6425_v35, %v4936_v56 }
 0x3e2   : > { %v5001_v42 = vmax.f32 %v6426_v0, %v4937_v8 }
 0x3e3   : > { %v5002_v4 = vmax.f32 %v6427_v41, %v4938_v5  ;;  %v4804_v3 = vpop.f32.mrb[80].mxu0 }
 0x3e4   : > { %v6428_v52 = vadd.f32 %v4804_v3, %v9226_v23  ;;  %v4806_v58 = vpop.f32.mrb[81].mxu0  ;;  %v5057_v21 = vpack.c.bf16 %v5001_v42, %v4999_v24 }
 0x3e5   : > { %v6429_v44 = vadd.f32 %v4806_v58, %v9230_v47  ;;  %v4808_v40 = vpop.f32.mrb[82].mxu0  ;;  %v5058_v1 = vpack.c.bf16 %v5002_v4, %v5000_v7 }
 0x3e6   : > { %v4939_v27 = vmul.f32 0.2, %v6428_v52  ;;  %v6430_v34 = vadd.f32 %v4808_v40, %v9226_v23  ;;  %v4810_v30 = vpop.f32.mrb[83].mxu0 }
 0x3e7   : > { %v4940_v29 = vmul.f32 0.2, %v6429_v44  ;;  %v6431_v10 = vadd.f32 %v4810_v30, %v9230_v47  ;;  %5274 = vmatprep.mubr.bf16.mxu1 %v5058_v1 }
 0x3e8   : > { %v4941_v60 = vmul.f32 0.2, %v6430_v34  ;;  %5275 = vmatmul.mubr.bf16.gmra.mrb[108].mxu1 %v5057_v21  ;;  %v5003_v31 = vmax.f32 %v6428_v52, %v4939_v27 }
 0x3e9   : > { %v4942_v37 = vmul.f32 0.2, %v6431_v10  ;;  %v5004_v51 = vmax.f32 %v6429_v44, %v4940_v29 }
 0x3ea   : > { %v5005_v6 = vmax.f32 %v6430_v34, %v4941_v60 }
 0x3eb   : > { %v5006_v53 = vmax.f32 %v6431_v10, %v4942_v37  ;;  %v4814_v55 = vpop.f32.mrb[84].mxu0 }
 0x3ec   : > { %v6432_v11 = vadd.f32 %v4814_v55, %v9226_v23  ;;  %v4816_v18 = vpop.f32.mrb[85].mxu0  ;;  %v5059_v14 = vpack.c.bf16 %v5005_v6, %v5003_v31 }
 0x3ed   : > { %v6433_v26 = vadd.f32 %v4816_v18, %v9230_v47  ;;  %v4818_v19 = vpop.f32.mrb[86].mxu0  ;;  %v5060_v32 = vpack.c.bf16 %v5006_v53, %v5004_v51 }
 0x3ee   : > { %v4943_v28 = vmul.f32 0.2, %v6432_v11  ;;  %v6434_v57 = vadd.f32 %v4818_v19, %v9226_v23  ;;  %v4820_v45 = vpop.f32.mrb[87].mxu0 }
 0x3ef   : > { %v4944_v49 = vmul.f32 0.2, %v6433_v26  ;;  %v6435_v39 = vadd.f32 %v4820_v45, %v9230_v47  ;;  %5282 = vmatprep.mubr.bf16.mxu1 %v5060_v32 }
 0x3f0   : > { %v4945_v16 = vmul.f32 0.2, %v6434_v57  ;;  %5283 = vmatmul.mubr.bf16.gmra.mrb[112].mxu1 %v5059_v14  ;;  %v5007_v20 = vmax.f32 %v6432_v11, %v4943_v28 }
 0x3f1   : > { %v4946_v33 = vmul.f32 0.2, %v6435_v39  ;;  %v5008_v13 = vmax.f32 %v6433_v26, %v4944_v49 }
 0x3f2   : > { %v5009_v54 = vmax.f32 %v6434_v57, %v4945_v16 }
 0x3f3   : > { %v5010_v25 = vmax.f32 %v6435_v39, %v4946_v33  ;;  %v4824_v38 = vpop.f32.mrb[88].mxu0 }
 0x3f4   : > { %v6436_v46 = vadd.f32 %v4824_v38, %v9226_v23  ;;  %v4826_v2 = vpop.f32.mrb[89].mxu0  ;;  %v5061_v15 = vpack.c.bf16 %v5009_v54, %v5007_v20 }
 0x3f5   : > { %v6437_v9 = vadd.f32 %v4826_v2, %v9230_v47  ;;  %v4828_v61 = vpop.f32.mrb[90].mxu0  ;;  %v5062_v43 = vpack.c.bf16 %v5010_v25, %v5008_v13 }
 0x3f6   : > { %v4947_v48 = vmul.f32 0.2, %v6436_v46  ;;  %v6438_v62 = vadd.f32 %v4828_v61, %v9226_v23  ;;  %v4830_v22 = vpop.f32.mrb[91].mxu0 }
 0x3f7   : > { %v4948_v12 = vmul.f32 0.2, %v6437_v9  ;;  %v6439_v17 = vadd.f32 %v4830_v22, %v9230_v47  ;;  %5290 = vmatprep.mubr.bf16.mxu1 %v5062_v43 }
 0x3f8   : > { %v4949_v35 = vmul.f32 0.2, %v6438_v62  ;;  %5291 = vmatmul.mubr.bf16.gmra.mrb[116].mxu1 %v5061_v15  ;;  %v5011_v59 = vmax.f32 %v6436_v46, %v4947_v48 }
 0x3f9   : > { %v4950_v50 = vmul.f32 0.2, %v6439_v17  ;;  %v5012_v0 = vmax.f32 %v6437_v9, %v4948_v12 }
 0x3fa   : > { %v5013_v36 = vmax.f32 %v6438_v62, %v4949_v35 }
 0x3fb   : > { %v5014_v63 = vmax.f32 %v6439_v17, %v4950_v50  ;;  %v4834_v56 = vpop.f32.mrb[92].mxu0 }
 0x3fc   : > { %v6440_v41 = vadd.f32 %v4834_v56, %v9226_v23  ;;  %v4836_v8 = vpop.f32.mrb[93].mxu0  ;;  %v5063_v5 = vpack.c.bf16 %v5013_v36, %v5011_v59 }
 0x3fd   : > { %v6441_v24 = vadd.f32 %v4836_v8, %v9230_v47  ;;  %v4838_v42 = vpop.f32.mrb[94].mxu0  ;;  %v5064_v7 = vpack.c.bf16 %v5014_v63, %v5012_v0 }
 0x3fe   : > { %v4951_v4 = vmul.f32 0.2, %v6440_v41  ;;  %v6442_v3 = vadd.f32 %v4838_v42, %v9226_v23  ;;  %v4840_v52 = vpop.f32.mrb[95].mxu0 }
 0x3ff   : > { %v4952_v58 = vmul.f32 0.2, %v6441_v24  ;;  %v6443_v21 = vadd.f32 %v4840_v52, %v9230_v47  ;;  %5298 = vmatprep.mubr.bf16.mxu1 %v5064_v7 }
 0x400   : > { %v4953_v44 = vmul.f32 0.2, %v6442_v3  ;;  %5299 = vmatmul.mubr.bf16.gmra.mrb[120].mxu1 %v5063_v5  ;;  %v5015_v1 = vmax.f32 %v6440_v41, %v4951_v4 }
 0x401   : > { %v4954_v40 = vmul.f32 0.2, %v6443_v21  ;;  %v5016_v34 = vmax.f32 %v6441_v24, %v4952_v58 }
 0x402   : > { %v5017_v27 = vmax.f32 %v6442_v3, %v4953_v44 }
 0x403   : > { %v5018_v30 = vmax.f32 %v6443_v21, %v4954_v40  ;;  %v4844_v29 = vpop.f32.mrb[96].mxu0 }
 0x404   : > { %v6444_v10 = vadd.f32 %v4844_v29, %v9226_v23  ;;  %v4846_v60 = vpop.f32.mrb[97].mxu0  ;;  %v5065_v37 = vpack.c.bf16 %v5017_v27, %v5015_v1 }
 0x405   : > { %v6445_v31 = vadd.f32 %v4846_v60, %v9230_v47  ;;  %v4848_v6 = vpop.f32.mrb[98].mxu0  ;;  %v5066_v51 = vpack.c.bf16 %v5018_v30, %v5016_v34 }
 0x406   : > { %v4955_v53 = vmul.f32 0.2, %v6444_v10  ;;  %v6446_v55 = vadd.f32 %v4848_v6, %v9226_v23  ;;  %v4850_v11 = vpop.f32.mrb[99].mxu0 }
 0x407   : > { %v4956_v18 = vmul.f32 0.2, %v6445_v31  ;;  %v6447_v14 = vadd.f32 %v4850_v11, %v9230_v47  ;;  %5306 = vmatprep.mubr.bf16.mxu1 %v5066_v51 }
 0x408   : > { %v4957_v26 = vmul.f32 0.2, %v6446_v55  ;;  %5307 = vmatmul.mubr.bf16.gmra.mrb[124].mxu1 %v5065_v37  ;;  %v5019_v32 = vmax.f32 %v6444_v10, %v4955_v53 }
 0x409   : > { %v4958_v19 = vmul.f32 0.2, %v6447_v14  ;;  %v5020_v57 = vmax.f32 %v6445_v31, %v4956_v18 }
 0x40a   : > { %v5021_v28 = vmax.f32 %v6446_v55, %v4957_v26 }
 0x40b   : > { %v5022_v45 = vmax.f32 %v6447_v14, %v4958_v19  ;;  %v4854_v49 = vpop.f32.mrb[100].mxu0 }
 0x40c   : > { %v6448_v39 = vadd.f32 %v4854_v49, %v9226_v23  ;;  %v4856_v16 = vpop.f32.mrb[101].mxu0  ;;  %v5067_v33 = vpack.c.bf16 %v5021_v28, %v5019_v32 }
 0x40d   : > { %v6449_v20 = vadd.f32 %v4856_v16, %v9230_v47  ;;  %v4858_v54 = vpop.f32.mrb[102].mxu0  ;;  %v5068_v13 = vpack.c.bf16 %v5022_v45, %v5020_v57 }
 0x40e   : > { %v4959_v25 = vmul.f32 0.2, %v6448_v39  ;;  %v6450_v38 = vadd.f32 %v4858_v54, %v9226_v23  ;;  %v4860_v46 = vpop.f32.mrb[103].mxu0 }
 0x40f   : > { %v4960_v2 = vmul.f32 0.2, %v6449_v20  ;;  %v6451_v15 = vadd.f32 %v4860_v46, %v9230_v47  ;;  %5314 = vmatprep.mubr.bf16.mxu1 %v5068_v13 }
 0x410   : > { %v4961_v9 = vmul.f32 0.2, %v6450_v38  ;;  %5315 = vmatmul.mubr.bf16.gmra.mrb[128].mxu1 %v5067_v33  ;;  %v5023_v43 = vmax.f32 %v6448_v39, %v4959_v25 }
 0x411   : > { %v4962_v61 = vmul.f32 0.2, %v6451_v15  ;;  %v5024_v62 = vmax.f32 %v6449_v20, %v4960_v2 }
 0x412   : > { %v5025_v48 = vmax.f32 %v6450_v38, %v4961_v9 }
 0x413   : > { %v5026_v22 = vmax.f32 %v6451_v15, %v4962_v61  ;;  %v4864_v12 = vpop.f32.mrb[104].mxu0 }
 0x414   : > { %v6452_v17 = vadd.f32 %v4864_v12, %v9226_v23  ;;  %v4866_v35 = vpop.f32.mrb[105].mxu0  ;;  %v5069_v50 = vpack.c.bf16 %v5025_v48, %v5023_v43 }
 0x415   : > { %v6453_v59 = vadd.f32 %v4866_v35, %v9230_v47  ;;  %v4868_v36 = vpop.f32.mrb[106].mxu0  ;;  %v5070_v0 = vpack.c.bf16 %v5026_v22, %v5024_v62 }
 0x416   : > { %v4963_v63 = vmul.f32 0.2, %v6452_v17  ;;  %v6454_v56 = vadd.f32 %v4868_v36, %v9226_v23  ;;  %v4870_v41 = vpop.f32.mrb[107].mxu0 }
 0x417   : > { %v4964_v8 = vmul.f32 0.2, %v6453_v59  ;;  %v6455_v5 = vadd.f32 %v4870_v41, %v9230_v47  ;;  %5322 = vmatprep.mubr.bf16.mxu1 %v5070_v0 }
 0x418   : > { %v4965_v24 = vmul.f32 0.2, %v6454_v56  ;;  %5323 = vmatmul.mubr.bf16.gmra.mrb[132].mxu1 %v5069_v50  ;;  %v5027_v7 = vmax.f32 %v6452_v17, %v4963_v63 }
 0x419   : > { %v4966_v42 = vmul.f32 0.2, %v6455_v5  ;;  %v5028_v3 = vmax.f32 %v6453_v59, %v4964_v8 }
 0x41a   : > { %v5029_v4 = vmax.f32 %v6454_v56, %v4965_v24 }
 0x41b   : > { %v5030_v52 = vmax.f32 %v6455_v5, %v4966_v42  ;;  %v4874_v58 = vpop.f32.mrb[108].mxu0 }
 0x41c   : > { %v6456_v21 = vadd.f32 %v4874_v58, %v9226_v23  ;;  %v4876_v44 = vpop.f32.mrb[109].mxu0  ;;  %v5071_v40 = vpack.c.bf16 %v5029_v4, %v5027_v7 }
 0x41d   : > { %v6457_v1 = vadd.f32 %v4876_v44, %v9230_v47  ;;  %v4878_v27 = vpop.f32.mrb[110].mxu0  ;;  %v5072_v34 = vpack.c.bf16 %v5030_v52, %v5028_v3 }
 0x41e   : > { %v4967_v30 = vmul.f32 0.2, %v6456_v21  ;;  %v6458_v29 = vadd.f32 %v4878_v27, %v9226_v23  ;;  %v4880_v10 = vpop.f32.mrb[111].mxu0 }
 0x41f   : > { %v4968_v60 = vmul.f32 0.2, %v6457_v1  ;;  %v6459_v37 = vadd.f32 %v4880_v10, %v9230_v47  ;;  %5330 = vmatprep.mubr.bf16.mxu1 %v5072_v34 }
 0x420   : > { %v4969_v31 = vmul.f32 0.2, %v6458_v29  ;;  %5331 = vmatmul.mubr.bf16.gmra.mrb[136].mxu1 %v5071_v40  ;;  %v5031_v51 = vmax.f32 %v6456_v21, %v4967_v30 }
 0x421   : > { %v4970_v6 = vmul.f32 0.2, %v6459_v37  ;;  %v5032_v55 = vmax.f32 %v6457_v1, %v4968_v60 }
 0x422   : > { %v5033_v53 = vmax.f32 %v6458_v29, %v4969_v31 }
 0x423   : > { %v5034_v11 = vmax.f32 %v6459_v37, %v4970_v6  ;;  %v4884_v18 = vpop.f32.mrb[112].mxu0 }
 0x424   : > { %v6460_v14 = vadd.f32 %v4884_v18, %v9226_v23  ;;  %v4886_v26 = vpop.f32.mrb[113].mxu0  ;;  %v5073_v19 = vpack.c.bf16 %v5033_v53, %v5031_v51 }
 0x425   : > { %v6461_v32 = vadd.f32 %v4886_v26, %v9230_v47  ;;  %v4888_v28 = vpop.f32.mrb[114].mxu0  ;;  %v5074_v57 = vpack.c.bf16 %v5034_v11, %v5032_v55 }
 0x426   : > { %v4971_v45 = vmul.f32 0.2, %v6460_v14  ;;  %v6462_v49 = vadd.f32 %v4888_v28, %v9226_v23  ;;  %v4890_v39 = vpop.f32.mrb[115].mxu0 }
 0x427   : > { %v4972_v16 = vmul.f32 0.2, %v6461_v32  ;;  %v6463_v33 = vadd.f32 %v4890_v39, %v9230_v47  ;;  %5338 = vmatprep.mubr.bf16.mxu1 %v5074_v57 }
 0x428   : > { %v4973_v20 = vmul.f32 0.2, %v6462_v49  ;;  %5339 = vmatmul.mubr.bf16.gmra.mrb[140].mxu1 %v5073_v19  ;;  %v5035_v13 = vmax.f32 %v6460_v14, %v4971_v45 }
 0x429   : > { %v4974_v54 = vmul.f32 0.2, %v6463_v33  ;;  %v5036_v38 = vmax.f32 %v6461_v32, %v4972_v16 }
 0x42a   : > { %v5037_v25 = vmax.f32 %v6462_v49, %v4973_v20 }
 0x42b   : > { %v5038_v46 = vmax.f32 %v6463_v33, %v4974_v54  ;;  %v4894_v2 = vpop.f32.mrb[116].mxu0 }
 0x42c   : > { %v6464_v15 = vadd.f32 %v4894_v2, %v9226_v23  ;;  %v4896_v9 = vpop.f32.mrb[117].mxu0  ;;  %v5075_v61 = vpack.c.bf16 %v5037_v25, %v5035_v13 }
 0x42d   : > { %v6465_v43 = vadd.f32 %v4896_v9, %v9230_v47  ;;  %v4898_v48 = vpop.f32.mrb[118].mxu0  ;;  %v5076_v62 = vpack.c.bf16 %v5038_v46, %v5036_v38  ;;  %v9306_v9 = vld [vmem:[%s9484_s7] ss:$0 sm:$0xff] }
 0x42e   : > { %v4975_v22 = vmul.f32 0.2, %v6464_v15  ;;  %v6466_v12 = vadd.f32 %v4898_v48, %v9226_v23  ;;  %v4900_v17 = vpop.f32.mrb[119].mxu0 }
 0x42f   : > { %v4976_v35 = vmul.f32 0.2, %v6465_v43  ;;  %v6467_v50 = vadd.f32 %v4900_v17, %v9230_v47  ;;  %5346 = vmatprep.mubr.bf16.mxu1 %v5076_v62 }
 0x430   : > { %v4977_v59 = vmul.f32 0.2, %v6466_v12  ;;  %5347 = vmatmul.mubr.bf16.gmra.mrb[144].mxu1 %v5075_v61  ;;  %v5039_v0 = vmax.f32 %v6464_v15, %v4975_v22 }
 0x431   : > { %v4978_v36 = vmul.f32 0.2, %v6467_v50  ;;  %v5040_v56 = vmax.f32 %v6465_v43, %v4976_v35 }
 0x432   : > { %v5041_v63 = vmax.f32 %v6466_v12, %v4977_v59 }
 0x433   : > { %v5042_v41 = vmax.f32 %v6467_v50, %v4978_v36  ;;  %v4904_v8 = vpop.f32.mrb[120].mxu0 }
 0x434   : > { %v6468_v5 = vadd.f32 %v4904_v8, %v9226_v23  ;;  %v4906_v24 = vpop.f32.mrb[121].mxu0  ;;  %v5077_v42 = vpack.c.bf16 %v5041_v63, %v5039_v0 }
 0x435   : > { %v6469_v7 = vadd.f32 %v4906_v24, %v9230_v47  ;;  %v4908_v4 = vpop.f32.mrb[122].mxu0  ;;  %v5078_v3 = vpack.c.bf16 %v5042_v41, %v5040_v56 }
 0x436   : > { %v4979_v52 = vmul.f32 0.2, %v6468_v5  ;;  %v6470_v58 = vadd.f32 %v4908_v4, %v9226_v23  ;;  %v4910_v21 = vpop.f32.mrb[123].mxu0 }
 0x437   : > { %v4980_v44 = vmul.f32 0.2, %v6469_v7  ;;  %v6471_v40 = vadd.f32 %v4910_v21, %v9230_v47  ;;  %5354 = vmatprep.mubr.bf16.mxu1 %v5078_v3 }
 0x438   : > { %v4981_v1 = vmul.f32 0.2, %v6470_v58  ;;  %5355 = vmatmul.mubr.bf16.gmra.mrb[148].mxu1 %v5077_v42  ;;  %v5043_v34 = vmax.f32 %v6468_v5, %v4979_v52 }
 0x439   : > { %v4982_v27 = vmul.f32 0.2, %v6471_v40  ;;  %v5044_v29 = vmax.f32 %v6469_v7, %v4980_v44 }
 0x43a   : > { %v5045_v30 = vmax.f32 %v6470_v58, %v4981_v1 }
 0x43b   : > { %v5046_v10 = vmax.f32 %v6471_v40, %v4982_v27  ;;  %v4914_v60 = vpop.f32.mrb[124].mxu0 }
 0x43c   : > { %v6472_v37 = vadd.f32 %v4914_v60, %v9226_v23  ;;  %v4916_v31 = vpop.f32.mrb[125].mxu0  ;;  %v5079_v6 = vpack.c.bf16 %v5045_v30, %v5043_v34 }
 0x43d   : > { %v6473_v51 = vadd.f32 %v4916_v31, %v9230_v47  ;;  %v4918_v53 = vpop.f32.mrb[126].mxu0  ;;  %v5080_v55 = vpack.c.bf16 %v5046_v10, %v5044_v29 }
 0x43e   : > { %v4983_v11 = vmul.f32 0.2, %v6472_v37  ;;  %v6474_v18 = vadd.f32 %v4918_v53, %v9226_v23  ;;  %v4920_v14 = vpop.f32.mrb[127].mxu0  ;;  %v9299_v23 = vld [vmem:[%s9483_s6] ss:$0 sm:$0xff] }
 0x43f   : > { %v4984_v26 = vmul.f32 0.2, %v6473_v51  ;;  %v6475_v19 = vadd.f32 %v4920_v14, %v9230_v47  ;;  %5362 = vmatprep.mubr.bf16.mxu1 %v5080_v55 }
 0x440   : > { %v4985_v32 = vmul.f32 0.2, %v6474_v18  ;;  %5363 = vmatmul.mubr.bf16.gmra.mrb[152].mxu1 %v5079_v6  ;;  %v5047_v57 = vmax.f32 %v6472_v37, %v4983_v11 }
 0x441   : > { %v4986_v28 = vmul.f32 0.2, %v6475_v19  ;;  %v5048_v49 = vmax.f32 %v6473_v51, %v4984_v26 }
 0x442   : > { %v5049_v45 = vmax.f32 %v6474_v18, %v4985_v32 }
 0x443   : > { %v5050_v39 = vmax.f32 %v6475_v19, %v4986_v28 }
 0x444   : > { %v5081_v16 = vpack.c.bf16 %v5049_v45, %v5047_v57 }
 0x445   : > { %v5082_v33 = vpack.c.bf16 %v5050_v39, %v5048_v49 }
 0x447   : > { %5370 = vmatprep.mubr.bf16.mxu1 %v5082_v33 }
 0x448   : > { %5371 = vmatmul.mubr.bf16.gmra.mrb[156].mxu1 %v5081_v16 }
 0x4a3   : > { %v6124_v20 = vpop.f32.mrb[96].mxu1 }
 0x4a4   : > { %v6125_v54 = vpop.f32.mrb[97].mxu1 }
 0x4a5   : > { %v6126_v47 = vadd.f32 %v6125_v54, %v6124_v20  ;;  %v6127_v13 = vpop.f32.mrb[98].mxu1 }
 0x4a6   : > { %v6128_v25 = vpop.f32.mrb[99].mxu1 }
 0x4a7   : > { %v5253_v38 = vadd.f32 %v6126_v47, %v9299_v23  ;;  %v6129_v46 = vadd.f32 %v6128_v25, %v6127_v13 }
 0x4a9   : > { %v5256_v2 = vadd.f32 %v6129_v46, %v9299_v23  ;;  %v5379_v15 = vmul.f32 0.2, %v5253_v38 }
 0x4ab   : > { %v5380_v61 = vmul.f32 0.2, %v5256_v2  ;;  %v6130_v43 = vpop.f32.mrb[100].mxu1  ;;  %v5411_v48 = vmax.f32 %v5253_v38, %v5379_v15 }
 0x4ac   : > { %v6131_v62 = vpop.f32.mrb[101].mxu1 }
 0x4ad   : > { %v6132_v22 = vadd.f32 %v6131_v62, %v6130_v43  ;;  %v6133_v12 = vpop.f32.mrb[102].mxu1  ;;  %v5450_v17 = vmul.f32 %v9306_v9, %v5411_v48  ;;  %v5412_v35 = vmax.f32 %v5256_v2, %v5380_v61 }
 0x4ae   : > { %v6134_v50 = vpop.f32.mrb[103].mxu1 }
 0x4af   : > { %v5261_v59 = vadd.f32 %v6132_v22, %v9299_v23  ;;  %v6135_v36 = vadd.f32 %v6134_v50, %v6133_v12  ;;  %5482 = vadd.xlane.f32.xlu0 %v5450_v17  ;;  %v5451_v63 = vmul.f32 %v9306_v9, %v5412_v35 }
 0x4b1   : > { %v5264_v0 = vadd.f32 %v6135_v36, %v9299_v23  ;;  %v5381_v56 = vmul.f32 0.2, %v5261_v59 }
 0x4b3   : > { %v5382_v41 = vmul.f32 0.2, %v5264_v0  ;;  %v6136_v8 = vpop.f32.mrb[104].mxu1  ;;  %5484 = vadd.xlane.f32.xlu0 %v5451_v63  ;;  %v5413_v5 = vmax.f32 %v5261_v59, %v5381_v56 }
 0x4b4   : > { %v6137_v24 = vpop.f32.mrb[105].mxu1 }
 0x4b5   : > { %v6138_v42 = vadd.f32 %v6137_v24, %v6136_v8  ;;  %v6139_v7 = vpop.f32.mrb[106].mxu1  ;;  %v5452_v4 = vmul.f32 %v9306_v9, %v5413_v5  ;;  %v5414_v3 = vmax.f32 %v5264_v0, %v5382_v41 }
 0x4b6   : > { %v6140_v52 = vpop.f32.mrb[107].mxu1 }
 0x4b7   : > { %v5269_v58 = vadd.f32 %v6138_v42, %v9299_v23  ;;  %v6141_v21 = vadd.f32 %v6140_v52, %v6139_v7  ;;  %5486 = vadd.xlane.f32.xlu1 %v5452_v4  ;;  %v5453_v1 = vmul.f32 %v9306_v9, %v5414_v3 }
 0x4b9   : > { %v5383_v44 = vmul.f32 0.2, %v5269_v58  ;;  %v5272_v40 = vadd.f32 %v6141_v21, %v9299_v23 }
 0x4bb   : > { %v5384_v27 = vmul.f32 0.2, %v5272_v40  ;;  %v6142_v34 = vpop.f32.mrb[108].mxu1  ;;  %5488 = vadd.xlane.f32.xlu1 %v5453_v1  ;;  %v5415_v30 = vmax.f32 %v5269_v58, %v5383_v44 }
 0x4bc   : > { %v6143_v29 = vpop.f32.mrb[109].mxu1 }
 0x4bd   : > { %v6144_v10 = vadd.f32 %v6143_v29, %v6142_v34  ;;  %v6145_v60 = vpop.f32.mrb[110].mxu1  ;;  %v5454_v37 = vmul.f32 %v9306_v9, %v5415_v30  ;;  %v5416_v31 = vmax.f32 %v5272_v40, %v5384_v27 }
 0x4be   : > { %v6146_v6 = vpop.f32.mrb[111].mxu1 }
 0x4bf   : > { %v5277_v51 = vadd.f32 %v6144_v10, %v9299_v23  ;;  %v6147_v53 = vadd.f32 %v6146_v6, %v6145_v60  ;;  %5490 = vadd.xlane.f32.xlu0 %v5454_v37  ;;  %v5455_v55 = vmul.f32 %v9306_v9, %v5416_v31 }
 0x4c1   : > { %v5385_v11 = vmul.f32 0.2, %v5277_v51  ;;  %v5280_v18 = vadd.f32 %v6147_v53, %v9299_v23  ;;  %5492 = vadd.xlane.f32.xlu1 %v5455_v55 }
 0x4c3   : > { %v5386_v14 = vmul.f32 0.2, %v5280_v18  ;;  %v6148_v26 = vpop.f32.mrb[112].mxu1  ;;  %v5417_v19 = vmax.f32 %v5277_v51, %v5385_v11 }
 0x4c4   : > { %v6149_v32 = vpop.f32.mrb[113].mxu1 }
 0x4c5   : > { %v6150_v28 = vadd.f32 %v6149_v32, %v6148_v26  ;;  %v6151_v57 = vpop.f32.mrb[114].mxu1  ;;  %v5456_v45 = vmul.f32 %v9306_v9, %v5417_v19  ;;  %v5418_v49 = vmax.f32 %v5280_v18, %v5386_v14 }
 0x4c6   : > { %v6152_v39 = vpop.f32.mrb[115].mxu1 }
 0x4c7   : > { %v5285_v16 = vadd.f32 %v6150_v28, %v9299_v23  ;;  %v6153_v33 = vadd.f32 %v6152_v39, %v6151_v57  ;;  %5494 = vadd.xlane.f32.xlu0 %v5456_v45  ;;  %v5457_v20 = vmul.f32 %v9306_v9, %v5418_v49 }
 0x4c9   : > { %v5387_v54 = vmul.f32 0.2, %v5285_v16  ;;  %v5288_v47 = vadd.f32 %v6153_v33, %v9299_v23  ;;  %5496 = vadd.xlane.f32.xlu1 %v5457_v20 }
 0x4cb   : > { %v5388_v13 = vmul.f32 0.2, %v5288_v47  ;;  %v6154_v25 = vpop.f32.mrb[116].mxu1  ;;  %v5419_v38 = vmax.f32 %v5285_v16, %v5387_v54 }
 0x4cc   : > { %v6155_v46 = vpop.f32.mrb[117].mxu1 }
 0x4cd   : > { %v6156_v2 = vadd.f32 %v6155_v46, %v6154_v25  ;;  %v6157_v15 = vpop.f32.mrb[118].mxu1  ;;  %v5458_v61 = vmul.f32 %v9306_v9, %v5419_v38  ;;  %v5420_v43 = vmax.f32 %v5288_v47, %v5388_v13 }
 0x4ce   : > { %v6158_v48 = vpop.f32.mrb[119].mxu1 }
 0x4cf   : > { %v5293_v62 = vadd.f32 %v6156_v2, %v9299_v23  ;;  %v6159_v22 = vadd.f32 %v6158_v48, %v6157_v15  ;;  %5498 = vadd.xlane.f32.xlu0 %v5458_v61  ;;  %v5459_v12 = vmul.f32 %v9306_v9, %v5420_v43 }
 0x4d1   : > { %v5389_v17 = vmul.f32 0.2, %v5293_v62  ;;  %v5296_v35 = vadd.f32 %v6159_v22, %v9299_v23  ;;  %5500 = vadd.xlane.f32.xlu1 %v5459_v12 }
 0x4d3   : > { %v5390_v50 = vmul.f32 0.2, %v5296_v35  ;;  %v6160_v59 = vpop.f32.mrb[120].mxu1  ;;  %v5421_v36 = vmax.f32 %v5293_v62, %v5389_v17 }
 0x4d4   : > { %v6161_v0 = vpop.f32.mrb[121].mxu1 }
 0x4d5   : > { %v6162_v63 = vadd.f32 %v6161_v0, %v6160_v59  ;;  %v6163_v56 = vpop.f32.mrb[122].mxu1  ;;  %v5460_v41 = vmul.f32 %v9306_v9, %v5421_v36  ;;  %v5422_v8 = vmax.f32 %v5296_v35, %v5390_v50 }
 0x4d6   : > { %v6164_v5 = vpop.f32.mrb[123].mxu1 }
 0x4d7   : > { %v5301_v24 = vadd.f32 %v6162_v63, %v9299_v23  ;;  %v6165_v42 = vadd.f32 %v6164_v5, %v6163_v56  ;;  %5502 = vadd.xlane.f32.xlu0 %v5460_v41  ;;  %v5461_v7 = vmul.f32 %v9306_v9, %v5422_v8 }
 0x4d9   : > { %v5391_v4 = vmul.f32 0.2, %v5301_v24  ;;  %v5304_v3 = vadd.f32 %v6165_v42, %v9299_v23  ;;  %5504 = vadd.xlane.f32.xlu1 %v5461_v7 }
 0x4db   : > { %v5392_v52 = vmul.f32 0.2, %v5304_v3  ;;  %v6166_v58 = vpop.f32.mrb[124].mxu1  ;;  %v5423_v21 = vmax.f32 %v5301_v24, %v5391_v4 }
 0x4dc   : > { %v6167_v44 = vpop.f32.mrb[125].mxu1 }
 0x4dd   : > { %v6168_v40 = vadd.f32 %v6167_v44, %v6166_v58  ;;  %v6169_v1 = vpop.f32.mrb[126].mxu1  ;;  %v5462_v27 = vmul.f32 %v9306_v9, %v5423_v21  ;;  %v5424_v34 = vmax.f32 %v5304_v3, %v5392_v52 }
 0x4de   : > { %v6170_v30 = vpop.f32.mrb[127].mxu1 }
 0x4df   : > { %v5309_v29 = vadd.f32 %v6168_v40, %v9299_v23  ;;  %v6171_v10 = vadd.f32 %v6170_v30, %v6169_v1  ;;  %5506 = vadd.xlane.f32.xlu0 %v5462_v27  ;;  %v5463_v60 = vmul.f32 %v9306_v9, %v5424_v34 }
 0x4e1   : > { %v5393_v37 = vmul.f32 0.2, %v5309_v29  ;;  %v5312_v31 = vadd.f32 %v6171_v10, %v9299_v23  ;;  %5508 = vadd.xlane.f32.xlu1 %v5463_v60 }
 0x4e3   : > { %v5394_v6 = vmul.f32 0.2, %v5312_v31  ;;  %v6172_v51 = vpop.f32.mrb[128].mxu1  ;;  %v5425_v53 = vmax.f32 %v5309_v29, %v5393_v37 }
 0x4e4   : > { %v6173_v55 = vpop.f32.mrb[129].mxu1 }
 0x4e5   : > { %v6174_v11 = vadd.f32 %v6173_v55, %v6172_v51  ;;  %v6175_v18 = vpop.f32.mrb[130].mxu1  ;;  %v5464_v14 = vmul.f32 %v9306_v9, %v5425_v53  ;;  %v5426_v26 = vmax.f32 %v5312_v31, %v5394_v6 }
 0x4e6   : > { %v6176_v19 = vpop.f32.mrb[131].mxu1 }
 0x4e7   : > { %v5317_v32 = vadd.f32 %v6174_v11, %v9299_v23  ;;  %v6177_v28 = vadd.f32 %v6176_v19, %v6175_v18  ;;  %5510 = vadd.xlane.f32.xlu0 %v5464_v14  ;;  %v5465_v57 = vmul.f32 %v9306_v9, %v5426_v26 }
 0x4e9   : > { %v5395_v45 = vmul.f32 0.2, %v5317_v32  ;;  %v5320_v49 = vadd.f32 %v6177_v28, %v9299_v23  ;;  %5512 = vadd.xlane.f32.xlu1 %v5465_v57 }
 0x4eb   : > { %v5396_v39 = vmul.f32 0.2, %v5320_v49  ;;  %v6178_v16 = vpop.f32.mrb[132].mxu1  ;;  %v5427_v33 = vmax.f32 %v5317_v32, %v5395_v45 }
 0x4ec   : > { %v6179_v20 = vpop.f32.mrb[133].mxu1 }
 0x4ed   : > { %v6180_v54 = vadd.f32 %v6179_v20, %v6178_v16  ;;  %v6181_v47 = vpop.f32.mrb[134].mxu1  ;;  %v5466_v13 = vmul.f32 %v9306_v9, %v5427_v33  ;;  %v5428_v25 = vmax.f32 %v5320_v49, %v5396_v39 }
 0x4ee   : > { %v6182_v38 = vpop.f32.mrb[135].mxu1 }
 0x4ef   : > { %v5325_v46 = vadd.f32 %v6180_v54, %v9299_v23  ;;  %v6183_v2 = vadd.f32 %v6182_v38, %v6181_v47  ;;  %5514 = vadd.xlane.f32.xlu0 %v5466_v13  ;;  %v5467_v15 = vmul.f32 %v9306_v9, %v5428_v25 }
 0x4f1   : > { %v5397_v61 = vmul.f32 0.2, %v5325_v46  ;;  %v5328_v43 = vadd.f32 %v6183_v2, %v9299_v23  ;;  %5516 = vadd.xlane.f32.xlu1 %v5467_v15 }
 0x4f3   : > { %v5398_v48 = vmul.f32 0.2, %v5328_v43  ;;  %v6184_v62 = vpop.f32.mrb[136].mxu1  ;;  %v5429_v22 = vmax.f32 %v5325_v46, %v5397_v61 }
 0x4f4   : > { %v6185_v12 = vpop.f32.mrb[137].mxu1 }
 0x4f5   : > { %v6186_v17 = vadd.f32 %v6185_v12, %v6184_v62  ;;  %v6187_v35 = vpop.f32.mrb[138].mxu1  ;;  %v5468_v50 = vmul.f32 %v9306_v9, %v5429_v22  ;;  %v5430_v59 = vmax.f32 %v5328_v43, %v5398_v48 }
 0x4f6   : > { %v6188_v36 = vpop.f32.mrb[139].mxu1 }
 0x4f7   : > { %v5333_v0 = vadd.f32 %v6186_v17, %v9299_v23  ;;  %v6189_v63 = vadd.f32 %v6188_v36, %v6187_v35  ;;  %5518 = vadd.xlane.f32.xlu0 %v5468_v50  ;;  %v5469_v56 = vmul.f32 %v9306_v9, %v5430_v59 }
 0x4f9   : > { %v5399_v41 = vmul.f32 0.2, %v5333_v0  ;;  %v5336_v8 = vadd.f32 %v6189_v63, %v9299_v23  ;;  %5520 = vadd.xlane.f32.xlu1 %v5469_v56 }
 0x4fb   : > { %v5400_v5 = vmul.f32 0.2, %v5336_v8  ;;  %v6190_v24 = vpop.f32.mrb[140].mxu1  ;;  %v5431_v42 = vmax.f32 %v5333_v0, %v5399_v41 }
 0x4fc   : > { %v6191_v7 = vpop.f32.mrb[141].mxu1 }
 0x4fd   : > { %v6192_v4 = vadd.f32 %v6191_v7, %v6190_v24  ;;  %v6193_v3 = vpop.f32.mrb[142].mxu1  ;;  %v5470_v52 = vmul.f32 %v9306_v9, %v5431_v42  ;;  %v5432_v58 = vmax.f32 %v5336_v8, %v5400_v5 }
 0x4fe   : > { %v6194_v21 = vpop.f32.mrb[143].mxu1 }
 0x4ff   : > { %v5341_v44 = vadd.f32 %v6192_v4, %v9299_v23  ;;  %v6195_v40 = vadd.f32 %v6194_v21, %v6193_v3  ;;  %5522 = vadd.xlane.f32.xlu0 %v5470_v52  ;;  %v5471_v1 = vmul.f32 %v9306_v9, %v5432_v58 }
 0x501   : > { %v5401_v27 = vmul.f32 0.2, %v5341_v44  ;;  %v5344_v34 = vadd.f32 %v6195_v40, %v9299_v23  ;;  %5524 = vadd.xlane.f32.xlu1 %v5471_v1 }
 0x503   : > { %v5402_v30 = vmul.f32 0.2, %v5344_v34  ;;  %v6196_v29 = vpop.f32.mrb[144].mxu1  ;;  %v5433_v10 = vmax.f32 %v5341_v44, %v5401_v27 }
 0x504   : > { %v6197_v60 = vpop.f32.mrb[145].mxu1 }
 0x505   : > { %v6198_v37 = vadd.f32 %v6197_v60, %v6196_v29  ;;  %v6199_v31 = vpop.f32.mrb[146].mxu1  ;;  %v5472_v6 = vmul.f32 %v9306_v9, %v5433_v10  ;;  %v5434_v51 = vmax.f32 %v5344_v34, %v5402_v30  ;;  %v9371_v34 = vld [vmem:[#allocation2] ss:$0 sm:$0xff] }
 0x506   : > { %v6200_v53 = vpop.f32.mrb[147].mxu1 }
 0x507   : > { %v5349_v55 = vadd.f32 %v6198_v37, %v9299_v23  ;;  %v6201_v11 = vadd.f32 %v6200_v53, %v6199_v31  ;;  %5526 = vadd.xlane.f32.xlu0 %v5472_v6  ;;  %v5473_v18 = vmul.f32 %v9306_v9, %v5434_v51 }
 0x509   : > { %v5403_v14 = vmul.f32 0.2, %v5349_v55  ;;  %v5352_v26 = vadd.f32 %v6201_v11, %v9299_v23  ;;  %5528 = vadd.xlane.f32.xlu1 %v5473_v18 }
 0x50b   : > { %v5404_v19 = vmul.f32 0.2, %v5352_v26  ;;  %v6202_v32 = vpop.f32.mrb[148].mxu1  ;;  %v5435_v28 = vmax.f32 %v5349_v55, %v5403_v14 }
 0x50c   : > { %v6203_v57 = vpop.f32.mrb[149].mxu1 }
 0x50d   : > { %v6204_v45 = vadd.f32 %v6203_v57, %v6202_v32  ;;  %v6205_v49 = vpop.f32.mrb[150].mxu1  ;;  %v5474_v39 = vmul.f32 %v9306_v9, %v5435_v28  ;;  %v5436_v16 = vmax.f32 %v5352_v26, %v5404_v19 }
 0x50e   : > { %v6206_v33 = vpop.f32.mrb[151].mxu1 }
 0x50f   : > { %v5357_v20 = vadd.f32 %v6204_v45, %v9299_v23  ;;  %v6207_v54 = vadd.f32 %v6206_v33, %v6205_v49  ;;  %5530 = vadd.xlane.f32.xlu0 %v5474_v39  ;;  %v5475_v47 = vmul.f32 %v9306_v9, %v5436_v16 }
 0x511   : > { %v5405_v13 = vmul.f32 0.2, %v5357_v20  ;;  %v5360_v25 = vadd.f32 %v6207_v54, %v9299_v23  ;;  %5532 = vadd.xlane.f32.xlu1 %v5475_v47 }
 0x513   : > { %v5406_v38 = vmul.f32 0.2, %v5360_v25  ;;  %v6208_v46 = vpop.f32.mrb[152].mxu1  ;;  %v5437_v2 = vmax.f32 %v5357_v20, %v5405_v13 }
 0x514   : > { %v6209_v15 = vpop.f32.mrb[153].mxu1 }
 0x515   : > { %v6210_v61 = vadd.f32 %v6209_v15, %v6208_v46  ;;  %v6211_v43 = vpop.f32.mrb[154].mxu1  ;;  %v5476_v48 = vmul.f32 %v9306_v9, %v5437_v2  ;;  %v5438_v62 = vmax.f32 %v5360_v25, %v5406_v38 }
 0x516   : > { %v6212_v22 = vpop.f32.mrb[155].mxu1 }
 0x517   : > { %v5365_v12 = vadd.f32 %v6210_v61, %v9299_v23  ;;  %v6213_v17 = vadd.f32 %v6212_v22, %v6211_v43  ;;  %5534 = vadd.xlane.f32.xlu0 %v5476_v48  ;;  %v5477_v35 = vmul.f32 %v9306_v9, %v5438_v62 }
 0x519   : > { %v5407_v50 = vmul.f32 0.2, %v5365_v12  ;;  %v5368_v59 = vadd.f32 %v6213_v17, %v9299_v23  ;;  %5536 = vadd.xlane.f32.xlu1 %v5477_v35 }
 0x51b   : > { %v5408_v36 = vmul.f32 0.2, %v5368_v59  ;;  %v6214_v0 = vpop.f32.mrb[156].mxu1  ;;  %v5439_v63 = vmax.f32 %v5365_v12, %v5407_v50 }
 0x51c   : > { %v6215_v56 = vpop.f32.mrb[157].mxu1 }
 0x51d   : > { %v6216_v41 = vadd.f32 %v6215_v56, %v6214_v0  ;;  %v6217_v8 = vpop.f32.mrb[158].mxu1  ;;  %v5478_v5 = vmul.f32 %v9306_v9, %v5439_v63  ;;  %v5440_v24 = vmax.f32 %v5368_v59, %v5408_v36 }
 0x51e   : > { %v6218_v42 = vpop.f32.mrb[159].mxu1 }
 0x51f   : > { %v5373_v7 = vadd.f32 %v6216_v41, %v9299_v23  ;;  %v6219_v4 = vadd.f32 %v6218_v42, %v6217_v8  ;;  %5538 = vadd.xlane.f32.xlu0 %v5478_v5  ;;  %v5479_v3 = vmul.f32 %v9306_v9, %v5440_v24 }
 0x521   : > { %v5409_v52 = vmul.f32 0.2, %v5373_v7  ;;  %v5376_v58 = vadd.f32 %v6219_v4, %v9299_v23  ;;  %5540 = vadd.xlane.f32.xlu1 %v5479_v3 }
 0x523   : > { %v5410_v21 = vmul.f32 0.2, %v5376_v58  ;;  %v5441_v44 = vmax.f32 %v5373_v7, %v5409_v52 }
 0x525   : > { %v5480_v40 = vmul.f32 %v9306_v9, %v5441_v44  ;;  %v5442_v1 = vmax.f32 %v5376_v58, %v5410_v21 }
 0x527   : > { %5542 = vadd.xlane.f32.xlu0 %v5480_v40  ;;  %v5481_v27 = vmul.f32 %v9306_v9, %v5442_v1 }
 0x529   : > { %5544 = vadd.xlane.f32.xlu1 %v5481_v27 }
 0x53c   : > { %v5483_v23 = vpop.xlane.xlu0 %5482 }
 0x53d   : > { %v5553_v30 = vadd.f32 %v9371_v34, %v5483_v23 }
 0x53f   : > { %5586 = vst.msk [vmem:[%s9376_s21] sm:$0xff] %vm5585_vm1, %v5553_v30 }
 0x540   : > { %v5485_v9 = vpop.xlane.xlu0 %5484 }
 0x541   : > { %v5554_v29 = vadd.f32 %v9371_v34, %v5485_v9 }
 0x543   : > { %5587 = vst.msk [vmem:[%s9376_s21 + $0x8] sm:$0xff] %vm5585_vm1, %v5554_v29 }
 0x544   : > { %v5487_v10 = vpop.xlane.xlu1 %5486 }
 0x545   : > { %v5555_v60 = vadd.f32 %v9371_v34, %v5487_v10 }
 0x547   : > { %5588 = vst.msk [vmem:[%s9376_s21 + $0x10] sm:$0xff] %vm5585_vm1, %v5555_v60 }
 0x548   : > { %v5489_v37 = vpop.xlane.xlu1 %5488 }
 0x549   : > { %v5556_v31 = vadd.f32 %v9371_v34, %v5489_v37 }
 0x54b   : > { %5589 = vst.msk [vmem:[%s9376_s21 + $0x18] sm:$0xff] %vm5585_vm1, %v5556_v31 }
 0x54c   : > { %v5491_v6 = vpop.xlane.xlu0 %5490 }
 0x54d   : > { %v5557_v51 = vadd.f32 %v9371_v34, %v5491_v6 }
 0x54e   : > { %v5493_v53 = vpop.xlane.xlu1 %5492 }
 0x54f   : > { %5590 = vst.msk [vmem:[%s9376_s21 + $0x20] sm:$0xff] %vm5585_vm1, %v5557_v51  ;;  %v5558_v55 = vadd.f32 %v9371_v34, %v5493_v53 }
 0x551   : > { %5591 = vst.msk [vmem:[%s9376_s21 + $0x28] sm:$0xff] %vm5585_vm1, %v5558_v55 }
 0x554   : > { %v5495_v11 = vpop.xlane.xlu0 %5494 }
 0x555   : > { %v5559_v18 = vadd.f32 %v9371_v34, %v5495_v11 }
 0x556   : > { %v5497_v14 = vpop.xlane.xlu1 %5496 }
 0x557   : > { %5592 = vst.msk [vmem:[%s9376_s21 + $0x30] sm:$0xff] %vm5585_vm1, %v5559_v18  ;;  %v5560_v26 = vadd.f32 %v9371_v34, %v5497_v14 }
 0x559   : > { %5593 = vst.msk [vmem:[%s9376_s21 + $0x38] sm:$0xff] %vm5585_vm1, %v5560_v26 }
 0x55c   : > { %v5499_v19 = vpop.xlane.xlu0 %5498 }
 0x55d   : > { %v5561_v32 = vadd.f32 %v9371_v34, %v5499_v19 }
 0x55e   : > { %v5501_v28 = vpop.xlane.xlu1 %5500 }
 0x55f   : > { %5594 = vst.msk [vmem:[%s9376_s21 + $0x40] sm:$0xff] %vm5585_vm1, %v5561_v32  ;;  %v5562_v57 = vadd.f32 %v9371_v34, %v5501_v28 }
 0x561   : > { %5595 = vst.msk [vmem:[%s9376_s21 + $0x48] sm:$0xff] %vm5585_vm1, %v5562_v57 }
 0x564   : > { %v5503_v45 = vpop.xlane.xlu0 %5502 }
 0x565   : > { %v5563_v49 = vadd.f32 %v9371_v34, %v5503_v45 }
 0x566   : > { %v5505_v39 = vpop.xlane.xlu1 %5504 }
 0x567   : > { %5596 = vst.msk [vmem:[%s9376_s21 + $0x50] sm:$0xff] %vm5585_vm1, %v5563_v49  ;;  %v5564_v16 = vadd.f32 %v9371_v34, %v5505_v39 }
 0x569   : > { %5597 = vst.msk [vmem:[%s9376_s21 + $0x58] sm:$0xff] %vm5585_vm1, %v5564_v16 }
 0x56c   : > { %v5507_v33 = vpop.xlane.xlu0 %5506 }
 0x56d   : > { %v5565_v20 = vadd.f32 %v9371_v34, %v5507_v33 }
 0x56e   : > { %v5509_v54 = vpop.xlane.xlu1 %5508 }
 0x56f   : > { %5598 = vst.msk [vmem:[%s9376_s21 + $0x60] sm:$0xff] %vm5585_vm1, %v5565_v20  ;;  %v5566_v47 = vadd.f32 %v9371_v34, %v5509_v54 }
 0x571   : > { %5599 = vst.msk [vmem:[%s9376_s21 + $0x68] sm:$0xff] %vm5585_vm1, %v5566_v47 }
 0x574   : > { %v5511_v13 = vpop.xlane.xlu0 %5510 }
 0x575   : > { %v5567_v25 = vadd.f32 %v9371_v34, %v5511_v13 }
 0x576   : > { %v5513_v38 = vpop.xlane.xlu1 %5512 }
 0x577   : > { %5600 = vst.msk [vmem:[%s9376_s21 + $0x70] sm:$0xff] %vm5585_vm1, %v5567_v25  ;;  %v5568_v46 = vadd.f32 %v9371_v34, %v5513_v38 }
 0x579   : > { %5601 = vst.msk [vmem:[%s9376_s21 + $0x78] sm:$0xff] %vm5585_vm1, %v5568_v46 }
 0x57c   : > { %v5515_v2 = vpop.xlane.xlu0 %5514 }
 0x57d   : > { %v5569_v15 = vadd.f32 %v9371_v34, %v5515_v2 }
 0x57e   : > { %v5517_v61 = vpop.xlane.xlu1 %5516 }
 0x57f   : > { %5602 = vst.msk [vmem:[%s9376_s21 + $0x80] sm:$0xff] %vm5585_vm1, %v5569_v15  ;;  %v5570_v43 = vadd.f32 %v9371_v34, %v5517_v61 }
 0x581   : > { %5603 = vst.msk [vmem:[%s9376_s21 + $0x88] sm:$0xff] %vm5585_vm1, %v5570_v43 }
 0x584   : > { %v5519_v48 = vpop.xlane.xlu0 %5518 }
 0x585   : > { %v5571_v62 = vadd.f32 %v9371_v34, %v5519_v48 }
 0x586   : > { %v5521_v22 = vpop.xlane.xlu1 %5520 }
 0x587   : > { %5604 = vst.msk [vmem:[%s9376_s21 + $0x90] sm:$0xff] %vm5585_vm1, %v5571_v62  ;;  %v5572_v12 = vadd.f32 %v9371_v34, %v5521_v22 }
 0x589   : > { %5605 = vst.msk [vmem:[%s9376_s21 + $0x98] sm:$0xff] %vm5585_vm1, %v5572_v12 }
 0x58c   : > { %v5523_v17 = vpop.xlane.xlu0 %5522 }
 0x58d   : > { %v5573_v35 = vadd.f32 %v9371_v34, %v5523_v17 }
 0x58e   : > { %v5525_v50 = vpop.xlane.xlu1 %5524 }
 0x58f   : > { %5606 = vst.msk [vmem:[%s9376_s21 + $0xa0] sm:$0xff] %vm5585_vm1, %v5573_v35  ;;  %v5574_v59 = vadd.f32 %v9371_v34, %v5525_v50 }
 0x591   : > { %5607 = vst.msk [vmem:[%s9376_s21 + $0xa8] sm:$0xff] %vm5585_vm1, %v5574_v59 }
 0x594   : > { %v5527_v36 = vpop.xlane.xlu0 %5526 }
 0x595   : > { %v5575_v0 = vadd.f32 %v9371_v34, %v5527_v36 }
 0x596   : > { %v5529_v63 = vpop.xlane.xlu1 %5528 }
 0x597   : > { %5608 = vst.msk [vmem:[%s9376_s21 + $0xb0] sm:$0xff] %vm5585_vm1, %v5575_v0  ;;  %v5576_v56 = vadd.f32 %v9371_v34, %v5529_v63 }
 0x599   : > { %5609 = vst.msk [vmem:[%s9376_s21 + $0xb8] sm:$0xff] %vm5585_vm1, %v5576_v56 }
 0x59c   : > { %v5531_v41 = vpop.xlane.xlu0 %5530 }
 0x59d   : > { %v5577_v8 = vadd.f32 %v9371_v34, %v5531_v41 }
 0x59e   : > { %v5533_v5 = vpop.xlane.xlu1 %5532 }
 0x59f   : > { %5610 = vst.msk [vmem:[%s9376_s21 + $0xc0] sm:$0xff] %vm5585_vm1, %v5577_v8  ;;  %v5578_v24 = vadd.f32 %v9371_v34, %v5533_v5 }
 0x5a1   : > { %5611 = vst.msk [vmem:[%s9376_s21 + $0xc8] sm:$0xff] %vm5585_vm1, %v5578_v24 }
 0x5a4   : > { %v5535_v42 = vpop.xlane.xlu0 %5534 }
 0x5a5   : > { %v5579_v7 = vadd.f32 %v9371_v34, %v5535_v42 }
 0x5a6   : > { %v5537_v4 = vpop.xlane.xlu1 %5536 }
 0x5a7   : > { %5612 = vst.msk [vmem:[%s9376_s21 + $0xd0] sm:$0xff] %vm5585_vm1, %v5579_v7  ;;  %v5580_v3 = vadd.f32 %v9371_v34, %v5537_v4 }
 0x5a9   : > { %5613 = vst.msk [vmem:[%s9376_s21 + $0xd8] sm:$0xff] %vm5585_vm1, %v5580_v3 }
 0x5ac   : > { %v5539_v52 = vpop.xlane.xlu0 %5538 }
 0x5ad   : > { %v5581_v58 = vadd.f32 %v9371_v34, %v5539_v52 }
 0x5ae   : > { %v5541_v21 = vpop.xlane.xlu1 %5540 }
 0x5af   : > { %5614 = vst.msk [vmem:[%s9376_s21 + $0xe0] sm:$0xff] %vm5585_vm1, %v5581_v58  ;;  %v5582_v44 = vadd.f32 %v9371_v34, %v5541_v21 }
 0x5b1   : > { %5615 = vst.msk [vmem:[%s9376_s21 + $0xe8] sm:$0xff] %vm5585_vm1, %v5582_v44 }
 0x5b4   : > { %v5543_v40 = vpop.xlane.xlu0 %5542 }
 0x5b5   : > { %v5583_v1 = vadd.f32 %v9371_v34, %v5543_v40 }
 0x5b6   : > { %v5545_v27 = vpop.xlane.xlu1 %5544 }
 0x5b7   : > { %5616 = vst.msk [vmem:[%s9376_s21 + $0xf0] sm:$0xff] %vm5585_vm1, %v5583_v1  ;;  %v5584_v23 = vadd.f32 %v9371_v34, %v5545_v27 }
 0x5b9   : > { %5617 = vst.msk [vmem:[%s9376_s21 + $0xf8] sm:$0xff] %vm5585_vm1, %v5584_v23 }
 0x5ba PF: > { %s21_s11 = sadd.s32 1, %s7488_s11  }
 0x5bb   : > { %p18_p4 = scmp.ge.s32.totalorder %s21_s11, 4  }
 0x5bd   :  { %20 = sbr.rel (!%p18_p4) target bundleno = 3 (0x3), region = 86 }

</bundles_post_ra>
